<compile_context>
chip_gen: v7x
topology: tpu7x:2x2x1
jax: 0.10.0
libtpu: 0.0.40
codegen_flags: <defaults>
</compile_context>

<pallas_src>
import jax
import jax.numpy as jnp
from jax.experimental import pallas as pl
from jax.experimental.pallas import tpu as pltpu


# ------------------------------ fused Pallas kernel ------------------------------

def _net_kernel(x_ref, band1_ref, b1_ref, t1_ref, s1_ref,
                band2_ref, b2_ref, t2_ref, s2_ref,
                wfc1_ref, bfc1_ref, wfc2_ref, bfc2_ref, wfc3_ref, bfc3_ref,
                o_ref):
    """Whole Net forward for one image (the grid runs over the batch).

    Activation layout everywhere: 2-D (rows = H, cols = C * W), c-major columns
    (col = c*W + w).  Convs = banded matmuls accumulated over the 5 kh taps;
    2x2 max-pool = shifted-slice maxes + 0/1 selection matmuls (all in VMEM).
    """
    f32 = jnp.float32
    x = x_ref[0]                                                   # (40, 120), col = ci*40 + w

    # ---- conv1 (3 -> 6, 5x5 valid) + bias + ReLU ----
    y1 = jnp.dot(x[0:36, :], band1_ref[0], preferred_element_type=f32)
    for kh in range(1, 5):
        y1 = y1 + jnp.dot(x[kh:kh + 36, :], band1_ref[kh],
                          preferred_element_type=f32)              # (36, 216), col = co*36 + wo
    y1 = jnp.maximum(y1 + b1_ref[...], 0.0)

    # ---- maxpool 2x2 ----
    t = jnp.maximum(y1[:, 0:215], y1[:, 1:216])                    # neighbour max along W
    u = jnp.maximum(t[0:35, :], t[1:36, :])                        # neighbour max along H (35, 215)
    p1 = jnp.dot(t1_ref[...], u, preferred_element_type=f32)       # even rows  -> (18, 215)
    p1 = jnp.dot(p1, s1_ref[...], preferred_element_type=f32)      # even cols  -> (18, 108)

    # ---- conv2 (6 -> 16, 5x5 valid) + bias + ReLU ----
    y2 = jnp.dot(p1[0:14, :], band2_ref[0], preferred_element_type=f32)
    for kh in range(1, 5):
        y2 = y2 + jnp.dot(p1[kh:kh + 14, :], band2_ref[kh],
                          preferred_element_type=f32)              # (14, 224), col = co*14 + wo
    y2 = jnp.maximum(y2 + b2_ref[...], 0.0)

    # ---- maxpool 2x2 ----
    t = jnp.maximum(y2[:, 0:223], y2[:, 1:224])
    u = jnp.maximum(t[0:13, :], t[1:14, :])                        # (13, 223)
    p2 = jnp.dot(t2_ref[...], u, preferred_element_type=f32)       # (7, 223)
    p2 = jnp.dot(p2, s2_ref[...], preferred_element_type=f32)      # (7, 112), col = co*7 + wp

    # ---- fc1 (784 -> 120); PyTorch (C,H,W) flatten order folded into wfc1 rows ----
    h = bfc1_ref[...]                                              # (1, 120)
    for hh in range(7):
        h = h + jnp.dot(p2[hh:hh + 1, :], wfc1_ref[hh],
                        preferred_element_type=f32)
    h = jnp.maximum(h, 0.0)

    # ---- fc2 (120 -> 84) + ReLU, fc3 (84 -> 4, zero-padded to 128 lanes) ----
    h = jnp.maximum(jnp.dot(h, wfc2_ref[...], preferred_element_type=f32)
                    + bfc2_ref[...], 0.0)
    out = jnp.dot(h, wfc3_ref[...], preferred_element_type=f32) + bfc3_ref[...]
    o_ref[0] = out                                                 # (1, 128) lane-dense store


# ------------------------------ wrapper (one launch) ------------------------------

def net_forward(x_nchw, prep):
    """x_nchw: (B, 3, 40, 40) float32 -> logits (B, 4)."""
    B = x_nchw.shape[0]
    # Single tiny input relayout (~38 KB): rows = h, cols = ci*40 + w.
    x2d = jnp.transpose(x_nchw, (0, 2, 1, 3)).reshape(B, 40, 120)

    const2 = lambda b: (0, 0)
    const3 = lambda b: (0, 0, 0)
    out = pl.pallas_call(
        _net_kernel,
        out_shape=jax.ShapeDtypeStruct((B, 1, 128), jnp.float32),
        grid=(B,),
        in_specs=[
            pl.BlockSpec((1, 40, 120), lambda b: (b, 0, 0)),   # x, one image per grid step
            pl.BlockSpec((5, 120, 216), const3),               # conv1 banded weights (per kh)
            pl.BlockSpec((1, 216), const2),                    # conv1 bias (repeated per wo)
            pl.BlockSpec((18, 35), const2),                    # pool1 row-select (0/1)
            pl.BlockSpec((215, 108), const2),                  # pool1 col-select (0/1)
            pl.BlockSpec((5, 108, 224), const3),               # conv2 banded weights (per kh)
            pl.BlockSpec((1, 224), const2),                    # conv2 bias
            pl.BlockSpec((7, 13), const2),                     # pool2 row-select
            pl.BlockSpec((223, 112), const2),                  # pool2 col-select
            pl.BlockSpec((7, 112, 120), const3),               # fc1 weights, one slab per h row
            pl.BlockSpec((1, 120), const2),                    # fc1 bias
            pl.BlockSpec((120, 84), const2),                   # fc2 weights
            pl.BlockSpec((1, 84), const2),                     # fc2 bias
            pl.BlockSpec((84, 128), const2),                   # fc3 weights (padded to 128)
            pl.BlockSpec((1, 128), const2),                    # fc3 bias    (padded to 128)
        ],
        out_specs=pl.BlockSpec((1, 1, 128), lambda b: (b, 0, 0)),
        compiler_params=pltpu.CompilerParams(
            dimension_semantics=("parallel",)),
    )(x2d, prep["band1"], prep["b1"], prep["t1"], prep["s1"],
      prep["band2"], prep["b2"], prep["t2"], prep["s2"],
      prep["fc1_w"], prep["fc1_b"], prep["fc2_w"], prep["fc2_b"],
      prep["fc3_w"], prep["fc3_b"])
    return out[:, 0, :4]


# ----------------------- prep-time parameter lowering (off hot path) ----------------------

def _conv_band(w_pt, w_in):
    """PyTorch conv weight (Cout, Cin, K, K) -> per-kh banded matrices.

    band[kh][ci*w_in + w, co*wo + o] = w_pt[co, ci, kh, w - o]  (0 <= w-o < K, else 0)
    so that  (H_in, Cin*W_in) @ band[kh]  performs the 1-D conv along W and the
    channel contraction for kernel row kh in a single MXU matmul.
    """
    cout, cin, K, _ = w_pt.shape
    wo = w_in - K + 1
    wt = jnp.transpose(w_pt, (2, 1, 0, 3))                 # (K, Cin, Cout, kw)
    kw = jnp.arange(w_in)[:, None] - jnp.arange(wo)[None, :]   # (w_in, wo)
    valid = (kw >= 0) & (kw < K)
    band = wt[:, :, :, jnp.clip(kw, 0, K - 1)]             # (K, Cin, Cout, w_in, wo)
    band = jnp.where(valid[None, None, None], band, 0.0)
    band = jnp.transpose(band, (0, 1, 3, 2, 4))            # (K, Cin, w_in, Cout, wo)
    return band.reshape(K, cin * w_in, cout * wo)


def _pool_row_select(h_out):
    """(h_out, 2*h_out - 1) 0/1 matrix picking even rows of the neighbour-max slab."""
    m = jnp.zeros((h_out, 2 * h_out - 1), jnp.float32)
    return m.at[jnp.arange(h_out), 2 * jnp.arange(h_out)].set(1.0)


def _pool_col_select(c, w_in):
    """(c*w_in - 1, c*(w_in//2)) 0/1 matrix picking even-w columns per channel block."""
    w_out = w_in // 2
    rows = (jnp.arange(c)[:, None] * w_in + 2 * jnp.arange(w_out)[None, :]).reshape(-1)
    cols = (jnp.arange(c)[:, None] * w_out + jnp.arange(w_out)[None, :]).reshape(-1)
    m = jnp.zeros((c * w_in - 1, c * w_out), jnp.float32)
    return m.at[rows, cols].set(1.0)


def prepare_params(params):
    """Lower PyTorch-layout parameters into the kernel's VMEM-friendly layout (done once)."""
    p = {}
    p["band1"] = _conv_band(params["conv1_w"], 40)               # (5, 120, 216)
    p["b1"] = jnp.repeat(params["conv1_b"], 36)[None, :]         # (1, 216)
    p["t1"] = _pool_row_select(18)                               # (18, 35)
    p["s1"] = _pool_col_select(6, 36)                            # (215, 108)
    p["band2"] = _conv_band(params["conv2_w"], 18)               # (5, 108, 224)
    p["b2"] = jnp.repeat(params["conv2_b"], 14)[None, :]         # (1, 224)
    p["t2"] = _pool_row_select(7)                                # (7, 13)
    p["s2"] = _pool_col_select(16, 14)                           # (223, 112)
    # fc1: PyTorch flatten index is co*49 + h*7 + w ; kernel feeds rows h with cols co*7 + w.
    w1 = params["fc1_w"].T.reshape(16, 7, 7, 120)                # (co, h, w, n)
    p["fc1_w"] = jnp.transpose(w1, (1, 0, 2, 3)).reshape(7, 112, 120)
    p["fc1_b"] = params["fc1_b"][None, :]                        # (1, 120)
    p["fc2_w"] = params["fc2_w"].T                               # (120, 84)
    p["fc2_b"] = params["fc2_b"][None, :]                        # (1, 84)
    p["fc3_w"] = jnp.zeros((84, 128), jnp.float32).at[:, :4].set(params["fc3_w"].T)
    p["fc3_b"] = jnp.zeros((1, 128), jnp.float32).at[0, :4].set(params["fc3_b"])
    return p


# ----------------------------- parameter init (PyTorch layout) -----------------------------

def init_params(key):
    """Deterministic synthetic params, PyTorch default uniform(-1/sqrt(fan_in), +)."""
    def u(k, shape, fan_in):
        bound = 1.0 / (fan_in ** 0.5)
        return jax.random.uniform(k, shape, jnp.float32, -bound, bound)

    ks = jax.random.split(key, 10)
    return {
        "conv1_w": u(ks[0], (6, 3, 5, 5), 3 * 25),
        "conv1_b": u(ks[1], (6,), 3 * 25),
        "conv2_w": u(ks[2], (16, 6, 5, 5), 6 * 25),
        "conv2_b": u(ks[3], (16,), 6 * 25),
        "fc1_w": u(ks[4], (120, 784), 784),
        "fc1_b": u(ks[5], (120,), 784),
        "fc2_w": u(ks[6], (84, 120), 120),
        "fc2_b": u(ks[7], (84,), 120),
        "fc3_w": u(ks[8], (4, 84), 84),
        "fc3_b": u(ks[9], (4,), 84),
    }


# ----------------------------- plain-JAX reference (for a sanity check) -----------------------------

def reference_forward(x, params):
    dn = ("NCHW", "OIHW", "NCHW")
    y = jax.lax.conv_general_dilated(x, params["conv1_w"], (1, 1), "VALID",
                                     dimension_numbers=dn)
    y = jax.nn.relu(y + params["conv1_b"][None, :, None, None])
    y = jax.lax.reduce_window(y, -jnp.inf, jax.lax.max, (1, 1, 2, 2), (1, 1, 2, 2), "VALID")
    y = jax.lax.conv_general_dilated(y, params["conv2_w"], (1, 1), "VALID",
                                     dimension_numbers=dn)
    y = jax.nn.relu(y + params["conv2_b"][None, :, None, None])
    y = jax.lax.reduce_window(y, -jnp.inf, jax.lax.max, (1, 1, 2, 2), (1, 1, 2, 2), "VALID")
    y = y.reshape(y.shape[0], -1)
    y = jax.nn.relu(y @ params["fc1_w"].T + params["fc1_b"])
    y = jax.nn.relu(y @ params["fc2_w"].T + params["fc2_b"])
    return y @ params["fc3_w"].T + params["fc3_b"]


# ----------------------------------------- main -----------------------------------------

if __name__ == "__main__":
    key = jax.random.PRNGKey(0)
    k_x, k_p = jax.random.split(key)
    # Spatial size must be 40 so the flatten yields 16*7*7 = 784 (fc1 in-dim).
    x = jax.random.normal(k_x, (2, 3, 40, 40), jnp.float32)
    params = init_params(k_p)
    prep = prepare_params(params)          # one-time parameter lowering, off the hot path

    fwd = jax.jit(net_forward)
    out = jax.block_until_ready(fwd(x, prep))
    assert out.shape == (2, 4) and out.dtype == jnp.float32

    ref = reference_forward(x, params)
    err = float(jnp.max(jnp.abs(out - ref)))
    if err > 2e-2:
        raise RuntimeError(f"kernel/reference mismatch: max abs err {err:.3e}")
    print("KERNEL_OK")
</pallas_src>

<mosaic_0001>
module attributes {stable_mosaic.version = 11 : i64} {
  func.func @_net_kernel(%arg0: i32, %arg1: memref<1x40x120xf32, #tpu.memory_space<vmem>>, %arg2: memref<5x120x216xf32, #tpu.memory_space<vmem>>, %arg3: memref<1x216xf32, #tpu.memory_space<vmem>>, %arg4: memref<18x35xf32, #tpu.memory_space<vmem>>, %arg5: memref<215x108xf32, #tpu.memory_space<vmem>>, %arg6: memref<5x108x224xf32, #tpu.memory_space<vmem>>, %arg7: memref<1x224xf32, #tpu.memory_space<vmem>>, %arg8: memref<7x13xf32, #tpu.memory_space<vmem>>, %arg9: memref<223x112xf32, #tpu.memory_space<vmem>>, %arg10: memref<7x112x120xf32, #tpu.memory_space<vmem>>, %arg11: memref<1x120xf32, #tpu.memory_space<vmem>>, %arg12: memref<120x84xf32, #tpu.memory_space<vmem>>, %arg13: memref<1x84xf32, #tpu.memory_space<vmem>>, %arg14: memref<84x128xf32, #tpu.memory_space<vmem>>, %arg15: memref<1x128xf32, #tpu.memory_space<vmem>>, %arg16: memref<1x1x128xf32, #tpu.memory_space<vmem>>) attributes {dimension_semantics = [#tpu.dimension_semantics<parallel>], iteration_bounds = array<i64: 2>, scalar_prefetch = 0 : i64, scratch_operands = 0 : i64, tpu.core_type = #tpu.core_type<tc>, window_params = [{transform_indices = @transform_0, window_bounds = array<i64: 1, 40, 120>}, {pipeline_mode = #tpu.pipeline_mode<synchronous>, transform_indices = @transform_1, window_bounds = array<i64: 5, 120, 216>}, {pipeline_mode = #tpu.pipeline_mode<synchronous>, transform_indices = @transform_2, window_bounds = array<i64: 1, 216>}, {pipeline_mode = #tpu.pipeline_mode<synchronous>, transform_indices = @transform_3, window_bounds = array<i64: 18, 35>}, {pipeline_mode = #tpu.pipeline_mode<synchronous>, transform_indices = @transform_4, window_bounds = array<i64: 215, 108>}, {pipeline_mode = #tpu.pipeline_mode<synchronous>, transform_indices = @transform_5, window_bounds = array<i64: 5, 108, 224>}, {pipeline_mode = #tpu.pipeline_mode<synchronous>, transform_indices = @transform_6, window_bounds = array<i64: 1, 224>}, {pipeline_mode = #tpu.pipeline_mode<synchronous>, transform_indices = @transform_7, window_bounds = array<i64: 7, 13>}, {pipeline_mode = #tpu.pipeline_mode<synchronous>, transform_indices = @transform_8, window_bounds = array<i64: 223, 112>}, {pipeline_mode = #tpu.pipeline_mode<synchronous>, transform_indices = @transform_9, window_bounds = array<i64: 7, 112, 120>}, {pipeline_mode = #tpu.pipeline_mode<synchronous>, transform_indices = @transform_10, window_bounds = array<i64: 1, 120>}, {pipeline_mode = #tpu.pipeline_mode<synchronous>, transform_indices = @transform_11, window_bounds = array<i64: 120, 84>}, {pipeline_mode = #tpu.pipeline_mode<synchronous>, transform_indices = @transform_12, window_bounds = array<i64: 1, 84>}, {pipeline_mode = #tpu.pipeline_mode<synchronous>, transform_indices = @transform_13, window_bounds = array<i64: 84, 128>}, {pipeline_mode = #tpu.pipeline_mode<synchronous>, transform_indices = @transform_14, window_bounds = array<i64: 1, 128>}, {transform_indices = @transform_15, window_bounds = array<i64: 1, 1, 128>}]} {
    %c0 = arith.constant 0 : index
    %c0_0 = arith.constant 0 : index
    %c0_1 = arith.constant 0 : index
    %0 = vector.load %arg1[%c0, %c0_0, %c0_1] : memref<1x40x120xf32, #tpu.memory_space<vmem>>, vector<1x40x120xf32>
    %1 = vector.shape_cast %0 : vector<1x40x120xf32> to vector<40x120xf32>
    %2 = vector.extract_strided_slice %1 {offsets = [0, 0], sizes = [36, 120], strides = [1, 1]} : vector<40x120xf32> to vector<36x120xf32>
    %c0_2 = arith.constant 0 : index
    %c0_3 = arith.constant 0 : index
    %c0_4 = arith.constant 0 : index
    %3 = vector.load %arg2[%c0_2, %c0_3, %c0_4] : memref<5x120x216xf32, #tpu.memory_space<vmem>>, vector<1x120x216xf32>
    %4 = vector.shape_cast %3 : vector<1x120x216xf32> to vector<120x216xf32>
    %cst = arith.constant dense<0.000000e+00> : vector<36x216xf32>
    %5 = tpu.matmul %2, %4, %cst {dimension_numbers = #tpu.dot_dimension_numbers<[1], [0], [0], [1], [0, 0, 1, 1], [], []>} : vector<36x120xf32>, vector<120x216xf32>, vector<36x216xf32> -> vector<36x216xf32>
    %6 = vector.extract_strided_slice %1 {offsets = [1, 0], sizes = [36, 120], strides = [1, 1]} : vector<40x120xf32> to vector<36x120xf32>
    %c1 = arith.constant 1 : index
    %c0_5 = arith.constant 0 : index
    %c0_6 = arith.constant 0 : index
    %7 = vector.load %arg2[%c1, %c0_5, %c0_6] : memref<5x120x216xf32, #tpu.memory_space<vmem>>, vector<1x120x216xf32>
    %8 = vector.shape_cast %7 : vector<1x120x216xf32> to vector<120x216xf32>
    %cst_7 = arith.constant dense<0.000000e+00> : vector<36x216xf32>
    %9 = tpu.matmul %6, %8, %cst_7 {dimension_numbers = #tpu.dot_dimension_numbers<[1], [0], [0], [1], [0, 0, 1, 1], [], []>} : vector<36x120xf32>, vector<120x216xf32>, vector<36x216xf32> -> vector<36x216xf32>
    %10 = arith.addf %5, %9 : vector<36x216xf32>
    %11 = vector.extract_strided_slice %1 {offsets = [2, 0], sizes = [36, 120], strides = [1, 1]} : vector<40x120xf32> to vector<36x120xf32>
    %c2 = arith.constant 2 : index
    %c0_8 = arith.constant 0 : index
    %c0_9 = arith.constant 0 : index
    %12 = vector.load %arg2[%c2, %c0_8, %c0_9] : memref<5x120x216xf32, #tpu.memory_space<vmem>>, vector<1x120x216xf32>
    %13 = vector.shape_cast %12 : vector<1x120x216xf32> to vector<120x216xf32>
    %cst_10 = arith.constant dense<0.000000e+00> : vector<36x216xf32>
    %14 = tpu.matmul %11, %13, %cst_10 {dimension_numbers = #tpu.dot_dimension_numbers<[1], [0], [0], [1], [0, 0, 1, 1], [], []>} : vector<36x120xf32>, vector<120x216xf32>, vector<36x216xf32> -> vector<36x216xf32>
    %15 = arith.addf %10, %14 : vector<36x216xf32>
    %16 = vector.extract_strided_slice %1 {offsets = [3, 0], sizes = [36, 120], strides = [1, 1]} : vector<40x120xf32> to vector<36x120xf32>
    %c3 = arith.constant 3 : index
    %c0_11 = arith.constant 0 : index
    %c0_12 = arith.constant 0 : index
    %17 = vector.load %arg2[%c3, %c0_11, %c0_12] : memref<5x120x216xf32, #tpu.memory_space<vmem>>, vector<1x120x216xf32>
    %18 = vector.shape_cast %17 : vector<1x120x216xf32> to vector<120x216xf32>
    %cst_13 = arith.constant dense<0.000000e+00> : vector<36x216xf32>
    %19 = tpu.matmul %16, %18, %cst_13 {dimension_numbers = #tpu.dot_dimension_numbers<[1], [0], [0], [1], [0, 0, 1, 1], [], []>} : vector<36x120xf32>, vector<120x216xf32>, vector<36x216xf32> -> vector<36x216xf32>
    %20 = arith.addf %15, %19 : vector<36x216xf32>
    %21 = vector.extract_strided_slice %1 {offsets = [4, 0], sizes = [36, 120], strides = [1, 1]} : vector<40x120xf32> to vector<36x120xf32>
    %c4 = arith.constant 4 : index
    %c0_14 = arith.constant 0 : index
    %c0_15 = arith.constant 0 : index
    %22 = vector.load %arg2[%c4, %c0_14, %c0_15] : memref<5x120x216xf32, #tpu.memory_space<vmem>>, vector<1x120x216xf32>
    %23 = vector.shape_cast %22 : vector<1x120x216xf32> to vector<120x216xf32>
    %cst_16 = arith.constant dense<0.000000e+00> : vector<36x216xf32>
    %24 = tpu.matmul %21, %23, %cst_16 {dimension_numbers = #tpu.dot_dimension_numbers<[1], [0], [0], [1], [0, 0, 1, 1], [], []>} : vector<36x120xf32>, vector<120x216xf32>, vector<36x216xf32> -> vector<36x216xf32>
    %25 = arith.addf %20, %24 : vector<36x216xf32>
    %c0_17 = arith.constant 0 : index
    %c0_18 = arith.constant 0 : index
    %26 = vector.load %arg3[%c0_17, %c0_18] : memref<1x216xf32, #tpu.memory_space<vmem>>, vector<1x216xf32>
    %27 = vector.broadcast %26 : vector<1x216xf32> to vector<36x216xf32>
    %28 = arith.addf %25, %27 : vector<36x216xf32>
    %cst_19 = arith.constant 0.000000e+00 : f32
    %29 = vector.broadcast %cst_19 : f32 to vector<36x216xf32>
    %30 = arith.maximumf %28, %29 : vector<36x216xf32>
    %31 = vector.extract_strided_slice %30 {offsets = [0, 0], sizes = [36, 215], strides = [1, 1]} : vector<36x216xf32> to vector<36x215xf32>
    %32 = vector.extract_strided_slice %30 {offsets = [0, 1], sizes = [36, 215], strides = [1, 1]} : vector<36x216xf32> to vector<36x215xf32>
    %33 = arith.maximumf %31, %32 : vector<36x215xf32>
    %34 = vector.extract_strided_slice %33 {offsets = [0, 0], sizes = [35, 215], strides = [1, 1]} : vector<36x215xf32> to vector<35x215xf32>
    %35 = vector.extract_strided_slice %33 {offsets = [1, 0], sizes = [35, 215], strides = [1, 1]} : vector<36x215xf32> to vector<35x215xf32>
    %36 = arith.maximumf %34, %35 : vector<35x215xf32>
    %c0_20 = arith.constant 0 : index
    %c0_21 = arith.constant 0 : index
    %37 = vector.load %arg4[%c0_20, %c0_21] : memref<18x35xf32, #tpu.memory_space<vmem>>, vector<18x35xf32>
    %cst_22 = arith.constant dense<0.000000e+00> : vector<18x215xf32>
    %38 = tpu.matmul %37, %36, %cst_22 {dimension_numbers = #tpu.dot_dimension_numbers<[1], [0], [0], [1], [0, 0, 1, 1], [], []>} : vector<18x35xf32>, vector<35x215xf32>, vector<18x215xf32> -> vector<18x215xf32>
    %c0_23 = arith.constant 0 : index
    %c0_24 = arith.constant 0 : index
    %39 = vector.load %arg5[%c0_23, %c0_24] : memref<215x108xf32, #tpu.memory_space<vmem>>, vector<215x108xf32>
    %cst_25 = arith.constant dense<0.000000e+00> : vector<18x108xf32>
    %40 = tpu.matmul %38, %39, %cst_25 {dimension_numbers = #tpu.dot_dimension_numbers<[1], [0], [0], [1], [0, 0, 1, 1], [], []>} : vector<18x215xf32>, vector<215x108xf32>, vector<18x108xf32> -> vector<18x108xf32>
    %41 = vector.extract_strided_slice %40 {offsets = [0, 0], sizes = [14, 108], strides = [1, 1]} : vector<18x108xf32> to vector<14x108xf32>
    %c0_26 = arith.constant 0 : index
    %c0_27 = arith.constant 0 : index
    %c0_28 = arith.constant 0 : index
    %42 = vector.load %arg6[%c0_26, %c0_27, %c0_28] : memref<5x108x224xf32, #tpu.memory_space<vmem>>, vector<1x108x224xf32>
    %43 = vector.shape_cast %42 : vector<1x108x224xf32> to vector<108x224xf32>
    %cst_29 = arith.constant dense<0.000000e+00> : vector<14x224xf32>
    %44 = tpu.matmul %41, %43, %cst_29 {dimension_numbers = #tpu.dot_dimension_numbers<[1], [0], [0], [1], [0, 0, 1, 1], [], []>} : vector<14x108xf32>, vector<108x224xf32>, vector<14x224xf32> -> vector<14x224xf32>
    %45 = vector.extract_strided_slice %40 {offsets = [1, 0], sizes = [14, 108], strides = [1, 1]} : vector<18x108xf32> to vector<14x108xf32>
    %c1_30 = arith.constant 1 : index
    %c0_31 = arith.constant 0 : index
    %c0_32 = arith.constant 0 : index
    %46 = vector.load %arg6[%c1_30, %c0_31, %c0_32] : memref<5x108x224xf32, #tpu.memory_space<vmem>>, vector<1x108x224xf32>
    %47 = vector.shape_cast %46 : vector<1x108x224xf32> to vector<108x224xf32>
    %cst_33 = arith.constant dense<0.000000e+00> : vector<14x224xf32>
    %48 = tpu.matmul %45, %47, %cst_33 {dimension_numbers = #tpu.dot_dimension_numbers<[1], [0], [0], [1], [0, 0, 1, 1], [], []>} : vector<14x108xf32>, vector<108x224xf32>, vector<14x224xf32> -> vector<14x224xf32>
    %49 = arith.addf %44, %48 : vector<14x224xf32>
    %50 = vector.extract_strided_slice %40 {offsets = [2, 0], sizes = [14, 108], strides = [1, 1]} : vector<18x108xf32> to vector<14x108xf32>
    %c2_34 = arith.constant 2 : index
    %c0_35 = arith.constant 0 : index
    %c0_36 = arith.constant 0 : index
    %51 = vector.load %arg6[%c2_34, %c0_35, %c0_36] : memref<5x108x224xf32, #tpu.memory_space<vmem>>, vector<1x108x224xf32>
    %52 = vector.shape_cast %51 : vector<1x108x224xf32> to vector<108x224xf32>
    %cst_37 = arith.constant dense<0.000000e+00> : vector<14x224xf32>
    %53 = tpu.matmul %50, %52, %cst_37 {dimension_numbers = #tpu.dot_dimension_numbers<[1], [0], [0], [1], [0, 0, 1, 1], [], []>} : vector<14x108xf32>, vector<108x224xf32>, vector<14x224xf32> -> vector<14x224xf32>
    %54 = arith.addf %49, %53 : vector<14x224xf32>
    %55 = vector.extract_strided_slice %40 {offsets = [3, 0], sizes = [14, 108], strides = [1, 1]} : vector<18x108xf32> to vector<14x108xf32>
    %c3_38 = arith.constant 3 : index
    %c0_39 = arith.constant 0 : index
    %c0_40 = arith.constant 0 : index
    %56 = vector.load %arg6[%c3_38, %c0_39, %c0_40] : memref<5x108x224xf32, #tpu.memory_space<vmem>>, vector<1x108x224xf32>
    %57 = vector.shape_cast %56 : vector<1x108x224xf32> to vector<108x224xf32>
    %cst_41 = arith.constant dense<0.000000e+00> : vector<14x224xf32>
    %58 = tpu.matmul %55, %57, %cst_41 {dimension_numbers = #tpu.dot_dimension_numbers<[1], [0], [0], [1], [0, 0, 1, 1], [], []>} : vector<14x108xf32>, vector<108x224xf32>, vector<14x224xf32> -> vector<14x224xf32>
    %59 = arith.addf %54, %58 : vector<14x224xf32>
    %60 = vector.extract_strided_slice %40 {offsets = [4, 0], sizes = [14, 108], strides = [1, 1]} : vector<18x108xf32> to vector<14x108xf32>
    %c4_42 = arith.constant 4 : index
    %c0_43 = arith.constant 0 : index
    %c0_44 = arith.constant 0 : index
    %61 = vector.load %arg6[%c4_42, %c0_43, %c0_44] : memref<5x108x224xf32, #tpu.memory_space<vmem>>, vector<1x108x224xf32>
    %62 = vector.shape_cast %61 : vector<1x108x224xf32> to vector<108x224xf32>
    %cst_45 = arith.constant dense<0.000000e+00> : vector<14x224xf32>
    %63 = tpu.matmul %60, %62, %cst_45 {dimension_numbers = #tpu.dot_dimension_numbers<[1], [0], [0], [1], [0, 0, 1, 1], [], []>} : vector<14x108xf32>, vector<108x224xf32>, vector<14x224xf32> -> vector<14x224xf32>
    %64 = arith.addf %59, %63 : vector<14x224xf32>
    %c0_46 = arith.constant 0 : index
    %c0_47 = arith.constant 0 : index
    %65 = vector.load %arg7[%c0_46, %c0_47] : memref<1x224xf32, #tpu.memory_space<vmem>>, vector<1x224xf32>
    %66 = vector.broadcast %65 : vector<1x224xf32> to vector<14x224xf32>
    %67 = arith.addf %64, %66 : vector<14x224xf32>
    %cst_48 = arith.constant 0.000000e+00 : f32
    %68 = vector.broadcast %cst_48 : f32 to vector<14x224xf32>
    %69 = arith.maximumf %67, %68 : vector<14x224xf32>
    %70 = vector.extract_strided_slice %69 {offsets = [0, 0], sizes = [14, 223], strides = [1, 1]} : vector<14x224xf32> to vector<14x223xf32>
    %71 = vector.extract_strided_slice %69 {offsets = [0, 1], sizes = [14, 223], strides = [1, 1]} : vector<14x224xf32> to vector<14x223xf32>
    %72 = arith.maximumf %70, %71 : vector<14x223xf32>
    %73 = vector.extract_strided_slice %72 {offsets = [0, 0], sizes = [13, 223], strides = [1, 1]} : vector<14x223xf32> to vector<13x223xf32>
    %74 = vector.extract_strided_slice %72 {offsets = [1, 0], sizes = [13, 223], strides = [1, 1]} : vector<14x223xf32> to vector<13x223xf32>
    %75 = arith.maximumf %73, %74 : vector<13x223xf32>
    %c0_49 = arith.constant 0 : index
    %c0_50 = arith.constant 0 : index
    %76 = vector.load %arg8[%c0_49, %c0_50] : memref<7x13xf32, #tpu.memory_space<vmem>>, vector<7x13xf32>
    %cst_51 = arith.constant dense<0.000000e+00> : vector<7x223xf32>
    %77 = tpu.matmul %76, %75, %cst_51 {dimension_numbers = #tpu.dot_dimension_numbers<[1], [0], [0], [1], [0, 0, 1, 1], [], []>} : vector<7x13xf32>, vector<13x223xf32>, vector<7x223xf32> -> vector<7x223xf32>
    %c0_52 = arith.constant 0 : index
    %c0_53 = arith.constant 0 : index
    %78 = vector.load %arg9[%c0_52, %c0_53] : memref<223x112xf32, #tpu.memory_space<vmem>>, vector<223x112xf32>
    %cst_54 = arith.constant dense<0.000000e+00> : vector<7x112xf32>
    %79 = tpu.matmul %77, %78, %cst_54 {dimension_numbers = #tpu.dot_dimension_numbers<[1], [0], [0], [1], [0, 0, 1, 1], [], []>} : vector<7x223xf32>, vector<223x112xf32>, vector<7x112xf32> -> vector<7x112xf32>
    %c0_55 = arith.constant 0 : index
    %c0_56 = arith.constant 0 : index
    %80 = vector.load %arg11[%c0_55, %c0_56] : memref<1x120xf32, #tpu.memory_space<vmem>>, vector<1x120xf32>
    %81 = vector.extract_strided_slice %79 {offsets = [0, 0], sizes = [1, 112], strides = [1, 1]} : vector<7x112xf32> to vector<1x112xf32>
    %c0_57 = arith.constant 0 : index
    %c0_58 = arith.constant 0 : index
    %c0_59 = arith.constant 0 : index
    %82 = vector.load %arg10[%c0_57, %c0_58, %c0_59] : memref<7x112x120xf32, #tpu.memory_space<vmem>>, vector<1x112x120xf32>
    %83 = vector.shape_cast %82 : vector<1x112x120xf32> to vector<112x120xf32>
    %cst_60 = arith.constant dense<0.000000e+00> : vector<1x120xf32>
    %84 = tpu.matmul %81, %83, %cst_60 {dimension_numbers = #tpu.dot_dimension_numbers<[1], [0], [0], [1], [0, 0, 1, 1], [], []>} : vector<1x112xf32>, vector<112x120xf32>, vector<1x120xf32> -> vector<1x120xf32>
    %85 = arith.addf %80, %84 : vector<1x120xf32>
    %86 = vector.extract_strided_slice %79 {offsets = [1, 0], sizes = [1, 112], strides = [1, 1]} : vector<7x112xf32> to vector<1x112xf32>
    %c1_61 = arith.constant 1 : index
    %c0_62 = arith.constant 0 : index
    %c0_63 = arith.constant 0 : index
    %87 = vector.load %arg10[%c1_61, %c0_62, %c0_63] : memref<7x112x120xf32, #tpu.memory_space<vmem>>, vector<1x112x120xf32>
    %88 = vector.shape_cast %87 : vector<1x112x120xf32> to vector<112x120xf32>
    %cst_64 = arith.constant dense<0.000000e+00> : vector<1x120xf32>
    %89 = tpu.matmul %86, %88, %cst_64 {dimension_numbers = #tpu.dot_dimension_numbers<[1], [0], [0], [1], [0, 0, 1, 1], [], []>} : vector<1x112xf32>, vector<112x120xf32>, vector<1x120xf32> -> vector<1x120xf32>
    %90 = arith.addf %85, %89 : vector<1x120xf32>
    %91 = vector.extract_strided_slice %79 {offsets = [2, 0], sizes = [1, 112], strides = [1, 1]} : vector<7x112xf32> to vector<1x112xf32>
    %c2_65 = arith.constant 2 : index
    %c0_66 = arith.constant 0 : index
    %c0_67 = arith.constant 0 : index
    %92 = vector.load %arg10[%c2_65, %c0_66, %c0_67] : memref<7x112x120xf32, #tpu.memory_space<vmem>>, vector<1x112x120xf32>
    %93 = vector.shape_cast %92 : vector<1x112x120xf32> to vector<112x120xf32>
    %cst_68 = arith.constant dense<0.000000e+00> : vector<1x120xf32>
    %94 = tpu.matmul %91, %93, %cst_68 {dimension_numbers = #tpu.dot_dimension_numbers<[1], [0], [0], [1], [0, 0, 1, 1], [], []>} : vector<1x112xf32>, vector<112x120xf32>, vector<1x120xf32> -> vector<1x120xf32>
    %95 = arith.addf %90, %94 : vector<1x120xf32>
    %96 = vector.extract_strided_slice %79 {offsets = [3, 0], sizes = [1, 112], strides = [1, 1]} : vector<7x112xf32> to vector<1x112xf32>
    %c3_69 = arith.constant 3 : index
    %c0_70 = arith.constant 0 : index
    %c0_71 = arith.constant 0 : index
    %97 = vector.load %arg10[%c3_69, %c0_70, %c0_71] : memref<7x112x120xf32, #tpu.memory_space<vmem>>, vector<1x112x120xf32>
    %98 = vector.shape_cast %97 : vector<1x112x120xf32> to vector<112x120xf32>
    %cst_72 = arith.constant dense<0.000000e+00> : vector<1x120xf32>
    %99 = tpu.matmul %96, %98, %cst_72 {dimension_numbers = #tpu.dot_dimension_numbers<[1], [0], [0], [1], [0, 0, 1, 1], [], []>} : vector<1x112xf32>, vector<112x120xf32>, vector<1x120xf32> -> vector<1x120xf32>
    %100 = arith.addf %95, %99 : vector<1x120xf32>
    %101 = vector.extract_strided_slice %79 {offsets = [4, 0], sizes = [1, 112], strides = [1, 1]} : vector<7x112xf32> to vector<1x112xf32>
    %c4_73 = arith.constant 4 : index
    %c0_74 = arith.constant 0 : index
    %c0_75 = arith.constant 0 : index
    %102 = vector.load %arg10[%c4_73, %c0_74, %c0_75] : memref<7x112x120xf32, #tpu.memory_space<vmem>>, vector<1x112x120xf32>
    %103 = vector.shape_cast %102 : vector<1x112x120xf32> to vector<112x120xf32>
    %cst_76 = arith.constant dense<0.000000e+00> : vector<1x120xf32>
    %104 = tpu.matmul %101, %103, %cst_76 {dimension_numbers = #tpu.dot_dimension_numbers<[1], [0], [0], [1], [0, 0, 1, 1], [], []>} : vector<1x112xf32>, vector<112x120xf32>, vector<1x120xf32> -> vector<1x120xf32>
    %105 = arith.addf %100, %104 : vector<1x120xf32>
    %106 = vector.extract_strided_slice %79 {offsets = [5, 0], sizes = [1, 112], strides = [1, 1]} : vector<7x112xf32> to vector<1x112xf32>
    %c5 = arith.constant 5 : index
    %c0_77 = arith.constant 0 : index
    %c0_78 = arith.constant 0 : index
    %107 = vector.load %arg10[%c5, %c0_77, %c0_78] : memref<7x112x120xf32, #tpu.memory_space<vmem>>, vector<1x112x120xf32>
    %108 = vector.shape_cast %107 : vector<1x112x120xf32> to vector<112x120xf32>
    %cst_79 = arith.constant dense<0.000000e+00> : vector<1x120xf32>
    %109 = tpu.matmul %106, %108, %cst_79 {dimension_numbers = #tpu.dot_dimension_numbers<[1], [0], [0], [1], [0, 0, 1, 1], [], []>} : vector<1x112xf32>, vector<112x120xf32>, vector<1x120xf32> -> vector<1x120xf32>
    %110 = arith.addf %105, %109 : vector<1x120xf32>
    %111 = vector.extract_strided_slice %79 {offsets = [6, 0], sizes = [1, 112], strides = [1, 1]} : vector<7x112xf32> to vector<1x112xf32>
    %c6 = arith.constant 6 : index
    %c0_80 = arith.constant 0 : index
    %c0_81 = arith.constant 0 : index
    %112 = vector.load %arg10[%c6, %c0_80, %c0_81] : memref<7x112x120xf32, #tpu.memory_space<vmem>>, vector<1x112x120xf32>
    %113 = vector.shape_cast %112 : vector<1x112x120xf32> to vector<112x120xf32>
    %cst_82 = arith.constant dense<0.000000e+00> : vector<1x120xf32>
    %114 = tpu.matmul %111, %113, %cst_82 {dimension_numbers = #tpu.dot_dimension_numbers<[1], [0], [0], [1], [0, 0, 1, 1], [], []>} : vector<1x112xf32>, vector<112x120xf32>, vector<1x120xf32> -> vector<1x120xf32>
    %115 = arith.addf %110, %114 : vector<1x120xf32>
    %cst_83 = arith.constant 0.000000e+00 : f32
    %116 = vector.broadcast %cst_83 : f32 to vector<1x120xf32>
    %117 = arith.maximumf %115, %116 : vector<1x120xf32>
    %c0_84 = arith.constant 0 : index
    %c0_85 = arith.constant 0 : index
    %118 = vector.load %arg12[%c0_84, %c0_85] : memref<120x84xf32, #tpu.memory_space<vmem>>, vector<120x84xf32>
    %cst_86 = arith.constant dense<0.000000e+00> : vector<1x84xf32>
    %119 = tpu.matmul %117, %118, %cst_86 {dimension_numbers = #tpu.dot_dimension_numbers<[1], [0], [0], [1], [0, 0, 1, 1], [], []>} : vector<1x120xf32>, vector<120x84xf32>, vector<1x84xf32> -> vector<1x84xf32>
    %c0_87 = arith.constant 0 : index
    %c0_88 = arith.constant 0 : index
    %120 = vector.load %arg13[%c0_87, %c0_88] : memref<1x84xf32, #tpu.memory_space<vmem>>, vector<1x84xf32>
    %121 = arith.addf %119, %120 : vector<1x84xf32>
    %cst_89 = arith.constant 0.000000e+00 : f32
    %122 = vector.broadcast %cst_89 : f32 to vector<1x84xf32>
    %123 = arith.maximumf %121, %122 : vector<1x84xf32>
    %c0_90 = arith.constant 0 : index
    %c0_91 = arith.constant 0 : index
    %124 = vector.load %arg14[%c0_90, %c0_91] : memref<84x128xf32, #tpu.memory_space<vmem>>, vector<84x128xf32>
    %cst_92 = arith.constant dense<0.000000e+00> : vector<1x128xf32>
    %125 = tpu.matmul %123, %124, %cst_92 {dimension_numbers = #tpu.dot_dimension_numbers<[1], [0], [0], [1], [0, 0, 1, 1], [], []>} : vector<1x84xf32>, vector<84x128xf32>, vector<1x128xf32> -> vector<1x128xf32>
    %c0_93 = arith.constant 0 : index
    %c0_94 = arith.constant 0 : index
    %126 = vector.load %arg15[%c0_93, %c0_94] : memref<1x128xf32, #tpu.memory_space<vmem>>, vector<1x128xf32>
    %127 = arith.addf %125, %126 : vector<1x128xf32>
    %c0_95 = arith.constant 0 : index
    %c0_96 = arith.constant 0 : index
    %c0_97 = arith.constant 0 : index
    %128 = vector.load %arg16[%c0_95, %c0_96, %c0_97] : memref<1x1x128xf32, #tpu.memory_space<vmem>>, vector<1x1x128xf32>
    %129 = vector.shape_cast %128 : vector<1x1x128xf32> to vector<1x128xf32>
    %130 = vector.shape_cast %127 : vector<1x128xf32> to vector<1x1x128xf32>
    tpu.vector_store %arg16[%c0_95, %c0_96, %c0_97], %130 {strides = array<i32>} : memref<1x1x128xf32, #tpu.memory_space<vmem>>, vector<1x1x128xf32>,
    return
  }
  func.func @transform_0(%arg0: i32) -> (i32, i32, i32) {
    %c0_i32 = arith.constant 0 : i32
    %c0_i32_0 = arith.constant 0 : i32
    %c0_i32_1 = arith.constant 0 : i32
    return %arg0, %c0_i32, %c0_i32_0 : i32, i32, i32
  }
  func.func @transform_1(%arg0: i32) -> (i32, i32, i32) {
    %c0_i32 = arith.constant 0 : i32
    %c0_i32_0 = arith.constant 0 : i32
    %c0_i32_1 = arith.constant 0 : i32
    %c0_i32_2 = arith.constant 0 : i32
    return %c0_i32, %c0_i32_0, %c0_i32_1 : i32, i32, i32
  }
  func.func @transform_2(%arg0: i32) -> (i32, i32) {
    %c0_i32 = arith.constant 0 : i32
    %c0_i32_0 = arith.constant 0 : i32
    %c0_i32_1 = arith.constant 0 : i32
    return %c0_i32, %c0_i32_0 : i32, i32
  }
  func.func @transform_3(%arg0: i32) -> (i32, i32) {
    %c0_i32 = arith.constant 0 : i32
    %c0_i32_0 = arith.constant 0 : i32
    %c0_i32_1 = arith.constant 0 : i32
    return %c0_i32, %c0_i32_0 : i32, i32
  }
  func.func @transform_4(%arg0: i32) -> (i32, i32) {
    %c0_i32 = arith.constant 0 : i32
    %c0_i32_0 = arith.constant 0 : i32
    %c0_i32_1 = arith.constant 0 : i32
    return %c0_i32, %c0_i32_0 : i32, i32
  }
  func.func @transform_5(%arg0: i32) -> (i32, i32, i32) {
    %c0_i32 = arith.constant 0 : i32
    %c0_i32_0 = arith.constant 0 : i32
    %c0_i32_1 = arith.constant 0 : i32
    %c0_i32_2 = arith.constant 0 : i32
    return %c0_i32, %c0_i32_0, %c0_i32_1 : i32, i32, i32
  }
  func.func @transform_6(%arg0: i32) -> (i32, i32) {
    %c0_i32 = arith.constant 0 : i32
    %c0_i32_0 = arith.constant 0 : i32
    %c0_i32_1 = arith.constant 0 : i32
    return %c0_i32, %c0_i32_0 : i32, i32
  }
  func.func @transform_7(%arg0: i32) -> (i32, i32) {
    %c0_i32 = arith.constant 0 : i32
    %c0_i32_0 = arith.constant 0 : i32
    %c0_i32_1 = arith.constant 0 : i32
    return %c0_i32, %c0_i32_0 : i32, i32
  }
  func.func @transform_8(%arg0: i32) -> (i32, i32) {
    %c0_i32 = arith.constant 0 : i32
    %c0_i32_0 = arith.constant 0 : i32
    %c0_i32_1 = arith.constant 0 : i32
    return %c0_i32, %c0_i32_0 : i32, i32
  }
  func.func @transform_9(%arg0: i32) -> (i32, i32, i32) {
    %c0_i32 = arith.constant 0 : i32
    %c0_i32_0 = arith.constant 0 : i32
    %c0_i32_1 = arith.constant 0 : i32
    %c0_i32_2 = arith.constant 0 : i32
    return %c0_i32, %c0_i32_0, %c0_i32_1 : i32, i32, i32
  }
  func.func @transform_10(%arg0: i32) -> (i32, i32) {
    %c0_i32 = arith.constant 0 : i32
    %c0_i32_0 = arith.constant 0 : i32
    %c0_i32_1 = arith.constant 0 : i32
    return %c0_i32, %c0_i32_0 : i32, i32
  }
  func.func @transform_11(%arg0: i32) -> (i32, i32) {
    %c0_i32 = arith.constant 0 : i32
    %c0_i32_0 = arith.constant 0 : i32
    %c0_i32_1 = arith.constant 0 : i32
    return %c0_i32, %c0_i32_0 : i32, i32
  }
  func.func @transform_12(%arg0: i32) -> (i32, i32) {
    %c0_i32 = arith.constant 0 : i32
    %c0_i32_0 = arith.constant 0 : i32
    %c0_i32_1 = arith.constant 0 : i32
    return %c0_i32, %c0_i32_0 : i32, i32
  }
  func.func @transform_13(%arg0: i32) -> (i32, i32) {
    %c0_i32 = arith.constant 0 : i32
    %c0_i32_0 = arith.constant 0 : i32
    %c0_i32_1 = arith.constant 0 : i32
    return %c0_i32, %c0_i32_0 : i32, i32
  }
  func.func @transform_14(%arg0: i32) -> (i32, i32) {
    %c0_i32 = arith.constant 0 : i32
    %c0_i32_0 = arith.constant 0 : i32
    %c0_i32_1 = arith.constant 0 : i32
    return %c0_i32, %c0_i32_0 : i32, i32
  }
  func.func @transform_15(%arg0: i32) -> (i32, i32, i32) {
    %c0_i32 = arith.constant 0 : i32
    %c0_i32_0 = arith.constant 0 : i32
    %c0_i32_1 = arith.constant 0 : i32
    return %arg0, %c0_i32, %c0_i32_0 : i32, i32, i32
  }
}

</mosaic_0001>

<bundles_post_ra>
// kernel: net_forward.1
= control target key start
LH: loop header
LB: loop body
LE: loop exit
PB: predicated region body
PF: predicated region fallthrough
CT: control target
= control target key end

     0   :  { %s7020_s0 = inlined_call_operand.vmem [shape: f32[2,40,120], index: 0, kind: input, shape index: {}]   ;;  %s7021_s1 = inlined_call_operand.vmem [shape: f32[5,120,216], index: 1, kind: input, shape index: {}]   ;;  %s7022_s2 = inlined_call_operand.vmem [shape: f32[1,216], index: 2, kind: input, shape index: {}]   ;;  %s7023_s3 = inlined_call_operand.vmem [shape: f32[18,35], index: 3, kind: input, shape index: {}]   ;;  %s7024_s4 = inlined_call_operand.vmem [shape: f32[215,108], index: 4, kind: input, shape index: {}]   ;;  %s7025_s5 = inlined_call_operand.vmem [shape: f32[5,108,224], index: 5, kind: input, shape index: {}]   ;;  %s7026_s6 = inlined_call_operand.vmem [shape: f32[1,224], index: 6, kind: input, shape index: {}]   ;;  %s7027_s7 = inlined_call_operand.vmem [shape: f32[7,13], index: 7, kind: input, shape index: {}]   ;;  %s7028_s8 = inlined_call_operand.vmem [shape: f32[223,112], index: 8, kind: input, shape index: {}]   ;;  %s7029_s9 = inlined_call_operand.vmem [shape: f32[7,112,120], index: 9, kind: input, shape index: {}]   ;;  %s7030_s10 = inlined_call_operand.vmem [shape: f32[1,120], index: 10, kind: input, shape index: {}]   ;;  %s7031_s11 = inlined_call_operand.vmem [shape: f32[120,84], index: 11, kind: input, shape index: {}]   ;;  %s7032_s12 = inlined_call_operand.vmem [shape: f32[1,84], index: 12, kind: input, shape index: {}]   ;;  %s7033_s13 = inlined_call_operand.hbm [shape: f32[84,128], index: 13, kind: input, shape index: {}]   ;;  %s7034_s14 = inlined_call_operand.vmem [shape: f32[1,128], index: 14, kind: input, shape index: {}]   ;;  %s7035_s15 = inlined_call_operand.hbm [shape: f32[2,1,128], index: 15, kind: output, shape index: {}]  }
   0x1   :  { %7044 = sst [smem:[#allocation13_spill]] %s7033_s13 }
   0x2   :  { %20 = vsyncpa [#allocation3], 0 }
   0x3   :  { %21 = vsyncpa [#allocation4], 0 }
   0x4   :  { %23 = vsyncpa [#allocation4 + $0x1], 0  ;;  %s5083_s18 = smov 0   ;;  %s5085_s19 = smov 0  }
   0x5   :  { %s5087_s20 = smov 0   ;;  %s5089_s21 = smov 0  }
   0x6 LB: > { %7045 = sst [smem:[#allocation8_spill]] %s4980_s18  ;;  %s5104_s22 = sadd.s32 4294967295, %s4992_s21   ;;  %s4992_s21 = sphi %s5089_s21, %s7064_s21   ;;  %s4988_s20 = sphi %s5087_s20, %s7066_s20   ;;  %s4984_s19 = sphi %s5085_s19, %s7068_s19   ;;  %s4980_s18 = sphi %s5083_s18, %s7067_s18  }
   0x7   : > { %7046 = sst [smem:[#allocation9_spill]] %s4988_s20  ;;  %s3369_s23 = sadd.s32 4294967294, %s4992_s21  }
   0x8   : > { %s5108_s24 = sadd.s32 1, %s4992_s21   ;;  %s356_s25 = sadd.s32 1, %s4988_s20 }
   0x9   : > { %7047 = sst [smem:[#allocation10_spill]] %s5108_s24  ;;  %s353_s26 = ssub.s32 %s4992_s21, %s5108_s24 }
   0xa   : > { %p366_p0 = scmp.ne.s32.totalorder %s4988_s20, %s4984_s19  ;;  %p354_p1 = scmp.eq.s32.totalorder %s353_s26, 0 }
   0xb   : > { %p367_p2 = scmp.eq.s32.totalorder %s5104_s22, 1  ;;  %p372_p3 = scmp.ne.s32.totalorder %s4984_s19, %s4980_s18 }
   0xc   : > { %p373_p4 = scmp.eq.s32.totalorder %s3369_s23, 1  ;;  %p3370_p7 = scmp.ge.s32.totalorder %s4992_s21, 1 }
   0xd   : > { %s5119_s27 = scalar_select %p354_p1, %s4988_s20, %s356_s25  }
   0xe   : > { %p5121_p5 = por %p367_p2, %p366_p0  ;;  %p5125_p6 = por %p373_p4, %p372_p3 }
   0xf   : > { %7048 = sst [smem:[#allocation11_spill]] %s5119_s27  ;;  %p380_p8 = scmp.lt.s32.totalorder %s4992_s21, 3 }
  0x10   : > { %s7049_s28 = scalar_select %p5121_p5, 1, 0 }
  0x11   : > { %s7050_s29 = scalar_select %p5125_p6, 1, 0 }
  0x12   : > { %p7041_p9 = scmp.eq.s32.totalorder %s5104_s22, 0  ;;  %p5132_p10 = pnand %p3370_p7, %p380_p8 }
  0x13   : > { %7051 = sst [smem:[#allocation12_spill]] %s7050_s29  ;;  %s4994_s16 = smov [#allocation2]  }
  0x14   : > { %s7052_s30 = scalar_select %p5132_p10, 1, 0 }
  0x15   : > { %s428_s17 = sshll.u32 %s4994_s16, 4  ;;  %p4817_p11 = pneg %p5132_p10  ;;  %s429_s17 = int_to_ptr.vmem [resolvable:$true] %s428_s17 }
  0x16   : > { %s7054_s13 = sld [smem:[#allocation13_spill]] }
  0x17   : > { %p5140_p12 = pnand %p7041_p9, %p4817_p11 }
  0x19   : > { %p4900_p0 = pneg %p5140_p12 }
  0x1c   : > { %s4898_s27 = scalar_lea.hbm %s7054_s13, 1408 }
  0x1d   : > { %p4899_p13 = scmp.ne.s32.totalorder %s7054_s13, %s4898_s27  ;;  %p4905_p3 = scmp.lt.u32.totalorder %s4898_s27, %s7054_s13 }
  0x1f   : > { %p4901_p1 = pnand %p4900_p0, %p4899_p13 }
  0x21   : > { %p4902_p2 = pneg %p4901_p1 }
  0x23   : > { %p4907_p4 = pnand %p4905_p3, %p4902_p2 }
  0x25   : > { %4910 = shalt.err (!%p4907_p4)
}
  0x26   : > { %s4911_s18 = scalar_lea.vmem %s429_s17, 1408  ;;  %p4919_p9 = scmp.lt.s32.totalorder %s429_s17, %s429_s17 }
  0x27   : > { %p4912_p7 = scmp.ne.s32.totalorder %s429_s17, %s4911_s18  ;;  %p4920_p6 = scmp.lt.s32.totalorder %s4911_s18, %s4911_s18 }
  0x29   : > { %p4914_p8 = pnand %p4912_p7, %p4900_p0  ;;  %p4921_p5 = por %p4920_p6, %p4919_p9 }
  0x2b   : > { %p4915_p11 = pneg %p4914_p8 }
  0x2d   : > { %p4922_p10 = pnand %p4921_p5, %p4915_p11 }
  0x2f   : > { %4925 = shalt.err (!%p4922_p10)
}
  0x30   : > { %s4995_s20 = smov 128   ;;  %s4996_s24 = smov 8  }
  0x31   : > { %4820 = dma.hbm_to_vmem [thread:$0]  (!%p5140_p12), %s7054_s13, 1408, %s429_s17, [#allocation3], %s4995_s20, %s4995_s20, %s4996_s24  }
  0x32   : > { %p7055_p13 = scmp.ne.s32.totalorder %s7052_s30, 0 }
  0x33   : > { %p7056_p1 = scmp.eq.s32.totalorder (!%p7055_p13), %s5104_s22, 0 }
  0x34   : > { %455 = sbr.rel (%p7055_p13) target bundleno = 2730 (0xaaa), region = 80 }
  0x3b   : > { %4971 = dma.done.wait (%p7056_p1), [#allocation3], 1408   ;;  %p7057_p0 = pmov %p7056_p1 }
  0x3c   : > { %v4997_v0 = vmov 0.0   ;;  %p502_p5 = scmp.lt.s32.totalorder %s5104_s22, 1  ;;  %v3377_v1 = vld [vmem:[%s7021_s1 + $0xf8] sm:$0xff]  ;;  %v3379_v2 = vld [vmem:[%s7021_s1 + $0x108] sm:$0xff]  ;;  %v3376_v3 = vld [vmem:[%s7021_s1 + $0xf0] sm:$0xff]  ;;  %vm986_vm0 = vcmask 1044480  }
  0x3d   : > { %4973 = vsyncadd (%p7057_p0), [#allocation3], 4294965888  ;;  %663 = vmatprep.mubr.f32.mxu0 %v4997_v0  ;;  %1763 = vmatprep.mubr.f32.mxu1 %v4997_v0  ;;  %v4172_v4 = vpack.c.bf16 %v3379_v2, %v3377_v1  ;;  %v3378_v5 = vld [vmem:[%s7021_s1 + $0x100] sm:$0xff]  ;;  %v3381_v6 = vld [vmem:[%s7021_s1 + $0x118] sm:$0xff]  ;;  %vm1142_vm1 = vcmask 1043456   ;;  %vm578_vm2 = vcmask 1046528  }
  0x3e   : > { %s503_s18 = scalar_select %p502_p5, %s5104_s22, 1  ;;  %v3383_v7 = vld [vmem:[%s7021_s1 + $0x128] sm:$0xff]  ;;  %v4174_v8 = vpack.c.bf16 %v3378_v5, %v3376_v3  ;;  %v3380_v10 = vld [vmem:[%s7021_s1 + $0x110] sm:$0xff]  ;;  %v3382_v11 = vld [vmem:[%s7021_s1 + $0x120] sm:$0xff]  ;;  %vm588_vm3 = vcmask 982016   ;;  %vm830_vm4 = vcmask 1045504  }
  0x3f   : > { %v4176_v9 = vpack.c.bf16 %v3383_v7, %v3381_v6  ;;  %v3385_v12 = vld [vmem:[%s7021_s1 + $0x138] sm:$0xff]  ;;  %4173 = vmatprep.subr.bf16.mxu0 %v4172_v4  ;;  %v3387_v13 = vld [vmem:[%s7021_s1 + $0x148] sm:$0xff]  ;;  %v4178_v14 = vpack.c.bf16 %v3382_v11, %v3380_v10  ;;  %v3384_v16 = vld [vmem:[%s7021_s1 + $0x130] sm:$0xff]  ;;  %s4998_s26 = smov 127   ;;  %vm1329_vm5 = vcmask 1039360   ;;  %vm1416_vm6 = vcmask 1042432  }
  0x40   : > { %s4810_s13 = smul.u32 40, %s503_s18  ;;  %4175 = vmatpush1.bf16.msra.mxu0 %v4174_v8  ;;  %v4180_v15 = vpack.c.bf16 %v3387_v13, %v3385_v12  ;;  %v3386_v17 = vld [vmem:[%s7021_s1 + $0x140] sm:$0xff]  ;;  %v3389_v18 = vld [vmem:[%s7021_s1 + $0x158] sm:$0xff]  ;;  %v3391_v19 = vld [vmem:[%s7021_s1 + $0x168] sm:$0xff]  ;;  %vm1406_vm7 = vcmask 285696   ;;  %vm1533_vm8 = vcmask 711680  }
  0x41   : > { %4177 = vmatprep.subr.bf16.mxu0 %v4176_v9  ;;  %v4182_v20 = vpack.c.bf16 %v3386_v17, %v3384_v16  ;;  %v4184_v21 = vpack.c.bf16 %v3391_v19, %v3389_v18  ;;  %v3388_v22 = vld [vmem:[%s7021_s1 + $0x150] sm:$0xff]  ;;  %v3390_v23 = vld [vmem:[%s7021_s1 + $0x160] sm:$0xff]  ;;  %v3393_v24 = vld [vmem:[%s7021_s1 + $0x178] sm:$0xff]  ;;  %vm5000_vm9 = vmmov 1   ;;  %vm1688_vm11 = vcmask 883712   ;;  %s3761_s17 = sshll.u32 %s5104_s22, 4 }
  0x42   : > { %s5215_s25 = scalar_lea.vmem %s7020_s0, %s4810_s13  ;;  %v3395_v25 = vld [vmem:[%s7021_s1 + $0x188] sm:$0xff]  ;;  %v4186_v29 = vpack.c.bf16 %v3390_v23, %v3388_v22  ;;  %v3392_v32 = vld [vmem:[%s7021_s1 + $0x170] sm:$0xff]  ;;  %v3394_v33 = vld [vmem:[%s7021_s1 + $0x180] sm:$0xff]  ;;  %vm2298_vm13 = vcmask 105472   ;;  %vm2407_vm15 = vcmask 777216   ;;  %s6978_s20 = scalar_lea.hbm %s7035_s15, %s3761_s17 }
  0x43   : > { %v5230_v26 = vld [vmem:[%s5215_s25] sm:$0xff]  ;;  %v5233_v27 = vld [vmem:[%s5215_s25 + $0x8] sm:$0xff]  ;;  %v4188_v31 = vpack.c.bf16 %v3395_v25, %v3393_v24  ;;  %v3397_v34 = vld [vmem:[%s7021_s1 + $0x198] sm:$0xff]  ;;  %v4190_v37 = vpack.c.bf16 %v3394_v33, %v3392_v32  ;;  %p7060_p9 = scmp.ne.s32.totalorder %s7049_s28, 0  ;;  %s5002_s22 = smov [#allocation5]  }
  0x44   : > { %4179 = vmatpush1.bf16.msra.mxu0 %v4178_v14  ;;  %v987_v28 = vrot.slane %v5230_v26, 3  ;;  %v988_v30 = vrot.slane %v5233_v27, 3  ;;  %v3399_v35 = vld [vmem:[%s7021_s1 + $0x1a8] sm:$0xff]  ;;  %v5253_v38 = vld [vmem:[%s5215_s25 + $0x10] sm:$0xff]  ;;  %v3398_v41 = vld [vmem:[%s7021_s1 + $0x1a0] sm:$0xff]  ;;  %v1143_v55 = vrot.slane %v5230_v26, 4 }
  0x45   : > { %4181 = vmatprep.subr.bf16.mxu0 %v4180_v15  ;;  %v4192_v39 = vpack.c.bf16 %v3399_v35, %v3397_v34  ;;  %v3396_v40 = vld [vmem:[%s7021_s1 + $0x190] sm:$0xff]  ;;  %v5262_v42 = vld [vmem:[%s5215_s25 + $0x18] sm:$0xff]  ;;  %v990_v43 = vrot.slane %v5253_v38, 3  ;;  %v3403_v45 = vld [vmem:[%s7021_s1 + $0x1c8] sm:$0xff]  ;;  %v1144_v56 = vrot.slane %v5233_v27, 4  ;;  %v579_v63 = vrot.slane %v5230_v26, 1 }
  0x46   : > { %v5250_v36 = vsel %vm986_vm0, %v987_v28, %v988_v30  ;;  %v3401_v44 = vld [vmem:[%s7021_s1 + $0x1b8] sm:$0xff]  ;;  %v992_v46 = vrot.slane %v5262_v42, 3  ;;  %v4194_v48 = vpack.c.bf16 %v3398_v41, %v3396_v40  ;;  %v3400_v50 = vld [vmem:[%s7021_s1 + $0x1b0] sm:$0xff]  ;;  %v3402_v51 = vld [vmem:[%s7021_s1 + $0x1c0] sm:$0xff]  ;;  %v580_v1 = vrot.slane %v5233_v27, 1  ;;  %s4930_s27 = sshll.u32 %s5002_s22, 4  ;;  %s4931_s27 = int_to_ptr.vmem [resolvable:$false] %s4930_s27 }
  0x47   : > { %v5273_v47 = vsel %vm986_vm0, %v988_v30, %v990_v43  ;;  %v4196_v49 = vpack.c.bf16 %v3403_v45, %v3401_v44  ;;  %v5282_v52 = vld [vmem:[%s5215_s25 + $0x20] sm:$0xff]  ;;  %v4198_v57 = vpack.c.bf16 %v3402_v51, %v3400_v50  ;;  %v5296_v59 = vsel %vm1142_vm1, %v1143_v55, %v1144_v56  ;;  %v3405_v60 = vld [vmem:[%s7021_s1 + $0x1d8] sm:$0xff]  ;;  %v513_v61 = vld [vmem:[%s7021_s1 + $0x8] sm:$0xff]  ;;  %s4932_s29 = scalar_lea.vmem %s4931_s27, 32 }
  0x48   : > { %4183 = vmatpush1.bf16.msra.mxu0 %v4182_v20  ;;  %v5285_v53 = vsel %vm986_vm0, %v990_v43, %v992_v46  ;;  %v994_v54 = vrot.slane %v5282_v52, 3  ;;  %v515_v62 = vld [vmem:[%s7021_s1 + $0x18] sm:$0xff]  ;;  %v1146_v2 = vrot.slane %v5253_v38, 4  ;;  %v512_v3 = vld [vmem:[%s7021_s1] sm:$0xff]  ;;  %v514_v4 = vld [vmem:[%s7021_s1 + $0x10] sm:$0xff]  ;;  %v581_v10 = vsel %vm578_vm2, %v579_v63, %v580_v1 }
  0x49   : > { %4185 = vmatprep.subr.bf16.mxu0 %v4184_v21  ;;  %v517_v5 = vld [vmem:[%s7021_s1 + $0x28] sm:$0xff]  ;;  %v519_v6 = vld [vmem:[%s7021_s1 + $0x38] sm:$0xff]  ;;  %v3404_v8 = vld [vmem:[%s7021_s1 + $0x1d0] sm:$0xff]  ;;  %v4200_v9 = vpack.c.bf16 %v515_v62, %v513_v61  ;;  %v4202_v11 = vpack.c.bf16 %v514_v4, %v512_v3  ;;  %v582_v12 = vrot.slane %v5253_v38, 1  ;;  %v1148_v13 = vrot.slane %v5262_v42, 4 }
  0x4a   : > { %v5293_v58 = vsel %vm986_vm0, %v992_v46, %v994_v54  ;;  %v5323_v7 = vsel %vm1142_vm1, %v1144_v56, %v1146_v2  ;;  %v4204_v14 = vpack.c.bf16 %v519_v6, %v517_v5  ;;  %v516_v15 = vld [vmem:[%s7021_s1 + $0x20] sm:$0xff]  ;;  %v518_v16 = vld [vmem:[%s7021_s1 + $0x30] sm:$0xff]  ;;  %v521_v17 = vld [vmem:[%s7021_s1 + $0x48] sm:$0xff]  ;;  %v584_v22 = vrot.slane %v5262_v42, 1 }
  0x4b   : > { %v523_v18 = vld [vmem:[%s7021_s1 + $0x58] sm:$0xff]  ;;  %v5344_v19 = vsel %vm1142_vm1, %v1146_v2, %v1148_v13  ;;  %v4206_v20 = vpack.c.bf16 %v518_v16, %v516_v15  ;;  %v583_v21 = vsel %vm578_vm2, %v580_v1, %v582_v12  ;;  %v1150_v23 = vrot.slane %v5282_v52, 4  ;;  %v520_v25 = vld [vmem:[%s7021_s1 + $0x40] sm:$0xff]  ;;  %v522_v28 = vld [vmem:[%s7021_s1 + $0x50] sm:$0xff] }
  0x4c   : > { %4187 = vmatpush1.bf16.msra.mxu0 %v4186_v29  ;;  %v4208_v24 = vpack.c.bf16 %v523_v18, %v521_v17  ;;  %v525_v29 = vld [vmem:[%s7021_s1 + $0x68] sm:$0xff]  ;;  %v527_v30 = vld [vmem:[%s7021_s1 + $0x78] sm:$0xff]  ;;  %v4210_v32 = vpack.c.bf16 %v522_v28, %v520_v25  ;;  %v585_v33 = vsel %vm578_vm2, %v582_v12, %v584_v22  ;;  %v586_v34 = vrot.slane %v5282_v52, 1  ;;  %v528_v46 = vld [vmem:[%s7021_s1 + $0x80] sm:$0xff] }
  0x4d   : > { %4189 = vmatprep.subr.bf16.mxu0 %v4188_v31  ;;  %v5366_v31 = vsel %vm1142_vm1, %v1148_v13, %v1150_v23  ;;  %v4212_v35 = vpack.c.bf16 %v527_v30, %v525_v29  ;;  %v529_v40 = vld [vmem:[%s7021_s1 + $0x88] sm:$0xff]  ;;  %v531_v41 = vld [vmem:[%s7021_s1 + $0x98] sm:$0xff]  ;;  %v532_v56 = vld [vmem:[%s7021_s1 + $0xa0] sm:$0xff] }
  0x4e   : > { %v587_v44 = vsel %vm578_vm2, %v584_v22, %v586_v34  ;;  %v4216_v45 = vpack.c.bf16 %v531_v41, %v529_v40  ;;  %v535_v50 = vld [vmem:[%s7021_s1 + $0xb8] sm:$0xff]  ;;  %v536_v1 = vld [vmem:[%s7021_s1 + $0xc0] sm:$0xff]  ;;  %v538_v2 = vld [vmem:[%s7021_s1 + $0xd0] sm:$0xff] }
  0x4f   : > { %v539_v61 = vld [vmem:[%s7021_s1 + $0xd8] sm:$0xff]  ;;  %v4226_v3 = vpack.c.bf16 %v538_v2, %v536_v1  ;;  %v541_v4 = vld [vmem:[%s7021_s1 + $0xe8] sm:$0xff]  ;;  %v540_v12 = vld [vmem:[%s7021_s1 + $0xe0] sm:$0xff] }
  0x50   : > { %4191 = vmatpush1.bf16.msra.mxu0 %v4190_v37  ;;  %v524_v37 = vld [vmem:[%s7021_s1 + $0x60] sm:$0xff]  ;;  %v3417_v5 = vld [vmem:[%s7021_s1 + $0x1e8] sm:$0xff]  ;;  %v3419_v6 = vld [vmem:[%s7021_s1 + $0x1f8] sm:$0xff] }
  0x51   : > { %4193 = vmatprep.subr.bf16.mxu0 %v4192_v39  ;;  %v526_v39 = vld [vmem:[%s7021_s1 + $0x70] sm:$0xff]  ;;  %v4228_v13 = vpack.c.bf16 %v3419_v6, %v3417_v5  ;;  %v3420_v16 = vld [vmem:[%s7021_s1 + $0x200] sm:$0xff]  ;;  %v3425_v18 = vld [vmem:[%s7021_s1 + $0x228] sm:$0xff] }
  0x52   : > { %v4214_v43 = vpack.c.bf16 %v526_v39, %v524_v37  ;;  %v3422_v17 = vld [vmem:[%s7021_s1 + $0x210] sm:$0xff]  ;;  %v3429_v28 = vld [vmem:[%s7021_s1 + $0x248] sm:$0xff]  ;;  %v3431_v29 = vld [vmem:[%s7021_s1 + $0x258] sm:$0xff] }
  0x53   : > { %v3426_v25 = vld [vmem:[%s7021_s1 + $0x230] sm:$0xff]  ;;  %v3435_v37 = vld [vmem:[%s7021_s1 + $0x278] sm:$0xff]  ;;  %v3432_v41 = vld [vmem:[%s7021_s1 + $0x260] sm:$0xff] }
  0x54   : > { %4195 = vmatpush1.bf16.msra.mxu0 %v4194_v48  ;;  %v530_v48 = vld [vmem:[%s7021_s1 + $0x90] sm:$0xff]  ;;  %v3452_v1 = vld [vmem:[%s7021_s1 + $0x2d8] sm:$0xff]  ;;  %v3454_v2 = vld [vmem:[%s7021_s1 + $0x2e8] sm:$0xff] }
  0x55   : > { %4197 = vmatprep.subr.bf16.mxu0 %v4196_v49  ;;  %v533_v49 = vld [vmem:[%s7021_s1 + $0xa8] sm:$0xff]  ;;  %v4218_v51 = vpack.c.bf16 %v530_v48, %v528_v46  ;;  %v3451_v5 = vld [vmem:[%s7021_s1 + $0x2d0] sm:$0xff]  ;;  %v3453_v6 = vld [vmem:[%s7021_s1 + $0x2e0] sm:$0xff] }
  0x56   : > { %v4220_v55 = vpack.c.bf16 %v535_v50, %v533_v49  ;;  %v3436_v49 = vld [vmem:[%s7021_s1 + $0x280] sm:$0xff]  ;;  %v3438_v50 = vld [vmem:[%s7021_s1 + $0x290] sm:$0xff]  ;;  %vm5990_vm10 = vmpackc.low %vm1142_vm1, %vm5000_vm9 }
  0x57   : > { %vm4510_vm12 = vmpackc.low %vm986_vm0, %vm5000_vm9 }
  0x58   : > { %4199 = vmatpush1.bf16.msra.mxu0 %v4198_v57  ;;  %v534_v57 = vld [vmem:[%s7021_s1 + $0xb0] sm:$0xff]  ;;  %vm4556_vm14 = vmpackc.low %vm578_vm2, %vm5000_vm9 }
  0x59   : > { %627 = vmatprep.subr.mxu0 %v3405_v60  ;;  %v537_v60 = vld [vmem:[%s7021_s1 + $0xc8] sm:$0xff]  ;;  %v4222_v62 = vpack.c.bf16 %v534_v57, %v532_v56  ;;  %v4250_v56 = vpack.c.bf16 %v3438_v50, %v3436_v49  ;;  %v3471_v50 = vld [vmem:[%s7021_s1 + $0x370] sm:$0xff] }
  0x5a   : > { %v4224_v63 = vpack.c.bf16 %v539_v61, %v537_v60  ;;  %v3440_v60 = vld [vmem:[%s7021_s1 + $0x2a0] sm:$0xff]  ;;  %v3442_v61 = vld [vmem:[%s7021_s1 + $0x2b0] sm:$0xff] }
  0x5c   : > { %628 = vmatpush1.msra.mxu0 %v3404_v8  ;;  %v3416_v8 = vld [vmem:[%s7021_s1 + $0x1e0] sm:$0xff] }
  0x5d   : > { %4201 = vmatprep.subr.bf16.mxu0 %v4200_v9  ;;  %3406 = vmatmul.mubr.msk.f32.vlgmr.msra.gmra.mrb[0].mxu0 %vm588_vm3, %v581_v10  ;;  %v3418_v9 = vld [vmem:[%s7021_s1 + $0x1f0] sm:$0xff]  ;;  %v3421_v10 = vld [vmem:[%s7021_s1 + $0x208] sm:$0xff] }
  0x5e   : > { %4203 = vmatpush1.bf16.msra.mxu0 %v4202_v11  ;;  %669 = vmatprep.mubr.f32.mxu0 %v4997_v0  ;;  %v3423_v11 = vld [vmem:[%s7021_s1 + $0x218] sm:$0xff] }
  0x5f   : > { %4205 = vmatprep.subr.bf16.mxu0 %v4204_v14  ;;  %v4230_v14 = vpack.c.bf16 %v3418_v9, %v3416_v8  ;;  %v4232_v15 = vpack.c.bf16 %v3423_v11, %v3421_v10  ;;  %v3456_v8 = vld [vmem:[%s7021_s1 + $0x2f8] sm:$0xff]  ;;  %v4256_v9 = vpack.c.bf16 %v3454_v2, %v3452_v1  ;;  %v4258_v11 = vpack.c.bf16 %v3453_v6, %v3451_v5  ;;  %v3487_v2 = vld [vmem:[%s7021_s1 + $0x3c8] sm:$0xff]  ;;  %v3488_v5 = vld [vmem:[%s7021_s1 + $0x3d0] sm:$0xff] }
  0x60   : > { %v3480_v1 = vld [vmem:[%s7021_s1 + $0x3b8] sm:$0xff]  ;;  %v3491_v6 = vld [vmem:[%s7021_s1 + $0x3e8] sm:$0xff] }
  0x61   : > { %3407 = vmatmul.mubr.msk.f32.gmra.mrb[2].mxu0 %vm588_vm3, %v583_v21  ;;  %v4234_v21 = vpack.c.bf16 %v3422_v17, %v3420_v16  ;;  %v3460_v16 = vld [vmem:[%s7021_s1 + $0x318] sm:$0xff]  ;;  %v3462_v17 = vld [vmem:[%s7021_s1 + $0x328] sm:$0xff] }
  0x62   : > { %4207 = vmatpush1.bf16.msra.mxu0 %v4206_v20  ;;  %675 = vmatprep.mubr.f32.mxu0 %v4997_v0  ;;  %v3427_v20 = vld [vmem:[%s7021_s1 + $0x238] sm:$0xff] }
  0x63   : > { %4209 = vmatprep.subr.bf16.mxu0 %v4208_v24  ;;  %v4236_v22 = vpack.c.bf16 %v3427_v20, %v3425_v18  ;;  %v3424_v24 = vld [vmem:[%s7021_s1 + $0x220] sm:$0xff]  ;;  %v836_v20 = vrot.slane %v5262_v42, 2 }
  0x64   : > { %v4238_v30 = vpack.c.bf16 %v3426_v25, %v3424_v24  ;;  %v3461_v24 = vld [vmem:[%s7021_s1 + $0x320] sm:$0xff]  ;;  %v3464_v25 = vld [vmem:[%s7021_s1 + $0x338] sm:$0xff] }
  0x65   : > { %3408 = vmatmul.mubr.msk.f32.gmra.mrb[4].mxu0 %vm588_vm3, %v585_v33  ;;  %v3428_v33 = vld [vmem:[%s7021_s1 + $0x240] sm:$0xff] }
  0x66   : > { %4211 = vmatpush1.bf16.msra.mxu0 %v4210_v32  ;;  %681 = vmatprep.mubr.f32.mxu0 %v4997_v0  ;;  %v4240_v32 = vpack.c.bf16 %v3431_v29, %v3429_v28  ;;  %v3466_v28 = vld [vmem:[%s7021_s1 + $0x348] sm:$0xff] }
  0x67   : > { %4213 = vmatprep.subr.bf16.mxu0 %v4212_v35  ;;  %v3433_v35 = vld [vmem:[%s7021_s1 + $0x268] sm:$0xff] }
  0x68   : > { %v4244_v40 = vpack.c.bf16 %v3435_v37, %v3433_v35  ;;  %v3468_v35 = vld [vmem:[%s7021_s1 + $0x358] sm:$0xff]  ;;  %v3470_v37 = vld [vmem:[%s7021_s1 + $0x368] sm:$0xff] }
  0x69   : > { %3409 = vmatmul.mubr.msk.f32.gmra.mrb[6].mxu0 %vm588_vm3, %v587_v44  ;;  %v3437_v44 = vld [vmem:[%s7021_s1 + $0x288] sm:$0xff] }
  0x6a   : > { %4215 = vmatpush1.bf16.msra.mxu0 %v4214_v43  ;;  %687 = vmatprep.mubr.f32.mxu0 %v4997_v0  ;;  %v3434_v43 = vld [vmem:[%s7021_s1 + $0x270] sm:$0xff] }
  0x6b   : > { %4217 = vmatprep.subr.bf16.mxu0 %v4216_v45  ;;  %v3439_v45 = vld [vmem:[%s7021_s1 + $0x298] sm:$0xff]  ;;  %v4246_v46 = vpack.c.bf16 %v3434_v43, %v3432_v41  ;;  %v4272_v41 = vpack.c.bf16 %v3470_v37, %v3468_v35  ;;  %v3467_v43 = vld [vmem:[%s7021_s1 + $0x350] sm:$0xff]  ;;  %v3506_v35 = vld [vmem:[%s7021_s1 + $0x460] sm:$0xff] }
  0x6c   : > { %v4248_v48 = vpack.c.bf16 %v3439_v45, %v3437_v44  ;;  %v3469_v44 = vld [vmem:[%s7021_s1 + $0x360] sm:$0xff]  ;;  %v3472_v45 = vld [vmem:[%s7021_s1 + $0x378] sm:$0xff]  ;;  %v3508_v37 = vld [vmem:[%s7021_s1 + $0x470] sm:$0xff] }
  0x6d   : > { %3410 = vmatmul.mubr.msk.f32.gmra.mrb[8].mxu0 %vm588_vm3, %v586_v34  ;;  %v3430_v34 = vld [vmem:[%s7021_s1 + $0x250] sm:$0xff] }
  0x6e   : > { %4219 = vmatpush1.bf16.msra.mxu0 %v4218_v51  ;;  %768 = vmatprep.mubr.f32.mxu0 %v4997_v0  ;;  %v4242_v39 = vpack.c.bf16 %v3430_v34, %v3428_v33  ;;  %v3441_v51 = vld [vmem:[%s7021_s1 + $0x2a8] sm:$0xff]  ;;  %v3463_v33 = vld [vmem:[%s7021_s1 + $0x330] sm:$0xff]  ;;  %v3465_v34 = vld [vmem:[%s7021_s1 + $0x340] sm:$0xff] }
  0x6f   : > { %4221 = vmatprep.subr.bf16.mxu0 %v4220_v55  ;;  %v3443_v55 = vld [vmem:[%s7021_s1 + $0x2b8] sm:$0xff] }
  0x70   : > { %v4252_v57 = vpack.c.bf16 %v3443_v55, %v3441_v51  ;;  %v3473_v51 = vld [vmem:[%s7021_s1 + $0x380] sm:$0xff]  ;;  %v3476_v55 = vld [vmem:[%s7021_s1 + $0x398] sm:$0xff] }
  0x72   : > { %4223 = vmatpush1.bf16.msra.mxu0 %v4222_v62  ;;  %v4254_v62 = vpack.c.bf16 %v3442_v61, %v3440_v60  ;;  %v3475_v61 = vld [vmem:[%s7021_s1 + $0x390] sm:$0xff] }
  0x73   : > { %4225 = vmatprep.subr.bf16.mxu0 %v4224_v63  ;;  %v3445_v63 = vld [vmem:[%s7021_s1 + $0x2c8] sm:$0xff] }
  0x76   : > { %4227 = vmatpush1.bf16.msra.mxu0 %v4226_v3  ;;  %v831_v3 = vrot.slane %v5230_v26, 2 }
  0x77   : > { %732 = vmatprep.subr.mxu0 %v541_v4  ;;  %v832_v4 = vrot.slane %v5233_v27, 2 }
  0x79   : > { %v833_v10 = vsel %vm830_vm4, %v831_v3, %v832_v4  ;;  %v3489_v3 = vld [vmem:[%s7021_s1 + $0x3d8] sm:$0xff] }
  0x7a   : > { %733 = vmatpush1.msra.mxu0 %v540_v12  ;;  %v834_v12 = vrot.slane %v5253_v38, 2 }
  0x7b   : > { %4229 = vmatprep.subr.bf16.mxu0 %v4228_v13  ;;  %3411 = vmatmul.mubr.msk.f32.vlgmr.msra.gmra.mrb[0].mxu0 %vm588_vm3, %v5230_v26  ;;  %v3458_v26 = vld [vmem:[%s7021_s1 + $0x308] sm:$0xff] }
  0x7c   : > { %4231 = vmatpush1.bf16.msra.mxu0 %v4230_v14  ;;  %774 = vmatprep.mubr.f32.mxu0 %v4997_v0  ;;  %v4260_v13 = vpack.c.bf16 %v3458_v26, %v3456_v8  ;;  %v3455_v14 = vld [vmem:[%s7021_s1 + $0x2f0] sm:$0xff]  ;;  %v835_v18 = vsel %vm830_vm4, %v832_v4, %v834_v12  ;;  %v837_v29 = vsel %vm830_vm4, %v834_v12, %v836_v20  ;;  %v3486_v4 = vld [vmem:[%s7021_s1 + $0x3c0] sm:$0xff]  ;;  %v3493_v8 = vld [vmem:[%s7021_s1 + $0x3f8] sm:$0xff] }
  0x7d   : > { %4233 = vmatprep.subr.bf16.mxu0 %v4232_v15  ;;  %v3457_v15 = vld [vmem:[%s7021_s1 + $0x300] sm:$0xff]  ;;  %v3479_v26 = vld [vmem:[%s7021_s1 + $0x3b0] sm:$0xff] }
  0x7e   : > { %v3492_v12 = vld [vmem:[%s7021_s1 + $0x3f0] sm:$0xff] }
  0x7f   : > { %3412 = vmatmul.mubr.msk.f32.gmra.mrb[2].mxu0 %vm588_vm3, %v5233_v27  ;;  %v3444_v27 = vld [vmem:[%s7021_s1 + $0x2c0] sm:$0xff] }
  0x80   : > { %4235 = vmatpush1.bf16.msra.mxu0 %v4234_v21  ;;  %780 = vmatprep.mubr.f32.mxu0 %v4997_v0  ;;  %v4264_v21 = vpack.c.bf16 %v3462_v17, %v3460_v16  ;;  %v3494_v17 = vld [vmem:[%s7021_s1 + $0x400] sm:$0xff] }
  0x81   : > { %4237 = vmatprep.subr.bf16.mxu0 %v4236_v22  ;;  %v3459_v22 = vld [vmem:[%s7021_s1 + $0x310] sm:$0xff] }
  0x83   : > { %3413 = vmatmul.mubr.msk.f32.gmra.mrb[4].mxu0 %vm588_vm3, %v5253_v38  ;;  %v4262_v38 = vpack.c.bf16 %v3457_v15, %v3455_v14  ;;  %v3497_v14 = vld [vmem:[%s7021_s1 + $0x418] sm:$0xff] }
  0x84   : > { %4239 = vmatpush1.bf16.msra.mxu0 %v4238_v30  ;;  %786 = vmatprep.mubr.f32.mxu0 %v4997_v0  ;;  %v838_v30 = vrot.slane %v5282_v52, 2 }
  0x85   : > { %4241 = vmatprep.subr.bf16.mxu0 %v4240_v32  ;;  %v4268_v32 = vpack.c.bf16 %v3466_v28, %v3464_v25  ;;  %v3503_v25 = vld [vmem:[%s7021_s1 + $0x448] sm:$0xff] }
  0x87   : > { %3414 = vmatmul.mubr.msk.f32.gmra.mrb[6].mxu0 %vm588_vm3, %v5262_v42  ;;  %v4266_v42 = vpack.c.bf16 %v3461_v24, %v3459_v22  ;;  %v3498_v22 = vld [vmem:[%s7021_s1 + $0x420] sm:$0xff]  ;;  %v3500_v24 = vld [vmem:[%s7021_s1 + $0x430] sm:$0xff] }
  0x88   : > { %4243 = vmatpush1.bf16.msra.mxu0 %v4242_v39  ;;  %792 = vmatprep.mubr.f32.mxu0 %v4997_v0  ;;  %v4270_v39 = vpack.c.bf16 %v3465_v34, %v3463_v33  ;;  %v4298_v28 = vpack.c.bf16 %v3500_v24, %v3498_v22 }
  0x89   : > { %4245 = vmatprep.subr.bf16.mxu0 %v4244_v40  ;;  %v839_v40 = vsel %vm830_vm4, %v836_v20, %v838_v30 }
  0x8b   : > { %3415 = vmatmul.mubr.msk.f32.gmra.mrb[8].mxu0 %vm588_vm3, %v5282_v52 }
  0x8c   : > { %4247 = vmatpush1.bf16.msra.mxu0 %v4246_v46  ;;  %914 = vmatprep.mubr.f32.mxu0 %v4997_v0  ;;  %v3474_v46 = vld [vmem:[%s7021_s1 + $0x388] sm:$0xff] }
  0x8d   : > { %4249 = vmatprep.subr.bf16.mxu0 %v4248_v48  ;;  %v4274_v48 = vpack.c.bf16 %v3469_v44, %v3467_v43  ;;  %v4276_v49 = vpack.c.bf16 %v3474_v46, %v3472_v45  ;;  %v3510_v43 = vld [vmem:[%s7021_s1 + $0x480] sm:$0xff]  ;;  %v3512_v44 = vld [vmem:[%s7021_s1 + $0x490] sm:$0xff] }
  0x8e   : > { %v4310_v45 = vpack.c.bf16 %v3512_v44, %v3510_v43  ;;  %v3514_v46 = vld [vmem:[%s7021_s1 + $0x4a0] sm:$0xff] }
  0x90   : > { %4251 = vmatpush1.bf16.msra.mxu0 %v4250_v56  ;;  %v3478_v56 = vld [vmem:[%s7021_s1 + $0x3a8] sm:$0xff] }
  0x91   : > { %4253 = vmatprep.subr.bf16.mxu0 %v4252_v57  ;;  %v4278_v57 = vpack.c.bf16 %v3473_v51, %v3471_v50  ;;  %v4280_v60 = vpack.c.bf16 %v3478_v56, %v3476_v55 }
  0x94   : > { %4255 = vmatpush1.bf16.msra.mxu0 %v4254_v62  ;;  %v3477_v62 = vld [vmem:[%s7021_s1 + $0x3a0] sm:$0xff] }
  0x95   : > { %878 = vmatprep.subr.mxu0 %v3445_v63  ;;  %v4282_v63 = vpack.c.bf16 %v3477_v62, %v3475_v61 }
  0x98   : > { %879 = vmatpush1.msra.mxu0 %v3444_v27  ;;  %v4284_v27 = vpack.c.bf16 %v3489_v3, %v3487_v2 }
  0x99   : > { %4257 = vmatprep.subr.bf16.mxu0 %v4256_v9  ;;  %3446 = vmatmul.mubr.msk.f32.vlgmr.msra.gmra.mrb[0].mxu0 %vm588_vm3, %v833_v10  ;;  %v4286_v9 = vpack.c.bf16 %v3488_v5, %v3486_v4  ;;  %v4288_v10 = vpack.c.bf16 %v3493_v8, %v3491_v6 }
  0x9a   : > { %4259 = vmatpush1.bf16.msra.mxu0 %v4258_v11  ;;  %920 = vmatprep.mubr.f32.mxu0 %v4997_v0  ;;  %v3490_v11 = vld [vmem:[%s7021_s1 + $0x3e0] sm:$0xff] }
  0x9b   : > { %4261 = vmatprep.subr.bf16.mxu0 %v4260_v13  ;;  %v3495_v13 = vld [vmem:[%s7021_s1 + $0x408] sm:$0xff]  ;;  %v4290_v15 = vpack.c.bf16 %v3492_v12, %v3490_v11 }
  0x9c   : > { %v4292_v16 = vpack.c.bf16 %v3497_v14, %v3495_v13 }
  0x9d   : > { %3447 = vmatmul.mubr.msk.f32.gmra.mrb[2].mxu0 %vm588_vm3, %v835_v18  ;;  %v3499_v18 = vld [vmem:[%s7021_s1 + $0x428] sm:$0xff] }
  0x9e   : > { %4263 = vmatpush1.bf16.msra.mxu0 %v4262_v38  ;;  %926 = vmatprep.mubr.f32.mxu0 %v4997_v0  ;;  %v3496_v38 = vld [vmem:[%s7021_s1 + $0x410] sm:$0xff] }
  0x9f   : > { %4265 = vmatprep.subr.bf16.mxu0 %v4264_v21  ;;  %v4294_v20 = vpack.c.bf16 %v3496_v38, %v3494_v17 }
  0xa1   : > { %3448 = vmatmul.mubr.msk.f32.gmra.mrb[4].mxu0 %vm588_vm3, %v837_v29  ;;  %v3502_v29 = vld [vmem:[%s7021_s1 + $0x440] sm:$0xff] }
  0xa2   : > { %4267 = vmatpush1.bf16.msra.mxu0 %v4266_v42  ;;  %932 = vmatprep.mubr.f32.mxu0 %v4997_v0 }
  0xa3   : > { %4269 = vmatprep.subr.bf16.mxu0 %v4268_v32  ;;  %v3507_v32 = vld [vmem:[%s7021_s1 + $0x468] sm:$0xff] }
  0xa5   : > { %3449 = vmatmul.mubr.msk.f32.gmra.mrb[6].mxu0 %vm588_vm3, %v839_v40  ;;  %v4306_v40 = vpack.c.bf16 %v3508_v37, %v3506_v35 }
  0xa6   : > { %4271 = vmatpush1.bf16.msra.mxu0 %v4270_v39  ;;  %938 = vmatprep.mubr.f32.mxu0 %v4997_v0  ;;  %v3511_v39 = vld [vmem:[%s7021_s1 + $0x488] sm:$0xff] }
  0xa7   : > { %4273 = vmatprep.subr.bf16.mxu0 %v4272_v41 }
  0xa9   : > { %3450 = vmatmul.mubr.msk.f32.gmra.mrb[8].mxu0 %vm588_vm3, %v838_v30  ;;  %v3504_v30 = vld [vmem:[%s7021_s1 + $0x450] sm:$0xff] }
  0xaa   : > { %4275 = vmatpush1.bf16.msra.mxu0 %v4274_v48  ;;  %1070 = vmatprep.mubr.f32.mxu0 %v4997_v0  ;;  %v4302_v33 = vpack.c.bf16 %v3504_v30, %v3502_v29 }
  0xab   : > { %4277 = vmatprep.subr.bf16.mxu0 %v4276_v49 }
  0xae   : > { %4279 = vmatpush1.bf16.msra.mxu0 %v4278_v57 }
  0xaf   : > { %4281 = vmatprep.subr.bf16.mxu0 %v4280_v60 }
  0xb2   : > { %4283 = vmatpush1.bf16.msra.mxu0 %v4282_v63 }
  0xb3   : > { %1034 = vmatprep.subr.mxu0 %v3480_v1 }
  0xb6   : > { %1035 = vmatpush1.msra.mxu0 %v3479_v26 }
  0xb7   : > { %4285 = vmatprep.subr.bf16.mxu0 %v4284_v27  ;;  %3481 = vmatmul.mubr.msk.f32.vlgmr.msra.gmra.mrb[0].mxu0 %vm588_vm3, %v5250_v36  ;;  %v3501_v36 = vld [vmem:[%s7021_s1 + $0x438] sm:$0xff] }
  0xb8   : > { %4287 = vmatpush1.bf16.msra.mxu0 %v4286_v9  ;;  %1076 = vmatprep.mubr.f32.mxu0 %v4997_v0  ;;  %v4296_v21 = vpack.c.bf16 %v3501_v36, %v3499_v18 }
  0xb9   : > { %4289 = vmatprep.subr.bf16.mxu0 %v4288_v10 }
  0xbb   : > { %3482 = vmatmul.mubr.msk.f32.gmra.mrb[2].mxu0 %vm588_vm3, %v5273_v47  ;;  %v3505_v47 = vld [vmem:[%s7021_s1 + $0x458] sm:$0xff] }
  0xbc   : > { %4291 = vmatpush1.bf16.msra.mxu0 %v4290_v15  ;;  %1082 = vmatprep.mubr.f32.mxu0 %v4997_v0  ;;  %v4300_v42 = vpack.c.bf16 %v3505_v47, %v3503_v25 }
  0xbd   : > { %4293 = vmatprep.subr.bf16.mxu0 %v4292_v16 }
  0xbf   : > { %3483 = vmatmul.mubr.msk.f32.gmra.mrb[4].mxu0 %vm588_vm3, %v5285_v53  ;;  %v3509_v53 = vld [vmem:[%s7021_s1 + $0x478] sm:$0xff] }
  0xc0   : > { %4295 = vmatpush1.bf16.msra.mxu0 %v4294_v20  ;;  %1088 = vmatprep.mubr.f32.mxu0 %v4997_v0  ;;  %v4304_v34 = vpack.c.bf16 %v3509_v53, %v3507_v32 }
  0xc1   : > { %4297 = vmatprep.subr.bf16.mxu0 %v4296_v21 }
  0xc3   : > { %3484 = vmatmul.mubr.msk.f32.gmra.mrb[6].mxu0 %vm588_vm3, %v5293_v58  ;;  %v3513_v58 = vld [vmem:[%s7021_s1 + $0x498] sm:$0xff] }
  0xc4   : > { %4299 = vmatpush1.bf16.msra.mxu0 %v4298_v28  ;;  %1094 = vmatprep.mubr.f32.mxu0 %v4997_v0  ;;  %v4308_v41 = vpack.c.bf16 %v3513_v58, %v3511_v39 }
  0xc5   : > { %4301 = vmatprep.subr.bf16.mxu0 %v4300_v42 }
  0xc7   : > { %3485 = vmatmul.mubr.msk.f32.gmra.mrb[8].mxu0 %vm588_vm3, %v994_v54  ;;  %v3515_v54 = vld [vmem:[%s7021_s1 + $0x4a8] sm:$0xff] }
  0xc8   : > { %4303 = vmatpush1.bf16.msra.mxu0 %v4302_v33  ;;  %1226 = vmatprep.mubr.f32.mxu0 %v4997_v0 }
  0xc9   : > { %4305 = vmatprep.subr.bf16.mxu0 %v4304_v34 }
  0xcc   : > { %4307 = vmatpush1.bf16.msra.mxu0 %v4306_v40 }
  0xcd   : > { %4309 = vmatprep.subr.bf16.mxu0 %v4308_v41 }
  0xd0   : > { %4311 = vmatpush1.bf16.msra.mxu0 %v4310_v45 }
  0xd1   : > { %1190 = vmatprep.subr.mxu0 %v3515_v54 }
  0xd4   : > { %1191 = vmatpush1.msra.mxu0 %v3514_v46 }
  0xd5   : > { %3516 = vmatmul.mubr.msk.f32.vlgmr.msra.gmra.mrb[0].mxu0 %vm588_vm3, %v5296_v59  ;;  %v1269_v59 = vlaneseq }
  0xd6   : > { %1232 = vmatprep.mubr.f32.mxu0 %v4997_v0 }
  0xd9   : > { %3517 = vmatmul.mubr.msk.f32.gmra.mrb[2].mxu0 %vm588_vm3, %v5323_v7  ;;  %v5763_v7 = vshrl.u32 %v1269_v59, 7 }
  0xda   : > { %1238 = vmatprep.mubr.f32.mxu0 %v4997_v0 }
  0xdb   : > { %v1271_v48 = vsub.s32 0, %v5763_v7  ;;  %v1275_v49 = vsub.s32 1, %v5763_v7 }
  0xdd   : > { %3518 = vmatmul.mubr.msk.f32.gmra.mrb[4].mxu0 %vm588_vm3, %v5344_v19  ;;  %v1267_v19 = vld [vmem:[%s7022_s2] sm:$0x3] }
  0xde   : > { %1244 = vmatprep.mubr.f32.mxu0 %v4997_v0  ;;  %v1276_v52 = vrot.slane %v1267_v19, %v1275_v49 }
  0xe1   : > { %3519 = vmatmul.mubr.msk.f32.gmra.mrb[6].mxu0 %vm588_vm3, %v5366_v31  ;;  %v1272_v31 = vrot.slane %v1267_v19, %v1271_v48 }
  0xe2   : > { %1250 = vmatprep.mubr.f32.mxu0 %v4997_v0 }
  0xe5   : > { %3520 = vmatmul.mubr.msk.f32.gmra.mrb[8].mxu0 %vm588_vm3, %v1150_v23 }
  0xe6   : > { %1487 = vmatprep.mubr.f32.mxu0 %v4997_v0 }
 0x1a8   : > { %v1228_v23 = vpop.f32.mrb[0].mxu0 }
 0x1a9   : > { %v1279_v50 = vadd.f32 %v1272_v31, %v1228_v23  ;;  %v1230_v51 = vpop.f32.mrb[1].mxu0 }
 0x1aa   : > { %v1280_v55 = vadd.f32 %v1276_v52, %v1230_v51 }
 0x1ab   : > { %v1289_v56 = vmax.f32 %v1279_v50, 0.0 }
 0x1ac   : > { %v1290_v57 = vmax.f32 %v1280_v55, 0.0  ;;  %v1234_v60 = vpop.f32.mrb[2].mxu0 }
 0x1ad   : > { %v1281_v61 = vadd.f32 %v1272_v31, %v1234_v60  ;;  %v1236_v62 = vpop.f32.mrb[3].mxu0 }
 0x1ae   : > { %v1282_v63 = vadd.f32 %v1276_v52, %v1236_v62  ;;  %v4868_v1 = vpack.i.bf16 %v1290_v57, %v1289_v56 }
 0x1af   : > { %v1291_v2 = vmax.f32 %v1281_v61, 0.0 }
 0x1b0   : > { %v1292_v3 = vmax.f32 %v1282_v63, 0.0  ;;  %4869 = vrot.lane.b32.xlu0 %v4868_v1, %s4998_s26  ;;  %v1240_v4 = vpop.f32.mrb[4].mxu0 }
 0x1b1   : > { %v1283_v5 = vadd.f32 %v1272_v31, %v1240_v4  ;;  %v1242_v6 = vpop.f32.mrb[5].mxu0 }
 0x1b2   : > { %v4873_v8 = vpack.i.bf16 %v1292_v3, %v1291_v2  ;;  %v1284_v26 = vadd.f32 %v1276_v52, %v1242_v6 }
 0x1b3   : > { %v1293_v27 = vmax.f32 %v1283_v5, 0.0 }
 0x1b4   : > { %v1294_v9 = vmax.f32 %v1284_v26, 0.0  ;;  %4874 = vrot.lane.b32.xlu0 %v4873_v8, %s4998_s26  ;;  %v1246_v10 = vpop.f32.mrb[6].mxu0 }
 0x1b5   : > { %v1285_v11 = vadd.f32 %v1272_v31, %v1246_v10  ;;  %v1248_v12 = vpop.f32.mrb[7].mxu0 }
 0x1b6   : > { %v1286_v13 = vadd.f32 %v1276_v52, %v1248_v12  ;;  %v4878_v14 = vpack.i.bf16 %v1294_v9, %v1293_v27 }
 0x1b7   : > { %v1295_v15 = vmax.f32 %v1285_v11, 0.0 }
 0x1b8   : > { %v1296_v16 = vmax.f32 %v1286_v13, 0.0  ;;  %4879 = vrot.lane.b32.xlu1 %v4878_v14, %s4998_s26  ;;  %v1252_v17 = vpop.f32.mrb[8].mxu0 }
 0x1b9   : > { %v1287_v38 = vadd.f32 %v1272_v31, %v1252_v17  ;;  %v1254_v18 = vpop.f32.mrb[9].mxu0 }
 0x1ba   : > { %v4883_v36 = vpack.i.bf16 %v1296_v16, %v1295_v15  ;;  %v1288_v20 = vadd.f32 %v1276_v52, %v1254_v18 }
 0x1bb   : > { %v1297_v21 = vmax.f32 %v1287_v38, 0.0 }
 0x1bc   : > { %4884 = vrot.lane.b32.xlu1 %v4883_v36, %s4998_s26  ;;  %v1298_v22 = vmax.f32 %v1288_v20, 0.0 }
 0x1bd   : > { %1325 = vrot.lane.b32.xlu0 %v1297_v21, %s4998_s26 }
 0x1c0   : > { %1327 = vrot.lane.b32.xlu1 %v1298_v22, %s4998_s26 }
 0x222   : > { %v4870_v24 = vpop.permute.xlu0 %4869 }
 0x223   : > { %v4872_v25 = vunpack.i.h.bf16 %v4870_v24  ;;  %v4871_v47 = vunpack.i.l.bf16 %v4870_v24  ;;  %v1506_v24 = vld [vmem:[%s7024_s4] sm:$0xff] }
 0x225   : > { %v1330_v28 = vsel %vm1329_vm5, %v4871_v47, %v4872_v25  ;;  %v1346_v32 = vmax.f32 %v1290_v57, %v4872_v25  ;;  %v1507_v25 = vld [vmem:[%s7024_s4 + $0x8] sm:$0xff] }
 0x226   : > { %v4875_v42 = vpop.permute.xlu0 %4874  ;;  %v1345_v53 = vmax.f32 %v1289_v56, %v1330_v28  ;;  %v1403_v28 = vld [vmem:[%s7023_s3] sm:$0xff] }
 0x227   : > { %v4877_v29 = vunpack.i.h.bf16 %v4875_v42  ;;  %v4876_v30 = vunpack.i.l.bf16 %v4875_v42  ;;  %v1368_v41 = vrot.slane %v1346_v32, 1  ;;  %v4321_v42 = vpack.c.bf16 %v1507_v25, %v1506_v24  ;;  %v3538_v24 = vld [vmem:[%s7025_s5 + $0x120] sm:$0xff]  ;;  %v3540_v25 = vld [vmem:[%s7025_s5 + $0x130] sm:$0xff] }
 0x228   : > { %v1365_v44 = vrot.slane %v1345_v53, 1 }
 0x229   : > { %v1348_v33 = vmax.f32 %v1292_v3, %v4877_v29  ;;  %v1331_v34 = vsel %vm1329_vm5, %v4876_v30, %v4877_v29  ;;  %v1508_v29 = vld [vmem:[%s7024_s4 + $0x10] sm:$0xff]  ;;  %v1509_v30 = vld [vmem:[%s7024_s4 + $0x18] sm:$0xff] }
 0x22a   : > { %v1347_v35 = vmax.f32 %v1291_v2, %v1331_v34  ;;  %v4880_v37 = vpop.permute.xlu1 %4879  ;;  %v1510_v34 = vld [vmem:[%s7024_s4 + $0x20] sm:$0xff] }
 0x22b   : > { %v1369_v39 = vrot.slane %v1348_v33, 1  ;;  %v4882_v58 = vunpack.i.h.bf16 %v4880_v37  ;;  %v4881_v40 = vunpack.i.l.bf16 %v4880_v37  ;;  %v1405_v37 = vld [vmem:[%s7023_s3 + $0x10] sm:$0x3] }
 0x22c   : > { %v1366_v43 = vrot.slane %v1347_v35, 1 }
 0x22d   : > { %v1350_v45 = vmax.f32 %v1294_v9, %v4882_v58  ;;  %v1332_v54 = vsel %vm1329_vm5, %v4881_v40, %v4882_v58  ;;  %v1370_v19 = vsel %vm578_vm2, %v1368_v41, %v1369_v39  ;;  %v1512_v58 = vld [vmem:[%s7024_s4 + $0x30] sm:$0xff]  ;;  %v1513_v40 = vld [vmem:[%s7024_s4 + $0x38] sm:$0xff] }
 0x22e   : > { %v1349_v46 = vmax.f32 %v1293_v27, %v1332_v54  ;;  %v4885_v59 = vpop.permute.xlu1 %4884  ;;  %v1367_v50 = vsel %vm578_vm2, %v1365_v44, %v1366_v43  ;;  %v1394_v60 = vmax.f32 %v1346_v32, %v1370_v19  ;;  %v4999_v32 = vmov 0.0|0.0   ;;  %v1515_v44 = vld [vmem:[%s7024_s4 + $0x48] sm:$0xff]  ;;  %v1516_v54 = vld [vmem:[%s7024_s4 + $0x50] sm:$0xff]  ;;  %v1518_v19 = vld [vmem:[%s7024_s4 + $0x60] sm:$0xff] }
 0x22f   : > { %v1373_v31 = vrot.slane %v1350_v45, 1  ;;  %v4887_v52 = vunpack.i.h.bf16 %v4885_v59  ;;  %v4886_v23 = vunpack.i.l.bf16 %v4885_v59  ;;  %v1326_v62 = vpop.permute.xlu0 %1325  ;;  %v1393_v3 = vmax.f32 %v1345_v53, %v1367_v50  ;;  %v1404_v53 = vld [vmem:[%s7023_s3 + $0x8] sm:$0xff]  ;;  %v1521_v50 = vld [vmem:[%s7024_s4 + $0x78] sm:$0xff] }
 0x230   : > { %v1371_v51 = vrot.slane %v1349_v46, 1  ;;  %v4330_v41 = vpack.c.bf16 %v1513_v40, %v1512_v58  ;;  %v3548_v58 = vld [vmem:[%s7025_s5 + $0x170] sm:$0xff]  ;;  %v3551_v40 = vld [vmem:[%s7025_s5 + $0x188] sm:$0xff] }
 0x231   : > { %v1352_v55 = vmax.f32 %v1296_v16, %v4887_v52  ;;  %v1333_v56 = vsel %vm1329_vm5, %v4886_v23, %v4887_v52  ;;  %v1374_v57 = vsel %vm578_vm2, %v1369_v39, %v1373_v31  ;;  %v1520_v23 = vld [vmem:[%s7024_s4 + $0x70] sm:$0xff] }
 0x232   : > { %v1351_v61 = vmax.f32 %v1295_v15, %v1333_v56  ;;  %v1328_v63 = vpop.permute.xlu1 %1327  ;;  %v1396_v1 = vmax.f32 %v1348_v33, %v1374_v57  ;;  %v1372_v2 = vsel %vm578_vm2, %v1366_v43, %v1371_v51  ;;  %v4324_v33 = vpack.c.bf16 %v1509_v30, %v1508_v29  ;;  %v1514_v43 = vld [vmem:[%s7024_s4 + $0x40] sm:$0xff]  ;;  %v1523_v56 = vld [vmem:[%s7024_s4 + $0x88] sm:$0xff] }
 0x233   : > { %v1377_v4 = vrot.slane %v1352_v55, 1  ;;  %v1334_v5 = vsel %vm1329_vm5, %v1326_v62, %v1328_v63  ;;  %v1354_v6 = vmax.f32 %v1298_v22, %v1328_v63  ;;  %v1395_v8 = vmax.f32 %v1347_v35, %v1372_v2  ;;  %v1511_v35 = vld [vmem:[%s7024_s4 + $0x28] sm:$0xff]  ;;  %v1526_v63 = vld [vmem:[%s7024_s4 + $0xa0] sm:$0xff] }
 0x234   : > { %v1375_v26 = vrot.slane %v1351_v61, 1  ;;  %v1353_v27 = vmax.f32 %v1297_v21, %v1334_v5  ;;  %v4312_v9 = vpack.c.bf16 %v1396_v1, %v1394_v60  ;;  %v4327_v39 = vpack.c.bf16 %v1511_v35, %v1510_v34  ;;  %v1524_v60 = vld [vmem:[%s7024_s4 + $0x90] sm:$0xff]  ;;  %v1527_v1 = vld [vmem:[%s7024_s4 + $0xa8] sm:$0xff]  ;;  %v3542_v30 = vld [vmem:[%s7025_s5 + $0x140] sm:$0xff] }
 0x235   : > { %v1381_v10 = vrot.slane %v1354_v6, 1  ;;  %v4314_v11 = vpack.c.bf16 %v1395_v8, %v1393_v3  ;;  %v1378_v12 = vsel %vm578_vm2, %v1373_v31, %v1377_v4  ;;  %v1519_v31 = vld [vmem:[%s7024_s4 + $0x68] sm:$0xff]  ;;  %v4351_v2 = vpack.c.bf16 %v1527_v1, %v1526_v63  ;;  %v1528_v3 = vld [vmem:[%s7024_s4 + $0xb0] sm:$0xff]  ;;  %v3549_v34 = vld [vmem:[%s7025_s5 + $0x178] sm:$0xff] }
 0x236   : > { %v1379_v13 = vrot.slane %v1353_v27, 1  ;;  %4313 = vmatprep.subr.bf16.mxu0 %v4312_v9  ;;  %v1376_v14 = vsel %vm578_vm2, %v1371_v51, %v1375_v26  ;;  %v1398_v17 = vmax.f32 %v1350_v45, %v1378_v12  ;;  %v4333_v45 = vpack.c.bf16 %v1515_v44, %v1514_v43  ;;  %v1531_v8 = vld [vmem:[%s7024_s4 + $0xc8] sm:$0xff]  ;;  %v1629_v1 = vld [vmem:[%s7025_s5 + $0x18] sm:$0xff] }
 0x237   : > { %4315 = vmatpush1.bf16.msra.mxu0 %v4314_v11  ;;  %v1382_v15 = vsel %vm578_vm2, %v1377_v4, %v1381_v10  ;;  %v1397_v18 = vmax.f32 %v1349_v46, %v1376_v14  ;;  %v1402_v22 = vmax.f32 %v1354_v6, %v1381_v10  ;;  %v1517_v46 = vld [vmem:[%s7024_s4 + $0x58] sm:$0xff]  ;;  %v4339_v52 = vpack.c.bf16 %v1519_v31, %v1518_v19  ;;  %v1530_v6 = vld [vmem:[%s7024_s4 + $0xc0] sm:$0xff]  ;;  %v3531_v9 = vld [vmem:[%s7025_s5 + $0xe8] sm:$0xff] }
 0x238   : > { %v1380_v16 = vsel %vm578_vm2, %v1375_v26, %v1379_v13  ;;  %v1400_v38 = vmax.f32 %v1352_v55, %v1382_v15  ;;  %v1401_v47 = vmax.f32 %v1353_v27, %v1379_v13  ;;  %v4336_v59 = vpack.c.bf16 %v1517_v46, %v1516_v54  ;;  %v1522_v55 = vld [vmem:[%s7024_s4 + $0x80] sm:$0xff]  ;;  %v1529_v4 = vld [vmem:[%s7024_s4 + $0xb8] sm:$0xff]  ;;  %v1532_v27 = vld [vmem:[%s7024_s4 + $0xd0] sm:$0x7f] }
 0x239   : > { %v1399_v36 = vmax.f32 %v1351_v61, %v1380_v16  ;;  %v4342_v51 = vpack.c.bf16 %v1521_v50, %v1520_v23  ;;  %v4345_v57 = vpack.c.bf16 %v1523_v56, %v1522_v55  ;;  %v1525_v61 = vld [vmem:[%s7024_s4 + $0x98] sm:$0xff]  ;;  %v4354_v5 = vpack.c.bf16 %v1529_v4, %v1528_v3  ;;  %v3530_v11 = vld [vmem:[%s7025_s5 + $0xe0] sm:$0xff]  ;;  %v3532_v13 = vld [vmem:[%s7025_s5 + $0xf0] sm:$0xff] }
 0x23a   : > { %v4316_v20 = vpack.c.bf16 %v1400_v38, %v1398_v17  ;;  %v4348_v62 = vpack.c.bf16 %v1525_v61, %v1524_v60  ;;  %v4357_v26 = vpack.c.bf16 %v1531_v8, %v1530_v6  ;;  %v3533_v10 = vld [vmem:[%s7025_s5 + $0xf8] sm:$0xff]  ;;  %v3535_v14 = vld [vmem:[%s7025_s5 + $0x108] sm:$0xff]  ;;  %v4361_v16 = vpack.c.bf16 %v3532_v13, %v3530_v11  ;;  %v3534_v38 = vld [vmem:[%s7025_s5 + $0x100] sm:$0xff] }
 0x23b   : > { %v4318_v21 = vpack.c.bf16 %v1399_v36, %v1397_v18  ;;  %v4359_v12 = vpack.c.bf16 %v3533_v10, %v3531_v9  ;;  %v3537_v15 = vld [vmem:[%s7025_s5 + $0x118] sm:$0xff]  ;;  %v3536_v18 = vld [vmem:[%s7025_s5 + $0x110] sm:$0xff]  ;;  %v3539_v36 = vld [vmem:[%s7025_s5 + $0x128] sm:$0xff] }
 0x23c   : > { %4317 = vmatprep.subr.bf16.mxu0 %v4316_v20  ;;  %v4363_v17 = vpack.c.bf16 %v3537_v15, %v3535_v14  ;;  %v3541_v20 = vld [vmem:[%s7025_s5 + $0x138] sm:$0xff]  ;;  %v3552_v23 = vld [vmem:[%s7025_s5 + $0x190] sm:$0xff]  ;;  %v1627_v63 = vld [vmem:[%s7025_s5 + $0x8] sm:$0xff] }
 0x23d   : > { %4319 = vmatpush1.bf16.msra.mxu0 %v4318_v21  ;;  %4360 = vmatprep.subr.bf16.mxu1 %v4359_v12  ;;  %v4365_v21 = vpack.c.bf16 %v3536_v18, %v3534_v38  ;;  %v3557_v55 = vld [vmem:[%s7025_s5 + $0x1b8] sm:$0xf]  ;;  %v3556_v60 = vld [vmem:[%s7025_s5 + $0x1b0] sm:$0xf]  ;;  %v1626_v4 = vld [vmem:[%s7025_s5] sm:$0xff] }
 0x23e   : > { %3521 = vmatprep.subr.msk.mxu0 %vm1416_vm6, %v1402_v22  ;;  %4362 = vmatpush1.bf16.msra.mxu1 %v4361_v16  ;;  %v4367_v22 = vpack.c.bf16 %v3541_v20, %v3539_v36  ;;  %v1630_v36 = vld [vmem:[%s7025_s5 + $0x20] sm:$0xff]  ;;  %v1632_v20 = vld [vmem:[%s7025_s5 + $0x30] sm:$0xff] }
 0x23f   : > { %4364 = vmatprep.subr.bf16.mxu1 %v4363_v17 }
 0x241   : > { %3522 = vmatpush1.msk.msra.mxu0 %vm1416_vm6, %v1401_v47  ;;  %v3543_v47 = vld [vmem:[%s7025_s5 + $0x148] sm:$0xff] }
 0x242   : > { %3523 = vmatmul.mubr.msk.f32.vlgmr.msra.gmra.mrb[10].mxu0 %vm1406_vm7, %v1403_v28  ;;  %4320 = vmatprep.subr.bf16.mxu0 %v4999_v32  ;;  %v3545_v28 = vld [vmem:[%s7025_s5 + $0x158] sm:$0xff] }
 0x243   : > { %1493 = vmatprep.mubr.f32.mxu0 %v4997_v0  ;;  %4322 = vmatpush1.bf16.msra.mxu0 %v4321_v42  ;;  %v4369_v42 = vpack.c.bf16 %v3540_v25, %v3538_v24  ;;  %v4371_v29 = vpack.c.bf16 %v3545_v28, %v3543_v47  ;;  %v1637_v24 = vld [vmem:[%s7025_s5 + $0x58] sm:$0xff] }
 0x244   : > { %4323 = vmatprep.subr.bf16.mxu0 %v4999_v32  ;;  %4366 = vmatpush1.bf16.msra.mxu1 %v4365_v21 }
 0x245   : > { %4368 = vmatprep.subr.bf16.mxu1 %v4367_v22  ;;  %v1635_v22 = vld [vmem:[%s7025_s5 + $0x48] sm:$0xff] }
 0x246   : > { %3524 = vmatmul.mubr.msk.f32.gmra.mrb[12].mxu0 %vm1406_vm7, %v1404_v53  ;;  %v3544_v53 = vld [vmem:[%s7025_s5 + $0x150] sm:$0xff] }
 0x247   : > { %1499 = vmatprep.mubr.f32.mxu0 %v4997_v0  ;;  %4325 = vmatpush1.bf16.msra.mxu0 %v4324_v33  ;;  %v3547_v33 = vld [vmem:[%s7025_s5 + $0x168] sm:$0xff]  ;;  %v4373_v35 = vpack.c.bf16 %v3544_v53, %v3542_v30  ;;  %v4395_v53 = vpack.c.bf16 %v1632_v20, %v1630_v36  ;;  %v3577_v36 = vld [vmem:[%s7025_s5 + $0x218] sm:$0xff] }
 0x248   : > { %4326 = vmatprep.subr.bf16.mxu0 %v4999_v32  ;;  %4370 = vmatpush1.bf16.msra.mxu1 %v4369_v42 }
 0x249   : > { %4372 = vmatprep.subr.bf16.mxu1 %v4371_v29 }
 0x24a   : > { %3525 = vmatmul.mubr.msk.f32.gmra.mrb[14].mxu0 %vm1406_vm7, %v1405_v37  ;;  %v4375_v37 = vpack.c.bf16 %v3549_v34, %v3547_v33  ;;  %v4397_v34 = vpack.c.bf16 %v1637_v24, %v1635_v22  ;;  %v3574_v22 = vld [vmem:[%s7025_s5 + $0x200] sm:$0xff]  ;;  %v3576_v24 = vld [vmem:[%s7025_s5 + $0x210] sm:$0xff] }
 0x24b   : > { %4328 = vmatpush1.bf16.msra.mxu0 %v4327_v39  ;;  %v3546_v39 = vld [vmem:[%s7025_s5 + $0x160] sm:$0xff] }
 0x24c   : > { %4329 = vmatprep.subr.bf16.mxu0 %v4999_v32  ;;  %4374 = vmatpush1.bf16.msra.mxu1 %v4373_v35  ;;  %v4377_v43 = vpack.c.bf16 %v3548_v58, %v3546_v39  ;;  %v1634_v35 = vld [vmem:[%s7025_s5 + $0x40] sm:$0xff]  ;;  %v1639_v39 = vld [vmem:[%s7025_s5 + $0x68] sm:$0xff]  ;;  %v1641_v58 = vld [vmem:[%s7025_s5 + $0x78] sm:$0xff] }
 0x24d   : > { %4376 = vmatprep.subr.bf16.mxu1 %v4375_v37  ;;  %v1636_v37 = vld [vmem:[%s7025_s5 + $0x50] sm:$0xff] }
 0x24f   : > { %4331 = vmatpush1.bf16.msra.mxu0 %v4330_v41  ;;  %v3553_v41 = vld [vmem:[%s7025_s5 + $0x198] sm:$0xff] }
 0x250   : > { %4332 = vmatprep.subr.bf16.mxu0 %v4999_v32  ;;  %v4379_v44 = vpack.c.bf16 %v3553_v41, %v3551_v40  ;;  %4378 = vmatpush1.bf16.msra.mxu1 %v4377_v43  ;;  %v4399_v43 = vpack.c.bf16 %v1636_v37, %v1634_v35  ;;  %v3585_v35 = vld [vmem:[%s7025_s5 + $0x258] sm:$0xff] }
 0x252   : > { %4380 = vmatprep.subr.bf16.mxu1 %v4379_v44  ;;  %v4401_v44 = vpack.c.bf16 %v1641_v58, %v1639_v39  ;;  %v3582_v58 = vld [vmem:[%s7025_s5 + $0x240] sm:$0xff] }
 0x253   : > { %4334 = vmatpush1.bf16.msra.mxu0 %v4333_v45 }
 0x254   : > { %4335 = vmatprep.subr.bf16.mxu0 %v4999_v32 }
 0x257   : > { %4337 = vmatpush1.bf16.msra.mxu0 %v4336_v59 }
 0x258   : > { %4338 = vmatprep.subr.bf16.mxu0 %v4999_v32 }
 0x25b   : > { %4340 = vmatpush1.bf16.msra.mxu0 %v4339_v52  ;;  %v3550_v52 = vld [vmem:[%s7025_s5 + $0x180] sm:$0xff] }
 0x25c   : > { %4341 = vmatprep.subr.bf16.mxu0 %v4999_v32  ;;  %v4381_v50 = vpack.c.bf16 %v3552_v23, %v3550_v52  ;;  %v1642_v52 = vld [vmem:[%s7025_s5 + $0x80] sm:$0xff]  ;;  %v1644_v23 = vld [vmem:[%s7025_s5 + $0x90] sm:$0xff] }
 0x25e   : > { %4382 = vmatpush1.bf16.msra.mxu1 %v4381_v50  ;;  %v1647_v50 = vld [vmem:[%s7025_s5 + $0xa8] sm:$0xff] }
 0x25f   : > { %4343 = vmatpush1.bf16.msra.mxu0 %v4342_v51  ;;  %v3555_v51 = vld [vmem:[%s7025_s5 + $0x1a8] sm:$0xff] }
 0x260   : > { %4344 = vmatprep.subr.bf16.mxu0 %v4999_v32  ;;  %v4383_v56 = vpack.c.bf16 %v3557_v55, %v3555_v51  ;;  %v1649_v51 = vld [vmem:[%s7025_s5 + $0xb8] sm:$0xff]  ;;  %v4407_v55 = vpack.c.bf16 %v1644_v23, %v1642_v52 }
 0x261   : > { %v3593_v52 = vld [vmem:[%s7025_s5 + $0x298] sm:$0xf] }
 0x262   : > { %4385 = vmatprep.subr.msk.bf16.mxu1 %vm5990_vm10, %v4383_v56  ;;  %v4409_v56 = vpack.c.bf16 %v1649_v51, %v1647_v50  ;;  %v3590_v51 = vld [vmem:[%s7025_s5 + $0x280] sm:$0xff] }
 0x263   : > { %4346 = vmatpush1.bf16.msra.mxu0 %v4345_v57  ;;  %v3554_v57 = vld [vmem:[%s7025_s5 + $0x1a0] sm:$0xff] }
 0x264   : > { %4347 = vmatprep.subr.bf16.mxu0 %v4999_v32 }
 0x267   : > { %4349 = vmatpush1.bf16.msra.mxu0 %v4348_v62  ;;  %v4386_v62 = vpack.c.bf16 %v3556_v60, %v3554_v57  ;;  %v1646_v57 = vld [vmem:[%s7025_s5 + $0xa0] sm:$0xff]  ;;  %v1648_v60 = vld [vmem:[%s7025_s5 + $0xb0] sm:$0xff] }
 0x268   : > { %4350 = vmatprep.subr.bf16.mxu0 %v4999_v32 }
 0x269   : > { %4388 = vmatpush1.bf16.msk.msra.mxu1 %vm5990_vm10, %v4386_v62  ;;  %v1651_v62 = vld [vmem:[%s7025_s5 + $0xc8] sm:$0xff] }
 0x26b   : > { %4352 = vmatpush1.bf16.msra.mxu0 %v4351_v2  ;;  %v4389_v2 = vpack.c.bf16 %v1629_v1, %v1627_v63  ;;  %v1653_v63 = vld [vmem:[%s7025_s5 + $0xd8] sm:$0xf]  ;;  %v4411_v1 = vpack.c.bf16 %v1648_v60, %v1646_v57 }
 0x26c   : > { %4353 = vmatprep.subr.bf16.mxu0 %v4999_v32  ;;  %v3601_v57 = vld [vmem:[%s7025_s5 + $0x2b8] sm:$0xff] }
 0x26d   : > { %4390 = vmatprep.subr.bf16.mxu1 %v4389_v2  ;;  %v4413_v2 = vpack.c.bf16 %v1653_v63, %v1651_v62  ;;  %v3598_v63 = vld [vmem:[%s7025_s5 + $0x2a0] sm:$0xff] }
 0x26f   : > { %4355 = vmatpush1.bf16.msra.mxu0 %v4354_v5  ;;  %v1628_v5 = vld [vmem:[%s7025_s5 + $0x10] sm:$0xff] }
 0x270   : > { %4356 = vmatprep.subr.bf16.mxu0 %v4999_v32  ;;  %v4391_v8 = vpack.c.bf16 %v1628_v5, %v1626_v4  ;;  %v1650_v4 = vld [vmem:[%s7025_s5 + $0xc0] sm:$0xff]  ;;  %v1652_v5 = vld [vmem:[%s7025_s5 + $0xd0] sm:$0xf] }
 0x273   : > { %4358 = vmatpush1.bf16.msra.mxu0 %v4357_v26  ;;  %v1631_v26 = vld [vmem:[%s7025_s5 + $0x28] sm:$0xff] }
 0x274   : > { %1598 = vmatprep.subr.mxu0 %v4997_v0 }
 0x277   : > { %3526 = vmatpush1.msk.msra.mxu0 %vm578_vm2, %v1532_v27  ;;  %v1633_v27 = vld [vmem:[%s7025_s5 + $0x38] sm:$0xff] }
 0x278   : > { %v4393_v18 = vpack.c.bf16 %v1633_v27, %v1631_v26  ;;  %v4416_v26 = vpack.c.bf16 %v1652_v5, %v1650_v4  ;;  %v3605_v4 = vld [vmem:[%s7025_s5 + $0x2d8] sm:$0xff] }
 0x315   : > { %v1489_v45 = vpop.f32.mrb[10].mxu0 }
 0x316   : > { %v1491_v54 = vpop.f32.mrb[11].mxu0 }
 0x317   : > { %3527 = vmatprep.mubr.msk.f32.mxu0 %vm1533_vm8, %v1491_v54  ;;  %v1640_v54 = vld [vmem:[%s7025_s5 + $0x70] sm:$0xff] }
 0x318   : > { %1611 = vmatmul.mubr.f32.vlgmr.msra.gmra.mrb[16].mxu0 %v1489_v45  ;;  %v1638_v45 = vld [vmem:[%s7025_s5 + $0x60] sm:$0xff] }
 0x319   : > { %v1495_v46 = vpop.f32.mrb[12].mxu0 }
 0x31a   : > { %v1497_v59 = vpop.f32.mrb[13].mxu0 }
 0x31b   : > { %3528 = vmatprep.mubr.msk.f32.mxu0 %vm1533_vm8, %v1497_v59  ;;  %v1645_v59 = vld [vmem:[%s7025_s5 + $0x98] sm:$0xff] }
 0x31c   : > { %1616 = vmatmul.mubr.f32.gmra.mrb[18].mxu0 %v1495_v46  ;;  %v1643_v46 = vld [vmem:[%s7025_s5 + $0x88] sm:$0xff] }
 0x31d   : > { %v1501_v19 = vpop.f32.mrb[14].mxu0 }
 0x31e   : > { %v1503_v31 = vpop.f32.mrb[15].mxu0 }
 0x31f   : > { %3529 = vmatprep.mubr.msk.f32.mxu0 %vm1533_vm8, %v1503_v31  ;;  %v4405_v31 = vpack.c.bf16 %v1645_v59, %v1643_v46  ;;  %v3586_v59 = vld [vmem:[%s7025_s5 + $0x260] sm:$0xff] }
 0x320   : > { %1621 = vmatmul.mubr.f32.gmra.mrb[20].mxu0 %v1501_v19  ;;  %v4403_v19 = vpack.c.bf16 %v1640_v54, %v1638_v45  ;;  %v3589_v45 = vld [vmem:[%s7025_s5 + $0x278] sm:$0xff] }
 0x321   : > { %2372 = vmatprep.mubr.f32.mxu0 %v4997_v0 }
 0x3eb   : > { %v6004_v3 = vpop.f32.mrb[16].mxu0 }
 0x3ec   : > { %v1614_v6 = vpop.f32.mrb[17].mxu0  ;;  %v1892_v9 = vrot.slane %v6004_v3, 2  ;;  %v2016_v10 = vrot.slane %v6004_v3, 3  ;;  %v2141_v11 = vrot.slane %v6004_v3, 4  ;;  %v1685_v13 = vrot.slane %v6004_v3, 1 }
 0x3ed   : > { %v3567_v6 = vld [vmem:[%s7025_s5 + $0x1c8] sm:$0xff] }
 0x3ef   : > { %v6021_v12 = vpop.f32.mrb[18].mxu0 }
 0x3f0   : > { %v1893_v14 = vrot.slane %v6021_v12, 2  ;;  %v2017_v15 = vrot.slane %v6021_v12, 3  ;;  %v2142_v16 = vrot.slane %v6021_v12, 4  ;;  %v1619_v17 = vpop.f32.mrb[19].mxu0  ;;  %v1686_v38 = vrot.slane %v6021_v12, 1 }
 0x3f1   : > { %v3570_v17 = vld [vmem:[%s7025_s5 + $0x1e0] sm:$0xff] }
 0x3f2   : > { %v1687_v21 = vsel %vm578_vm2, %v1685_v13, %v1686_v38  ;;  %v6044_v25 = vsel %vm830_vm4, %v1892_v9, %v1893_v14  ;;  %v6047_v47 = vsel %vm986_vm0, %v2016_v10, %v2017_v15  ;;  %v6050_v28 = vsel %vm1142_vm1, %v2141_v11, %v2142_v16  ;;  %v3566_v9 = vld [vmem:[%s7025_s5 + $0x1c0] sm:$0xff]  ;;  %v3568_v10 = vld [vmem:[%s7025_s5 + $0x1d0] sm:$0xff]  ;;  %v3571_v11 = vld [vmem:[%s7025_s5 + $0x1e8] sm:$0xff] }
 0x3f3   : > { %v1622_v42 = vpop.f32.mrb[20].mxu0  ;;  %3560 = vmatmul.mubr.msk.f32.vlgmr.msra.gmra.mrb[0].mxu1 %vm1688_vm11, %v1687_v21  ;;  %v3573_v13 = vld [vmem:[%s7025_s5 + $0x1f8] sm:$0xff] }
 0x3f4   : > { %v2019_v29 = vrot.slane %v1622_v42, 3  ;;  %v2144_v30 = vrot.slane %v1622_v42, 4  ;;  %4392 = vmatpush1.bf16.msra.mxu1 %v4391_v8  ;;  %1769 = vmatprep.mubr.f32.mxu1 %v4997_v0  ;;  %v1624_v33 = vpop.f32.mrb[21].mxu0  ;;  %v3569_v8 = vld [vmem:[%s7025_s5 + $0x1d8] sm:$0xff]  ;;  %v3579_v42 = vld [vmem:[%s7025_s5 + $0x228] sm:$0xff] }
 0x3f5   : > { %4394 = vmatprep.subr.bf16.mxu1 %v4393_v18  ;;  %v4419_v27 = vpack.c.bf16 %v3569_v8, %v3567_v6  ;;  %v3575_v18 = vld [vmem:[%s7025_s5 + $0x208] sm:$0xff]  ;;  %v3580_v33 = vld [vmem:[%s7025_s5 + $0x230] sm:$0xff]  ;;  %v3602_v8 = vld [vmem:[%s7025_s5 + $0x2c0] sm:$0xff] }
 0x3f6   : > { %v6067_v40 = vsel %vm986_vm0, %v2017_v15, %v2019_v29  ;;  %v6070_v41 = vsel %vm1142_vm1, %v2142_v16, %v2144_v30  ;;  %v4421_v15 = vpack.c.bf16 %v3568_v10, %v3566_v9  ;;  %v4423_v16 = vpack.c.bf16 %v3573_v13, %v3571_v11  ;;  %v3609_v9 = vld [vmem:[%s7025_s5 + $0x2f8] sm:$0xff]  ;;  %v3606_v13 = vld [vmem:[%s7025_s5 + $0x2e0] sm:$0xff] }
 0x3f7   : > { %3561 = vmatmul.mubr.msk.f32.gmra.mrb[2].mxu1 %vm1688_vm11, %v1686_v38  ;;  %v3572_v38 = vld [vmem:[%s7025_s5 + $0x1f0] sm:$0xff]  ;;  %v4427_v21 = vpack.c.bf16 %v3577_v36, %v3575_v18  ;;  %v4429_v29 = vpack.c.bf16 %v3576_v24, %v3574_v22  ;;  %v3610_v18 = vld [vmem:[%s7025_s5 + $0x300] sm:$0xff]  ;;  %vm5001_vm0 = vmmov 0  }
 0x3f8   : > { %4396 = vmatpush1.bf16.msra.mxu1 %v4395_v53  ;;  %1850 = vmatprep.mubr.f32.mxu1 %v4997_v0  ;;  %v4425_v20 = vpack.c.bf16 %v3572_v38, %v3570_v17  ;;  %v3578_v53 = vld [vmem:[%s7025_s5 + $0x220] sm:$0xff]  ;;  %v3612_v36 = vld [vmem:[%s7025_s5 + $0x310] sm:$0xff] }
 0x3f9   : > { %4398 = vmatprep.subr.bf16.mxu1 %v4397_v34  ;;  %v3583_v34 = vld [vmem:[%s7025_s5 + $0x248] sm:$0xff]  ;;  %v4433_v37 = vpack.c.bf16 %v3580_v33, %v3578_v53  ;;  %v3614_v22 = vld [vmem:[%s7025_s5 + $0x320] sm:$0xff]  ;;  %v3616_v24 = vld [vmem:[%s7025_s5 + $0x330] sm:$0xff] }
 0x3fa   : > { %v4435_v39 = vpack.c.bf16 %v3585_v35, %v3583_v34  ;;  %v3618_v53 = vld [vmem:[%s7025_s5 + $0x340] sm:$0xff]  ;;  %v3620_v33 = vld [vmem:[%s7025_s5 + $0x350] sm:$0xff]  ;;  %v3623_v34 = vld [vmem:[%s7025_s5 + $0x368] sm:$0xff] }
 0x3fb   : > { %v3625_v35 = vld [vmem:[%s7025_s5 + $0x378] sm:$0xf] }
 0x3fc   : > { %4400 = vmatpush1.bf16.msra.mxu1 %v4399_v43  ;;  %v3584_v43 = vld [vmem:[%s7025_s5 + $0x250] sm:$0xff] }
 0x3fd   : > { %4402 = vmatprep.subr.bf16.mxu1 %v4401_v44  ;;  %v3587_v44 = vld [vmem:[%s7025_s5 + $0x268] sm:$0xff]  ;;  %v4437_v54 = vpack.c.bf16 %v3584_v43, %v3582_v58  ;;  %v3622_v58 = vld [vmem:[%s7025_s5 + $0x360] sm:$0xff]  ;;  %v3624_v43 = vld [vmem:[%s7025_s5 + $0x370] sm:$0xf] }
 0x3fe   : > { %v4439_v46 = vpack.c.bf16 %v3589_v45, %v3587_v44  ;;  %v3631_v44 = vld [vmem:[%s7025_s5 + $0x388] sm:$0xff]  ;;  %v3633_v45 = vld [vmem:[%s7025_s5 + $0x398] sm:$0xff] }
 0x400   : > { %4404 = vmatpush1.bf16.msra.mxu1 %v4403_v19  ;;  %v3588_v19 = vld [vmem:[%s7025_s5 + $0x270] sm:$0xff] }
 0x401   : > { %4406 = vmatprep.subr.bf16.mxu1 %v4405_v31  ;;  %v3591_v31 = vld [vmem:[%s7025_s5 + $0x288] sm:$0xff]  ;;  %v4441_v23 = vpack.c.bf16 %v3588_v19, %v3586_v59  ;;  %v3630_v59 = vld [vmem:[%s7025_s5 + $0x380] sm:$0xff]  ;;  %v3632_v19 = vld [vmem:[%s7025_s5 + $0x390] sm:$0xff] }
 0x402   : > { %v4443_v50 = vpack.c.bf16 %v3593_v52, %v3591_v31  ;;  %v3635_v31 = vld [vmem:[%s7025_s5 + $0x3a8] sm:$0xff]  ;;  %v3637_v52 = vld [vmem:[%s7025_s5 + $0x3b8] sm:$0xff] }
 0x404   : > { %4408 = vmatpush1.bf16.msra.mxu1 %v4407_v55  ;;  %v3592_v55 = vld [vmem:[%s7025_s5 + $0x290] sm:$0xf] }
 0x405   : > { %4410 = vmatprep.subr.bf16.mxu1 %v4409_v56  ;;  %v3599_v56 = vld [vmem:[%s7025_s5 + $0x2a8] sm:$0xff]  ;;  %v4446_v60 = vpack.c.bf16 %v3592_v55, %v3590_v51  ;;  %v3634_v51 = vld [vmem:[%s7025_s5 + $0x3a0] sm:$0xff]  ;;  %v3636_v55 = vld [vmem:[%s7025_s5 + $0x3b0] sm:$0xff] }
 0x406   : > { %v4449_v62 = vpack.c.bf16 %v3601_v57, %v3599_v56  ;;  %v3639_v56 = vld [vmem:[%s7025_s5 + $0x3c8] sm:$0xff]  ;;  %v3641_v57 = vld [vmem:[%s7025_s5 + $0x3d8] sm:$0xff] }
 0x408   : > { %4412 = vmatpush1.bf16.msra.mxu1 %v4411_v1  ;;  %v3600_v1 = vld [vmem:[%s7025_s5 + $0x2b0] sm:$0xff] }
 0x409   : > { %4415 = vmatprep.subr.msk.bf16.mxu1 %vm5990_vm10, %v4413_v2  ;;  %v3603_v2 = vld [vmem:[%s7025_s5 + $0x2c8] sm:$0xff]  ;;  %v4451_v5 = vpack.c.bf16 %v3600_v1, %v3598_v63  ;;  %v3638_v63 = vld [vmem:[%s7025_s5 + $0x3c0] sm:$0xff]  ;;  %v3640_v1 = vld [vmem:[%s7025_s5 + $0x3d0] sm:$0xff] }
 0x40a   : > { %v4453_v6 = vpack.c.bf16 %v3605_v4, %v3603_v2  ;;  %v3643_v2 = vld [vmem:[%s7025_s5 + $0x3e8] sm:$0xff]  ;;  %v4489_v4 = vpack.c.bf16 %v3640_v1, %v3638_v63 }
 0x40c   : > { %4418 = vmatpush1.bf16.msk.msra.mxu1 %vm5990_vm10, %v4416_v26  ;;  %v3604_v26 = vld [vmem:[%s7025_s5 + $0x2d0] sm:$0xff] }
 0x40d   : > { %4420 = vmatprep.subr.bf16.mxu1 %v4419_v27  ;;  %v3607_v27 = vld [vmem:[%s7025_s5 + $0x2e8] sm:$0xff]  ;;  %v4455_v10 = vpack.c.bf16 %v3604_v26, %v3602_v8  ;;  %v3644_v8 = vld [vmem:[%s7025_s5 + $0x3f0] sm:$0xff] }
 0x40e   : > { %v4457_v11 = vpack.c.bf16 %v3609_v9, %v3607_v27  ;;  %v3647_v26 = vld [vmem:[%s7025_s5 + $0x408] sm:$0xff] }
 0x40f   : > { %3564 = vmatmul.mubr.msk.f32.vlgmr.msra.gmra.mrb[0].mxu1 %vm1688_vm11, %v6004_v3  ;;  %v3581_v3 = vld [vmem:[%s7025_s5 + $0x238] sm:$0xff] }
 0x410   : > { %4422 = vmatpush1.bf16.msra.mxu1 %v4421_v15  ;;  %1856 = vmatprep.mubr.f32.mxu1 %v4997_v0  ;;  %v4431_v30 = vpack.c.bf16 %v3581_v3, %v3579_v42  ;;  %v3608_v15 = vld [vmem:[%s7025_s5 + $0x2f0] sm:$0xff]  ;;  %v3619_v42 = vld [vmem:[%s7025_s5 + $0x348] sm:$0xff]  ;;  %v3621_v3 = vld [vmem:[%s7025_s5 + $0x358] sm:$0xff] }
 0x411   : > { %4424 = vmatprep.subr.bf16.mxu1 %v4423_v16  ;;  %v3611_v16 = vld [vmem:[%s7025_s5 + $0x308] sm:$0xff]  ;;  %v4459_v17 = vpack.c.bf16 %v3608_v15, %v3606_v13  ;;  %v3653_v15 = vld [vmem:[%s7025_s5 + $0x438] sm:$0xff] }
 0x412   : > { %v3651_v13 = vld [vmem:[%s7025_s5 + $0x428] sm:$0xff] }
 0x413   : > { %3565 = vmatmul.mubr.msk.f32.gmra.mrb[2].mxu1 %vm1688_vm11, %v6021_v12  ;;  %v3615_v12 = vld [vmem:[%s7025_s5 + $0x328] sm:$0xff] }
 0x414   : > { %4426 = vmatpush1.bf16.msra.mxu1 %v4425_v20  ;;  %1969 = vmatprep.mubr.f32.mxu1 %v4997_v0  ;;  %v4463_v20 = vpack.c.bf16 %v3612_v36, %v3610_v18  ;;  %v3655_v18 = vld [vmem:[%s7025_s5 + $0x448] sm:$0xff]  ;;  %v3657_v36 = vld [vmem:[%s7025_s5 + $0x458] sm:$0xf] }
 0x415   : > { %4428 = vmatprep.subr.bf16.mxu1 %v4427_v21 }
 0x418   : > { %4430 = vmatpush1.bf16.msra.mxu1 %v4429_v29  ;;  %v4467_v29 = vpack.c.bf16 %v3616_v24, %v3614_v22  ;;  %v2237_v24 = vld [vmem:[%s7026_s6] sm:$0x3] }
 0x419   : > { %4432 = vmatprep.subr.bf16.mxu1 %v4431_v30  ;;  %v4469_v30 = vpack.c.bf16 %v3621_v3, %v3619_v42  ;;  %v2242_v42 = vrot.slane %v2237_v24, %v1271_v48  ;;  %v2246_v61 = vrot.slane %v2237_v24, %v1275_v49 }
 0x41c   : > { %4434 = vmatpush1.bf16.msra.mxu1 %v4433_v37  ;;  %v4471_v37 = vpack.c.bf16 %v3620_v33, %v3618_v53 }
 0x41d   : > { %4436 = vmatprep.subr.bf16.mxu1 %v4435_v39  ;;  %v4473_v39 = vpack.c.bf16 %v3625_v35, %v3623_v34 }
 0x420   : > { %4438 = vmatpush1.bf16.msra.mxu1 %v4437_v54  ;;  %v4476_v54 = vpack.c.bf16 %v3624_v43, %v3622_v58 }
 0x421   : > { %4440 = vmatprep.subr.bf16.mxu1 %v4439_v46  ;;  %v4479_v46 = vpack.c.bf16 %v3633_v45, %v3631_v44 }
 0x424   : > { %4442 = vmatpush1.bf16.msra.mxu1 %v4441_v23  ;;  %v4481_v23 = vpack.c.bf16 %v3632_v19, %v3630_v59 }
 0x425   : > { %4445 = vmatprep.subr.msk.bf16.mxu1 %vm5990_vm10, %v4443_v50  ;;  %v4483_v50 = vpack.c.bf16 %v3637_v52, %v3635_v31 }
 0x428   : > { %4448 = vmatpush1.bf16.msk.msra.mxu1 %vm5990_vm10, %v4446_v60  ;;  %v4485_v60 = vpack.c.bf16 %v3636_v55, %v3634_v51 }
 0x429   : > { %4450 = vmatprep.subr.bf16.mxu1 %v4449_v62  ;;  %v4487_v62 = vpack.c.bf16 %v3641_v57, %v3639_v56 }
 0x42b   : > { %3596 = vmatmul.mubr.msk.f32.vlgmr.msra.gmra.mrb[0].mxu1 %vm1688_vm11, %v6044_v25  ;;  %v3613_v25 = vld [vmem:[%s7025_s5 + $0x318] sm:$0xff] }
 0x42c   : > { %4452 = vmatpush1.bf16.msra.mxu1 %v4451_v5  ;;  %1975 = vmatprep.mubr.f32.mxu1 %v4997_v0  ;;  %v4461_v38 = vpack.c.bf16 %v3613_v25, %v3611_v16  ;;  %v4499_v25 = vpack.c.bf16 %v3653_v15, %v3651_v13  ;;  %v2384_v13 = vld [vmem:[%s7028_s8 + $0x28] sm:$0xff] }
 0x42d   : > { %4454 = vmatprep.subr.bf16.mxu1 %v4453_v6  ;;  %v3642_v6 = vld [vmem:[%s7025_s5 + $0x3e0] sm:$0xff] }
 0x42e   : > { %v4493_v27 = vpack.c.bf16 %v3644_v8, %v3642_v6  ;;  %v2380_v6 = vld [vmem:[%s7028_s8 + $0x8] sm:$0xff] }
 0x42f   : > { %3597 = vmatmul.mubr.msk.f32.gmra.mrb[2].mxu1 %vm1688_vm11, %v1893_v14  ;;  %v3617_v14 = vld [vmem:[%s7025_s5 + $0x338] sm:$0xff] }
 0x430   : > { %4456 = vmatpush1.bf16.msra.mxu1 %v4455_v10  ;;  %2095 = vmatprep.mubr.f32.mxu1 %v4997_v0  ;;  %v4465_v21 = vpack.c.bf16 %v3617_v14, %v3615_v12  ;;  %v3646_v10 = vld [vmem:[%s7025_s5 + $0x400] sm:$0xff]  ;;  %v4503_v14 = vpack.c.bf16 %v3657_v36, %v3655_v18  ;;  %v2388_v18 = vld [vmem:[%s7028_s8 + $0x48] sm:$0xff] }
 0x431   : > { %4458 = vmatprep.subr.bf16.mxu1 %v4457_v11  ;;  %v3648_v11 = vld [vmem:[%s7025_s5 + $0x410] sm:$0xff] }
 0x432   : > { %v4497_v16 = vpack.c.bf16 %v3648_v11, %v3646_v10  ;;  %v2383_v11 = vld [vmem:[%s7028_s8 + $0x20] sm:$0xff] }
 0x433   : > { %v4522_v15 = vpack.c.bf16 %v2384_v13, %v2383_v11  ;;  %v3670_v11 = vld [vmem:[%s7029_s9 + $0x80] sm:$0xff]  ;;  %v3671_v13 = vld [vmem:[%s7029_s9 + $0x88] sm:$0xff] }
 0x434   : > { %4460 = vmatpush1.bf16.msra.mxu1 %v4459_v17  ;;  %v3650_v17 = vld [vmem:[%s7025_s5 + $0x420] sm:$0xff] }
 0x435   : > { %4462 = vmatprep.subr.bf16.mxu1 %v4461_v38  ;;  %v3652_v38 = vld [vmem:[%s7025_s5 + $0x430] sm:$0xff] }
 0x436   : > { %v4501_v12 = vpack.c.bf16 %v3652_v38, %v3650_v17  ;;  %v2387_v38 = vld [vmem:[%s7028_s8 + $0x40] sm:$0xff] }
 0x437   : > { %v4528_v36 = vpack.c.bf16 %v2388_v18, %v2387_v38  ;;  %v3673_v38 = vld [vmem:[%s7029_s9 + $0x98] sm:$0xff] }
 0x438   : > { %4464 = vmatpush1.bf16.msra.mxu1 %v4463_v20  ;;  %v3654_v20 = vld [vmem:[%s7025_s5 + $0x440] sm:$0xff] }
 0x439   : > { %4466 = vmatprep.subr.bf16.mxu1 %v4465_v21  ;;  %v3656_v21 = vld [vmem:[%s7025_s5 + $0x450] sm:$0xf] }
 0x43a   : > { %v4506_v22 = vpack.c.bf16 %v3656_v21, %v3654_v20  ;;  %v2391_v21 = vld [vmem:[%s7028_s8 + $0x60] sm:$0xff] }
 0x43c   : > { %4468 = vmatpush1.bf16.msra.mxu1 %v4467_v29 }
 0x43d   : > { %4470 = vmatprep.subr.bf16.mxu1 %v4469_v30 }
 0x440   : > { %4472 = vmatpush1.bf16.msra.mxu1 %v4471_v37 }
 0x441   : > { %4475 = vmatprep.subr.msk.bf16.mxu1 %vm5990_vm10, %v4473_v39 }
 0x444   : > { %4478 = vmatpush1.bf16.msk.msra.mxu1 %vm5990_vm10, %v4476_v54 }
 0x445   : > { %4480 = vmatprep.subr.bf16.mxu1 %v4479_v46 }
 0x447   : > { %3628 = vmatmul.mubr.msk.f32.vlgmr.msra.gmra.mrb[0].mxu1 %vm1688_vm11, %v6047_v47  ;;  %v3645_v47 = vld [vmem:[%s7025_s5 + $0x3f8] sm:$0xff] }
 0x448   : > { %4482 = vmatpush1.bf16.msra.mxu1 %v4481_v23  ;;  %2101 = vmatprep.mubr.f32.mxu1 %v4997_v0  ;;  %v4491_v5 = vpack.c.bf16 %v3645_v47, %v3643_v2 }
 0x449   : > { %4484 = vmatprep.subr.bf16.mxu1 %v4483_v50 }
 0x44b   : > { %3629 = vmatmul.mubr.msk.f32.gmra.mrb[2].mxu1 %vm1688_vm11, %v6067_v40  ;;  %v3649_v40 = vld [vmem:[%s7025_s5 + $0x418] sm:$0xff] }
 0x44c   : > { %4486 = vmatpush1.bf16.msra.mxu1 %v4485_v60  ;;  %2220 = vmatprep.mubr.f32.mxu1 %v4997_v0  ;;  %v4495_v9 = vpack.c.bf16 %v3649_v40, %v3647_v26  ;;  %v2297_v26 = vld [vmem:[%s7027_s7] sm:$0x7f] }
 0x44d   : > { %4488 = vmatprep.subr.bf16.mxu1 %v4487_v62 }
 0x450   : > { %4490 = vmatpush1.bf16.msra.mxu1 %v4489_v4 }
 0x451   : > { %4492 = vmatprep.subr.bf16.mxu1 %v4491_v5  ;;  %v2379_v5 = vld [vmem:[%s7028_s8] sm:$0xff] }
 0x452   : > { %v4516_v40 = vpack.c.bf16 %v2380_v6, %v2379_v5  ;;  %v2497_v5 = vld [vmem:[%s7029_s9 + $0x60] sm:$0xff]  ;;  %v2498_v6 = vld [vmem:[%s7029_s9 + $0x68] sm:$0xff] }
 0x454   : > { %4494 = vmatpush1.bf16.msra.mxu1 %v4493_v27  ;;  %v2381_v27 = vld [vmem:[%s7028_s8 + $0x10] sm:$0xff] }
 0x455   : > { %4496 = vmatprep.subr.bf16.mxu1 %v4495_v9  ;;  %v2382_v9 = vld [vmem:[%s7028_s8 + $0x18] sm:$0xff] }
 0x456   : > { %v4519_v10 = vpack.c.bf16 %v2382_v9, %v2381_v27  ;;  %v3668_v27 = vld [vmem:[%s7029_s9 + $0x70] sm:$0xff]  ;;  %v3669_v9 = vld [vmem:[%s7029_s9 + $0x78] sm:$0xff] }
 0x458   : > { %4498 = vmatpush1.bf16.msra.mxu1 %v4497_v16  ;;  %v2385_v16 = vld [vmem:[%s7028_s8 + $0x30] sm:$0xff] }
 0x459   : > { %4500 = vmatprep.subr.bf16.mxu1 %v4499_v25  ;;  %v2386_v25 = vld [vmem:[%s7028_s8 + $0x38] sm:$0xff] }
 0x45a   : > { %v4525_v17 = vpack.c.bf16 %v2386_v25, %v2385_v16  ;;  %v4583_v25 = vpack.c.bf16 %v3671_v13, %v3670_v11  ;;  %v3119_v13 = vld [vmem:[%s7031_s11 + $0x50] sm:$0xff] }
 0x45c   : > { %4502 = vmatpush1.bf16.msra.mxu1 %v4501_v12  ;;  %v2389_v12 = vld [vmem:[%s7028_s8 + $0x50] sm:$0xff] }
 0x45d   : > { %4505 = vmatprep.subr.msk.bf16.mxu1 %vm5990_vm10, %v4503_v14  ;;  %v2390_v14 = vld [vmem:[%s7028_s8 + $0x58] sm:$0xff] }
 0x45e   : > { %v4531_v20 = vpack.c.bf16 %v2390_v14, %v2389_v12  ;;  %v3675_v12 = vld [vmem:[%s7029_s9 + $0xa8] sm:$0xff] }
 0x460   : > { %4508 = vmatpush1.bf16.msk.msra.mxu1 %vm5990_vm10, %v4506_v22  ;;  %v2392_v22 = vld [vmem:[%s7028_s8 + $0x68] sm:$0xff] }
 0x461   : > { %4558 = vmatprep.subr.bf16.mxu1 %v4999_v32  ;;  %v4534_v24 = vpack.c.bf16 %v2392_v22, %v2391_v21  ;;  %v3677_v21 = vld [vmem:[%s7029_s9 + $0xb8] sm:$0xff] }
 0x463   : > { %3660 = vmatmul.mubr.msk.f32.vlgmr.msra.gmra.mrb[0].mxu1 %vm1688_vm11, %v6050_v28 }
 0x464   : > { %2226 = vmatprep.mubr.f32.mxu1 %v4997_v0 }
 0x467   : > { %3661 = vmatmul.mubr.msk.f32.gmra.mrb[2].mxu1 %vm1688_vm11, %v6070_v41 }
 0x468   : > { %3925 = vmatprep.mubr.msk.f32.mxu1 %vm5001_vm0, %v4997_v0 }
 0x536   : > { %v2222_v3 = vpop.f32.mrb[0].mxu1 }
 0x537   : > { %v2249_v29 = vadd.f32 %v2242_v42, %v2222_v3  ;;  %v2224_v30 = vpop.f32.mrb[1].mxu1 }
 0x538   : > { %v2250_v53 = vadd.f32 %v2246_v61, %v2224_v30  ;;  %v2396_v30 = vld [vmem:[%s7028_s8 + $0x88] sm:$0xff] }
 0x539   : > { %v2253_v28 = vmax.f32 %v2249_v29, 0.0  ;;  %v2395_v29 = vld [vmem:[%s7028_s8 + $0x80] sm:$0xff] }
 0x53a   : > { %v2254_v33 = vmax.f32 %v2250_v53, 0.0  ;;  %v2228_v34 = vpop.f32.mrb[2].mxu1  ;;  %v4540_v53 = vpack.c.bf16 %v2396_v30, %v2395_v29  ;;  %v3681_v29 = vld [vmem:[%s7029_s9 + $0xd8] sm:$0xff] }
 0x53b   : > { %v2251_v35 = vadd.f32 %v2242_v42, %v2228_v34  ;;  %v2230_v37 = vpop.f32.mrb[3].mxu1  ;;  %v2393_v42 = vld [vmem:[%s7028_s8 + $0x70] sm:$0xff] }
 0x53c   : > { %v4888_v41 = vpack.i.bf16 %v2254_v33, %v2253_v28  ;;  %v2252_v39 = vadd.f32 %v2246_v61, %v2230_v37  ;;  %v2394_v61 = vld [vmem:[%s7028_s8 + $0x78] sm:$0xff]  ;;  %v2400_v37 = vld [vmem:[%s7028_s8 + $0xa8] sm:$0xff] }
 0x53d   : > { %v2255_v58 = vmax.f32 %v2251_v35, 0.0  ;;  %v4537_v3 = vpack.c.bf16 %v2394_v61, %v2393_v42  ;;  %v2399_v35 = vld [vmem:[%s7028_s8 + $0xa0] sm:$0xff]  ;;  %v3679_v42 = vld [vmem:[%s7029_s9 + $0xc8] sm:$0xff] }
 0x53e   : > { %v2256_v43 = vmax.f32 %v2252_v39, 0.0  ;;  %4889 = vrot.lane.b32.xlu0 %v4888_v41, %s4998_s26  ;;  %v4546_v41 = vpack.c.bf16 %v2400_v37, %v2399_v35  ;;  %v2401_v39 = vld [vmem:[%s7028_s8 + $0xb0] sm:$0xff]  ;;  %v3686_v37 = vld [vmem:[%s7029_s9 + $0xf8] sm:$0xff] }
 0x53f   : > { %v3685_v35 = vld [vmem:[%s7029_s9 + $0xf0] sm:$0xff] }
 0x540   : > { %v4893_v44 = vpack.i.bf16 %v2256_v43, %v2255_v58 }
 0x542   : > { %4894 = vrot.lane.b32.xlu1 %v4893_v44, %s4998_s26  ;;  %v2403_v44 = vld [vmem:[%s7028_s8 + $0xc0] sm:$0xff]  ;;  %s500_s26 = sand.u32 1, %s4984_s19  }
 0x543   : > { %s501_s23 = scalar_lea.vmem [#allocation5], %s500_s26  ;;  %s3290_s18 = scalar_lea.sflag [#allocation4], %s500_s26 }
 0x544   : > { %s3302_s25 = sshll.u32 %s501_s23, 4  ;;  %s6980_s25 = int_to_ptr.vmem [resolvable:$true] %s3302_s25 }
 0x545   : > { %s4926_s24 = scalar_lea.vmem %s6980_s25, 16  ;;  %p4933_p2 = scmp.lt.s32.totalorder %s6980_s25, %s4931_s27 }
 0x546   : > { %p4927_p6 = scmp.ne.s32.totalorder %s6980_s25, %s4926_s24  ;;  %p4934_p3 = scmp.lt.s32.totalorder %s4932_s29, %s4926_s24 }
 0x548   : > { %p4928_p10 = pnand %p4927_p6, %p7060_p9  ;;  %p4935_p4 = por %p4934_p3, %p4933_p2 }
 0x54a   : > { %p4929_p12 = pneg %p4928_p10 }
 0x54c   : > { %p4936_p7 = pnand %p4935_p4, %p4929_p12 }
 0x5b0   : > { %v4890_v7 = vpop.permute.xlu0 %4889 }
 0x5b1   : > { %v4892_v48 = vunpack.i.h.bf16 %v4890_v7  ;;  %v4891_v49 = vunpack.i.l.bf16 %v4890_v7  ;;  %v2404_v7 = vld [vmem:[%s7028_s8 + $0xc8] sm:$0xff] }
 0x5b3   : > { %v2269_v45 = vsel %vm1329_vm5, %v4891_v49, %v4892_v48  ;;  %v2276_v46 = vmax.f32 %v2254_v33, %v4892_v48  ;;  %v2398_v33 = vld [vmem:[%s7028_s8 + $0x98] sm:$0xff]  ;;  %v4552_v48 = vpack.c.bf16 %v2404_v7, %v2403_v44  ;;  %v2405_v49 = vld [vmem:[%s7028_s8 + $0xd0] sm:$0xff] }
 0x5b4   : > { %v4895_v54 = vpop.permute.xlu1 %4894  ;;  %v2275_v31 = vmax.f32 %v2253_v28, %v2269_v45  ;;  %v2397_v28 = vld [vmem:[%s7028_s8 + $0x90] sm:$0xff]  ;;  %v2406_v45 = vld [vmem:[%s7028_s8 + $0xd8] sm:$0x7f] }
 0x5b5   : > { %v4897_v59 = vunpack.i.h.bf16 %v4895_v54  ;;  %v4896_v19 = vunpack.i.l.bf16 %v4895_v54  ;;  %v2286_v51 = vrot.slane %v2276_v46, 1  ;;  %v4543_v34 = vpack.c.bf16 %v2398_v33, %v2397_v28  ;;  %v3684_v28 = vld [vmem:[%s7029_s9 + $0xe8] sm:$0xff]  ;;  %v3689_v44 = vld [vmem:[%s7029_s9 + $0x110] sm:$0xff]  ;;  %v3690_v7 = vld [vmem:[%s7029_s9 + $0x118] sm:$0xff] }
 0x5b6   : > { %v2283_v56 = vrot.slane %v2275_v31, 1  ;;  %v4555_v54 = vpack.c.bf16 %v2406_v45, %v2405_v49  ;;  %v3691_v49 = vld [vmem:[%s7029_s9 + $0x120] sm:$0xff]  ;;  %v3692_v45 = vld [vmem:[%s7029_s9 + $0x128] sm:$0xff] }
 0x5b7   : > { %v2278_v52 = vmax.f32 %v2256_v43, %v4897_v59  ;;  %v2270_v23 = vsel %vm1329_vm5, %v4896_v19, %v4897_v59  ;;  %v2486_v59 = vld [vmem:[%s7029_s9 + $0x8] sm:$0xff]  ;;  %v2487_v19 = vld [vmem:[%s7029_s9 + $0x10] sm:$0xff] }
 0x5b8   : > { %v2277_v50 = vmax.f32 %v2255_v58, %v2270_v23  ;;  %v2402_v58 = vld [vmem:[%s7028_s8 + $0xb8] sm:$0xff] }
 0x5b9   : > { %v2287_v55 = vrot.slane %v2278_v52, 1  ;;  %v4549_v43 = vpack.c.bf16 %v2402_v58, %v2401_v39  ;;  %v3687_v39 = vld [vmem:[%s7029_s9 + $0x100] sm:$0xff]  ;;  %v3688_v58 = vld [vmem:[%s7029_s9 + $0x108] sm:$0xff] }
 0x5ba   : > { %v2284_v57 = vrot.slane %v2277_v50, 1 }
 0x5bb   : > { %v2288_v60 = vsel %vm578_vm2, %v2286_v51, %v2287_v55  ;;  %v2296_v62 = vmax.f32 %v2278_v52, %v2287_v55  ;;  %v2488_v52 = vld [vmem:[%s7029_s9 + $0x18] sm:$0xff]  ;;  %v2490_v51 = vld [vmem:[%s7029_s9 + $0x28] sm:$0xff] }
 0x5bc   : > { %v2294_v63 = vmax.f32 %v2276_v46, %v2288_v60  ;;  %v2285_v1 = vsel %vm578_vm2, %v2283_v56, %v2284_v57  ;;  %v2295_v2 = vmax.f32 %v2277_v50, %v2284_v57  ;;  %v2485_v46 = vld [vmem:[%s7029_s9] sm:$0xff]  ;;  %v4562_v23 = vpack.c.bf16 %v2488_v52, %v2487_v19  ;;  %v2491_v56 = vld [vmem:[%s7029_s9 + $0x30] sm:$0xff]  ;;  %v2492_v57 = vld [vmem:[%s7029_s9 + $0x38] sm:$0xff] }
 0x5bd   : > { %v2293_v47 = vmax.f32 %v2275_v31, %v2285_v1  ;;  %v4559_v31 = vpack.c.bf16 %v2486_v59, %v2485_v46  ;;  %v2489_v50 = vld [vmem:[%s7029_s9 + $0x20] sm:$0xff]  ;;  %v4568_v60 = vpack.c.bf16 %v2492_v57, %v2491_v56  ;;  %vm2499_vm2 = vcmask 916480   ;;  %v3110_v46 = vld [vmem:[%s7031_s11 + $0x8] sm:$0xff]  ;;  %v3111_v59 = vld [vmem:[%s7031_s11 + $0x10] sm:$0xff] }
 0x5be   : > { %v4509_v4 = vpack.c.bf16 %v2296_v62, %v2294_v63  ;;  %v4565_v55 = vpack.c.bf16 %v2490_v51, %v2489_v50  ;;  %v2493_v62 = vld [vmem:[%s7029_s9 + $0x40] sm:$0xff]  ;;  %v2494_v63 = vld [vmem:[%s7029_s9 + $0x48] sm:$0xff]  ;;  %v4613_v19 = vpack.c.bf16 %v3692_v45, %v3691_v49  ;;  %v3112_v52 = vld [vmem:[%s7031_s11 + $0x18] sm:$0xff] }
 0x5bf   : > { %v4512_v8 = vpack.c.bf16 %v2295_v2, %v2293_v47  ;;  %4560 = vmatpush3.bf16.msra.mxu1 %v4559_v31  ;;  %v4571_v1 = vpack.c.bf16 %v2494_v63, %v2493_v62  ;;  %v2495_v2 = vld [vmem:[%s7029_s9 + $0x50] sm:$0xff]  ;;  %v2496_v47 = vld [vmem:[%s7029_s9 + $0x58] sm:$0xff]  ;;  %v4709_v51 = vpack.c.bf16 %v3112_v52, %v3111_v59  ;;  %v3114_v56 = vld [vmem:[%s7031_s11 + $0x28] sm:$0xff] }
 0x5c0   : > { %4511 = vmatprep.subr.msk.bf16.mxu0 %vm4510_vm12, %v4509_v4  ;;  %4561 = vmatprep.subr.bf16.mxu1 %v4999_v32  ;;  %v4574_v4 = vpack.c.bf16 %v2496_v47, %v2495_v2  ;;  %v3694_v50 = vld [vmem:[%s7029_s9 + $0x138] sm:$0xff]  ;;  %v3696_v62 = vld [vmem:[%s7029_s9 + $0x148] sm:$0xff]  ;;  %v3721_v45 = vld [vmem:[%s7029_s9 + $0x200] sm:$0xff] }
 0x5c1   : > { %4514 = vmatpush1.bf16.msk.msra.mxu0 %vm4510_vm12, %v4512_v8  ;;  %v4577_v8 = vpack.c.bf16 %v2498_v6, %v2497_v5  ;;  %v3116_v2 = vld [vmem:[%s7031_s11 + $0x38] sm:$0xff]  ;;  %v3723_v59 = vld [vmem:[%s7029_s9 + $0x210] sm:$0xff]  ;;  %v3725_v52 = vld [vmem:[%s7029_s9 + $0x220] sm:$0xff] }
 0x5c2   : > { %4515 = vmatprep.subr.bf16.mxu0 %v4999_v32  ;;  %v3699_v5 = vld [vmem:[%s7029_s9 + $0x158] sm:$0xff] }
 0x5c3   : > { %4563 = vmatpush3.bf16.msra.mxu1 %v4562_v23  ;;  %v3693_v23 = vld [vmem:[%s7029_s9 + $0x130] sm:$0xff] }
 0x5c4   : > { %3664 = vmatmul.mubr.msk.f32.vlgmr.msra.gmra.mrb[22].mxu0 %vm2298_vm13, %v2297_v26  ;;  %4564 = vmatprep.subr.bf16.mxu1 %v4999_v32  ;;  %v4616_v57 = vpack.c.bf16 %v3694_v50, %v3693_v23  ;;  %v3726_v23 = vld [vmem:[%s7029_s9 + $0x228] sm:$0xff] }
 0x5c5   : > { %4517 = vmatpush1.bf16.msra.mxu0 %v4516_v40  ;;  %v4661_v50 = vpack.c.bf16 %v3726_v23, %v3725_v52  ;;  %v3203_v23 = vld [vmem:[#allocation2 + $0x20] sm:$0xff] }
 0x5c6   : > { %4518 = vmatprep.subr.bf16.mxu0 %v4999_v32 }
 0x5c7   : > { %4566 = vmatpush3.bf16.msra.mxu1 %v4565_v55  ;;  %v3113_v55 = vld [vmem:[%s7031_s11 + $0x20] sm:$0xff] }
 0x5c8   : > { %4567 = vmatprep.subr.bf16.mxu1 %v4999_v32  ;;  %v4712_v63 = vpack.c.bf16 %v3114_v56, %v3113_v55  ;;  %v3729_v55 = vld [vmem:[%s7029_s9 + $0x238] sm:$0xff] }
 0x5c9   : > { %4520 = vmatpush1.bf16.msra.mxu0 %v4519_v10  ;;  %v4580_v10 = vpack.c.bf16 %v3669_v9, %v3668_v27  ;;  %v3700_v9 = vld [vmem:[%s7029_s9 + $0x160] sm:$0xff] }
 0x5ca   : > { %4521 = vmatprep.subr.bf16.mxu0 %v4999_v32 }
 0x5cb   : > { %4569 = vmatpush3.bf16.msra.mxu1 %v4568_v60  ;;  %v3695_v60 = vld [vmem:[%s7029_s9 + $0x140] sm:$0xff] }
 0x5cc   : > { %4570 = vmatprep.subr.bf16.mxu1 %v4999_v32  ;;  %v4619_v47 = vpack.c.bf16 %v3696_v62, %v3695_v60  ;;  %v3730_v60 = vld [vmem:[%s7029_s9 + $0x240] sm:$0xff]  ;;  %v3731_v62 = vld [vmem:[%s7029_s9 + $0x248] sm:$0xff] }
 0x5cd   : > { %4523 = vmatpush1.bf16.msra.mxu0 %v4522_v15 }
 0x5ce   : > { %4524 = vmatprep.subr.bf16.mxu0 %v4999_v32 }
 0x5cf   : > { %4572 = vmatpush3.bf16.msra.mxu1 %v4571_v1  ;;  %v3115_v1 = vld [vmem:[%s7031_s11 + $0x30] sm:$0xff] }
 0x5d0   : > { %4573 = vmatprep.subr.bf16.mxu1 %v4999_v32  ;;  %v4715_v6 = vpack.c.bf16 %v3116_v2, %v3115_v1  ;;  %v3732_v1 = vld [vmem:[%s7029_s9 + $0x250] sm:$0xff]  ;;  %v3733_v2 = vld [vmem:[%s7029_s9 + $0x258] sm:$0xff] }
 0x5d1   : > { %4526 = vmatpush1.bf16.msra.mxu0 %v4525_v17  ;;  %v3672_v17 = vld [vmem:[%s7029_s9 + $0x90] sm:$0xff] }
 0x5d2   : > { %4527 = vmatprep.subr.bf16.mxu0 %v4999_v32  ;;  %v4586_v18 = vpack.c.bf16 %v3673_v38, %v3672_v17  ;;  %v3702_v17 = vld [vmem:[%s7029_s9 + $0x170] sm:$0xff]  ;;  %v3703_v38 = vld [vmem:[%s7029_s9 + $0x178] sm:$0xff] }
 0x5d3   : > { %4575 = vmatpush3.bf16.msra.mxu1 %v4574_v4  ;;  %v3698_v4 = vld [vmem:[%s7029_s9 + $0x150] sm:$0xff] }
 0x5d4   : > { %4576 = vmatprep.subr.bf16.mxu1 %v4999_v32 }
 0x5d5   : > { %4529 = vmatpush1.bf16.msra.mxu0 %v4528_v36  ;;  %v3674_v36 = vld [vmem:[%s7029_s9 + $0xa0] sm:$0xff] }
 0x5d6   : > { %4530 = vmatprep.subr.bf16.mxu0 %v4999_v32  ;;  %v4589_v14 = vpack.c.bf16 %v3675_v12, %v3674_v36  ;;  %v4628_v36 = vpack.c.bf16 %v3703_v38, %v3702_v17  ;;  %v3704_v12 = vld [vmem:[%s7029_s9 + $0x180] sm:$0xff]  ;;  %v3744_v17 = vld [vmem:[%s7029_s9 + $0x2a8] sm:$0xff] }
 0x5d7   : > { %4578 = vmatpush3.bf16.msra.mxu1 %v4577_v8  ;;  %v3117_v8 = vld [vmem:[%s7031_s11 + $0x40] sm:$0xff] }
 0x5d8   : > { %4579 = vmatprep.subr.bf16.mxu1 %v4999_v32 }
 0x5d9   : > { %4532 = vmatpush1.bf16.msra.mxu0 %v4531_v20  ;;  %v3676_v20 = vld [vmem:[%s7029_s9 + $0xb0] sm:$0xff] }
 0x5da   : > { %4533 = vmatprep.subr.bf16.mxu0 %v4999_v32  ;;  %v4592_v22 = vpack.c.bf16 %v3677_v21, %v3676_v20  ;;  %v3706_v21 = vld [vmem:[%s7029_s9 + $0x190] sm:$0xff] }
 0x5dd   : > { %4535 = vmatpush1.bf16.msra.mxu0 %v4534_v24  ;;  %v3678_v24 = vld [vmem:[%s7029_s9 + $0xc0] sm:$0xff] }
 0x5de   : > { %4536 = vmatprep.subr.bf16.mxu0 %v4999_v32  ;;  %v4595_v61 = vpack.c.bf16 %v3679_v42, %v3678_v24  ;;  %v3708_v42 = vld [vmem:[%s7029_s9 + $0x1a0] sm:$0xff] }
 0x5e1   : > { %4538 = vmatpush1.bf16.msra.mxu0 %v4537_v3  ;;  %v3680_v3 = vld [vmem:[%s7029_s9 + $0xd0] sm:$0xff] }
 0x5e2   : > { %4539 = vmatprep.subr.bf16.mxu0 %v4999_v32  ;;  %v4598_v30 = vpack.c.bf16 %v3681_v29, %v3680_v3  ;;  %v3710_v29 = vld [vmem:[%s7029_s9 + $0x1b0] sm:$0xff] }
 0x5e5   : > { %4541 = vmatpush1.bf16.msra.mxu0 %v4540_v53  ;;  %v3683_v53 = vld [vmem:[%s7029_s9 + $0xe0] sm:$0xff] }
 0x5e6   : > { %4542 = vmatprep.subr.bf16.mxu0 %v4999_v32  ;;  %v4601_v33 = vpack.c.bf16 %v3684_v28, %v3683_v53  ;;  %v3713_v28 = vld [vmem:[%s7029_s9 + $0x1c0] sm:$0xff] }
 0x5e9   : > { %4544 = vmatpush1.bf16.msra.mxu0 %v4543_v34 }
 0x5ea   : > { %4545 = vmatprep.subr.bf16.mxu0 %v4999_v32 }
 0x5ed   : > { %4547 = vmatpush1.bf16.msra.mxu0 %v4546_v41  ;;  %v4604_v41 = vpack.c.bf16 %v3686_v37, %v3685_v35  ;;  %v3715_v37 = vld [vmem:[%s7029_s9 + $0x1d0] sm:$0xff] }
 0x5ee   : > { %4548 = vmatprep.subr.bf16.mxu0 %v4999_v32 }
 0x5f1   : > { %4550 = vmatpush1.bf16.msra.mxu0 %v4549_v43  ;;  %v4607_v43 = vpack.c.bf16 %v3688_v58, %v3687_v39  ;;  %v3717_v58 = vld [vmem:[%s7029_s9 + $0x1e0] sm:$0xff] }
 0x5f2   : > { %4551 = vmatprep.subr.bf16.mxu0 %v4999_v32 }
 0x5f5   : > { %4553 = vmatpush1.bf16.msra.mxu0 %v4552_v48  ;;  %v4610_v48 = vpack.c.bf16 %v3690_v7, %v3689_v44  ;;  %v3719_v7 = vld [vmem:[%s7029_s9 + $0x1f0] sm:$0xff] }
 0x5f6   : > { %4554 = vmatprep.subr.bf16.mxu0 %v4999_v32 }
 0x5f9   : > { %4557 = vmatpush1.bf16.msk.msra.mxu0 %vm4556_vm14, %v4555_v54  ;;  %v3109_v54 = vld [vmem:[%s7031_s11] sm:$0xff] }
 0x5fa   : > { %4705 = vmatprep.subr.bf16.mxu0 %v4999_v32  ;;  %v4706_v31 = vpack.c.bf16 %v3110_v46, %v3109_v54  ;;  %v3722_v54 = vld [vmem:[%s7029_s9 + $0x208] sm:$0xff] }
 0x5fb   : > { %v4655_v46 = vpack.c.bf16 %v3722_v54, %v3721_v45 }
 0x697   : > { %v2374_v26 = vpop.f32.mrb[22].mxu0 }
 0x698   : > { %v2376_v40 = vpop.f32.mrb[23].mxu0 }
 0x699   : > { %3666 = vmatprep.mubr.msk.f32.mxu0 %vm2407_vm15, %v2376_v40  ;;  %v4622_v40 = vpack.c.bf16 %v3699_v5, %v3698_v4  ;;  %v3734_v4 = vld [vmem:[%s7029_s9 + $0x260] sm:$0xff]  ;;  %v3735_v5 = vld [vmem:[%s7029_s9 + $0x268] sm:$0xff] }
 0x69a   : > { %2479 = vmatmul.mubr.f32.vlgmr.msra.gmra.mrb[24].mxu0 %v2374_v26  ;;  %v3118_v26 = vld [vmem:[%s7031_s11 + $0x48] sm:$0xff] }
 0x69b   : > { %4144 = vmatprep.mubr.msk.f32.mxu0 %vm5001_vm0, %v4997_v0  ;;  %4707 = vmatpush3.bf16.msra.mxu0 %v4706_v31  ;;  %v4718_v11 = vpack.c.bf16 %v3118_v26, %v3117_v8  ;;  %v3736_v8 = vld [vmem:[%s7029_s9 + $0x270] sm:$0xff]  ;;  %v3737_v26 = vld [vmem:[%s7029_s9 + $0x278] sm:$0xff] }
 0x69c   : > { %4708 = vmatprep.subr.bf16.mxu0 %v4999_v32 }
 0x69f   : > { %4710 = vmatpush3.bf16.msra.mxu0 %v4709_v51  ;;  %v3728_v51 = vld [vmem:[%s7029_s9 + $0x230] sm:$0xff] }
 0x6a0   : > { %4711 = vmatprep.subr.bf16.mxu0 %v4999_v32  ;;  %v4664_v56 = vpack.c.bf16 %v3729_v55, %v3728_v51  ;;  %v3205_v55 = vld [vmem:[#allocation2 + $0x30] sm:$0xff] }
 0x6a3   : > { %4713 = vmatpush3.bf16.msra.mxu0 %v4712_v63  ;;  %v4667_v63 = vpack.c.bf16 %v3731_v62, %v3730_v60  ;;  %v3207_v60 = vld [vmem:[#allocation2 + $0x40] sm:$0xff]  ;;  %v3208_v62 = vld [vmem:[#allocation2 + $0x48] sm:$0xff] }
 0x6a4   : > { %4714 = vmatprep.subr.bf16.mxu0 %v4999_v32 }
 0x6a7   : > { %4716 = vmatpush3.bf16.msra.mxu0 %v4715_v6  ;;  %v4673_v6 = vpack.c.bf16 %v3735_v5, %v3734_v4 }
 0x6a8   : > { %4717 = vmatprep.subr.bf16.mxu0 %v4999_v32 }
 0x6ab   : > { %4719 = vmatpush3.bf16.msra.mxu0 %v4718_v11  ;;  %v3740_v11 = vld [vmem:[%s7029_s9 + $0x290] sm:$0xff] }
 0x6ac   : > { %4720 = vmatprep.subr.bf16.mxu0 %v4999_v32 }
 0x76d   : > { %v6593_v15 = vpop.f32.mrb[24].mxu0 }
 0x76e   : > { %3926 = vmatmul.mubr.msk.f32.vlgmr.msra.gmra.mrb[4].mxu1 %vm2499_vm2, %v6593_v15  ;;  %v2482_v16 = vpop.f32.mrb[25].mxu0  ;;  %v2589_v34 = vrot.slane %v6593_v15, 1  ;;  %v2678_v27 = vrot.slane %v6593_v15, 2  ;;  %v2767_v35 = vrot.slane %v6593_v15, 3 }
 0x76f   : > { %4581 = vmatpush3.bf16.msra.mxu1 %v4580_v10  ;;  %3956 = vmatprep.mubr.msk.f32.mxu1 %vm5001_vm0, %v4997_v0  ;;  %v3701_v10 = vld [vmem:[%s7029_s9 + $0x168] sm:$0xff]  ;;  %v3120_v16 = vld [vmem:[%s7031_s11 + $0x58] sm:$0xff] }
 0x770   : > { %4582 = vmatprep.subr.bf16.mxu1 %v4999_v32 }
 0x773   : > { %4584 = vmatpush3.bf16.msra.mxu1 %v4583_v25  ;;  %v4625_v25 = vpack.c.bf16 %v3701_v10, %v3700_v9  ;;  %v3739_v9 = vld [vmem:[%s7029_s9 + $0x288] sm:$0xff] }
 0x774   : > { %4585 = vmatprep.subr.bf16.mxu1 %v4999_v32 }
 0x777   : > { %4587 = vmatpush3.bf16.msra.mxu1 %v4586_v18  ;;  %v4721_v18 = vpack.c.bf16 %v3120_v16, %v3119_v13  ;;  %v3741_v13 = vld [vmem:[%s7029_s9 + $0x298] sm:$0xff] }
 0x778   : > { %4588 = vmatprep.subr.bf16.mxu1 %v4999_v32  ;;  %v4682_v16 = vpack.c.bf16 %v3741_v13, %v3740_v11 }
 0x779   : > { %4722 = vmatpush3.bf16.msra.mxu0 %v4721_v18  ;;  %v2945_v18 = vrot.slane %v6593_v15, 5 }
 0x77a   : > { %4723 = vmatprep.subr.bf16.mxu0 %v4999_v32 }
 0x77b   : > { %4590 = vmatpush3.bf16.msra.mxu1 %v4589_v14  ;;  %v3705_v14 = vld [vmem:[%s7029_s9 + $0x188] sm:$0xff] }
 0x77c   : > { %4591 = vmatprep.subr.bf16.mxu1 %v4999_v32  ;;  %v4631_v20 = vpack.c.bf16 %v3705_v14, %v3704_v12  ;;  %v3746_v12 = vld [vmem:[%s7029_s9 + $0x2b8] sm:$0xff] }
 0x77f   : > { %4593 = vmatpush3.bf16.msra.mxu1 %v4592_v22  ;;  %v3707_v22 = vld [vmem:[%s7029_s9 + $0x198] sm:$0xff] }
 0x780   : > { %4594 = vmatprep.subr.bf16.mxu1 %v4999_v32  ;;  %v4634_v24 = vpack.c.bf16 %v3707_v22, %v3706_v21  ;;  %v3748_v21 = vld [vmem:[%s7029_s9 + $0x2c8] sm:$0xff] }
 0x783   : > { %4596 = vmatpush3.bf16.msra.mxu1 %v4595_v61  ;;  %v3709_v61 = vld [vmem:[%s7029_s9 + $0x1a8] sm:$0xff] }
 0x784   : > { %4597 = vmatprep.subr.bf16.mxu1 %v4999_v32  ;;  %v4637_v3 = vpack.c.bf16 %v3709_v61, %v3708_v42  ;;  %v3750_v42 = vld [vmem:[%s7029_s9 + $0x2d8] sm:$0xff] }
 0x787   : > { %4599 = vmatpush3.bf16.msra.mxu1 %v4598_v30  ;;  %v3711_v30 = vld [vmem:[%s7029_s9 + $0x1b8] sm:$0xff] }
 0x788   : > { %4600 = vmatprep.subr.bf16.mxu1 %v4999_v32  ;;  %v4640_v53 = vpack.c.bf16 %v3711_v30, %v3710_v29  ;;  %v3752_v29 = vld [vmem:[%s7029_s9 + $0x2e8] sm:$0xff] }
 0x78a   : > { %3957 = vmatmul.mubr.msk.f32.vlgmr.msra.gmra.mrb[4].mxu1 %vm2499_vm2, %v2589_v34 }
 0x78b   : > { %4602 = vmatpush3.bf16.msra.mxu1 %v4601_v33  ;;  %3987 = vmatprep.mubr.msk.f32.mxu1 %vm5001_vm0, %v4997_v0  ;;  %v3714_v33 = vld [vmem:[%s7029_s9 + $0x1c8] sm:$0xff] }
 0x78c   : > { %4603 = vmatprep.subr.bf16.mxu1 %v4999_v32  ;;  %v4643_v34 = vpack.c.bf16 %v3714_v33, %v3713_v28  ;;  %v3754_v28 = vld [vmem:[%s7029_s9 + $0x2f8] sm:$0xff] }
 0x78f   : > { %4605 = vmatpush3.bf16.msra.mxu1 %v4604_v41  ;;  %v3716_v41 = vld [vmem:[%s7029_s9 + $0x1d8] sm:$0xff] }
 0x790   : > { %4606 = vmatprep.subr.bf16.mxu1 %v4999_v32  ;;  %v4646_v39 = vpack.c.bf16 %v3716_v41, %v3715_v37  ;;  %v3034_v41 = vrot.slane %v6593_v15, 6 }
 0x793   : > { %4608 = vmatpush3.bf16.msra.mxu1 %v4607_v43  ;;  %v3718_v43 = vld [vmem:[%s7029_s9 + $0x1e8] sm:$0xff] }
 0x794   : > { %4609 = vmatprep.subr.bf16.mxu1 %v4999_v32  ;;  %v4649_v44 = vpack.c.bf16 %v3718_v43, %v3717_v58  ;;  %v3122_v58 = vld [vmem:[%s7031_s11 + $0x68] sm:$0xff] }
 0x797   : > { %4611 = vmatpush3.bf16.msra.mxu1 %v4610_v48  ;;  %v3720_v48 = vld [vmem:[%s7029_s9 + $0x1f8] sm:$0xff] }
 0x798   : > { %4612 = vmatprep.subr.bf16.mxu1 %v4999_v32  ;;  %v4652_v49 = vpack.c.bf16 %v3720_v48, %v3719_v7  ;;  %v3199_v7 = vld [vmem:[#allocation2] sm:$0xff]  ;;  %v3200_v48 = vld [vmem:[#allocation2 + $0x8] sm:$0xff] }
 0x79b   : > { %4614 = vmatpush3.bf16.msra.mxu1 %v4613_v19  ;;  %v3724_v19 = vld [vmem:[%s7029_s9 + $0x218] sm:$0xff] }
 0x79c   : > { %4615 = vmatprep.subr.bf16.mxu1 %v4999_v32  ;;  %v4658_v31 = vpack.c.bf16 %v3724_v19, %v3723_v59  ;;  %v3201_v19 = vld [vmem:[#allocation2 + $0x10] sm:$0xff] }
 0x79f   : > { %4617 = vmatpush3.bf16.msra.mxu1 %v4616_v57  ;;  %v2856_v57 = vrot.slane %v6593_v15, 4  ;;  %v2484_v15 = vld [vmem:[%s7030_s10] sm:$0x1] }
 0x7a0   : > { %4618 = vmatprep.subr.bf16.mxu1 %v4999_v32 }
 0x7a3   : > { %4620 = vmatpush3.bf16.msra.mxu1 %v4619_v47  ;;  %v4670_v47 = vpack.c.bf16 %v3733_v2, %v3732_v1  ;;  %v3209_v1 = vld [vmem:[#allocation2 + $0x50] sm:$0xf]  ;;  %v3124_v2 = vld [vmem:[%s7032_s12] sm:$0x1] }
 0x7a4   : > { %4621 = vmatprep.subr.bf16.mxu1 %v4999_v32 }
 0x7a6   : > { %3988 = vmatmul.mubr.msk.f32.vlgmr.msra.gmra.mrb[4].mxu1 %vm2499_vm2, %v2678_v27  ;;  %v3738_v27 = vld [vmem:[%s7029_s9 + $0x280] sm:$0xff] }
 0x7a7   : > { %4623 = vmatpush3.bf16.msra.mxu1 %v4622_v40  ;;  %4018 = vmatprep.mubr.msk.f32.mxu1 %vm5001_vm0, %v4997_v0  ;;  %v4676_v40 = vpack.c.bf16 %v3737_v26, %v3736_v8  ;;  %v4679_v10 = vpack.c.bf16 %v3739_v9, %v3738_v27 }
 0x7a8   : > { %4624 = vmatprep.subr.bf16.mxu1 %v4999_v32 }
 0x7ab   : > { %4626 = vmatpush3.bf16.msra.mxu1 %v4625_v25  ;;  %v3743_v25 = vld [vmem:[%s7029_s9 + $0x2a0] sm:$0xff] }
 0x7ac   : > { %4627 = vmatprep.subr.bf16.mxu1 %v4999_v32  ;;  %v4685_v38 = vpack.c.bf16 %v3744_v17, %v3743_v25 }
 0x7af   : > { %4629 = vmatpush3.bf16.msra.mxu1 %v4628_v36  ;;  %v3745_v36 = vld [vmem:[%s7029_s9 + $0x2b0] sm:$0xff] }
 0x7b0   : > { %4630 = vmatprep.subr.bf16.mxu1 %v4999_v32  ;;  %v4688_v14 = vpack.c.bf16 %v3746_v12, %v3745_v36 }
 0x7b3   : > { %4632 = vmatpush3.bf16.msra.mxu1 %v4631_v20  ;;  %v3747_v20 = vld [vmem:[%s7029_s9 + $0x2c0] sm:$0xff] }
 0x7b4   : > { %4633 = vmatprep.subr.bf16.mxu1 %v4999_v32  ;;  %v4691_v22 = vpack.c.bf16 %v3748_v21, %v3747_v20 }
 0x7b7   : > { %4635 = vmatpush3.bf16.msra.mxu1 %v4634_v24  ;;  %v3749_v24 = vld [vmem:[%s7029_s9 + $0x2d0] sm:$0xff] }
 0x7b8   : > { %4636 = vmatprep.subr.bf16.mxu1 %v4999_v32  ;;  %v4694_v61 = vpack.c.bf16 %v3750_v42, %v3749_v24 }
 0x7bb   : > { %4638 = vmatpush3.bf16.msra.mxu1 %v4637_v3  ;;  %v3751_v3 = vld [vmem:[%s7029_s9 + $0x2e0] sm:$0xff] }
 0x7bc   : > { %4639 = vmatprep.subr.bf16.mxu1 %v4999_v32  ;;  %v4697_v30 = vpack.c.bf16 %v3752_v29, %v3751_v3 }
 0x7bf   : > { %4641 = vmatpush3.bf16.msra.mxu1 %v4640_v53  ;;  %v3753_v53 = vld [vmem:[%s7029_s9 + $0x2f0] sm:$0xff] }
 0x7c0   : > { %4642 = vmatprep.subr.bf16.mxu1 %v4999_v32  ;;  %v4700_v33 = vpack.c.bf16 %v3754_v28, %v3753_v53 }
 0x7c2   : > { %4019 = vmatmul.mubr.msk.f32.vlgmr.msra.gmra.mrb[4].mxu1 %vm2499_vm2, %v2767_v35  ;;  %v3756_v35 = vld [vmem:[%s7029_s9 + $0x308] sm:$0xff] }
 0x7c3   : > { %4644 = vmatpush3.bf16.msra.mxu1 %v4643_v34  ;;  %4049 = vmatprep.mubr.msk.f32.mxu1 %vm5001_vm0, %v4997_v0  ;;  %v3755_v34 = vld [vmem:[%s7029_s9 + $0x300] sm:$0xff] }
 0x7c4   : > { %4645 = vmatprep.subr.bf16.mxu1 %v4999_v32  ;;  %v4703_v37 = vpack.c.bf16 %v3756_v35, %v3755_v34 }
 0x7c7   : > { %4647 = vmatpush3.bf16.msra.mxu1 %v4646_v39  ;;  %v3121_v39 = vld [vmem:[%s7031_s11 + $0x60] sm:$0xff] }
 0x7c8   : > { %4648 = vmatprep.subr.bf16.mxu1 %v4999_v32  ;;  %v4724_v43 = vpack.c.bf16 %v3122_v58, %v3121_v39 }
 0x7ca   : > { %4725 = vmatpush3.bf16.msra.mxu0 %v4724_v43 }
 0x7cb   : > { %4650 = vmatpush3.bf16.msra.mxu1 %v4649_v44  ;;  %4142 = vmatprep.subr.mxu0 %v4997_v0  ;;  %v3123_v44 = vld [vmem:[%s7031_s11 + $0x70] sm:$0xff] }
 0x7cc   : > { %4651 = vmatprep.subr.bf16.mxu1 %v4999_v32 }
 0x7ce   : > { %4143 = vmatpush3.msra.mxu0 %v3123_v44 }
 0x7cf   : > { %4653 = vmatpush3.bf16.msra.mxu1 %v4652_v49  ;;  %4726 = vmatprep.subr.bf16.mxu0 %v4999_v32 }
 0x7d0   : > { %4654 = vmatprep.subr.bf16.mxu1 %v4999_v32 }
 0x7d3   : > { %4656 = vmatpush3.bf16.msra.mxu1 %v4655_v46  ;;  %v4727_v46 = vpack.c.bf16 %v3200_v48, %v3199_v7 }
 0x7d4   : > { %4657 = vmatprep.subr.bf16.mxu1 %v4999_v32 }
 0x7d7   : > { %4659 = vmatpush3.bf16.msra.mxu1 %v4658_v31  ;;  %v3202_v31 = vld [vmem:[#allocation2 + $0x18] sm:$0xff] }
 0x7d8   : > { %4660 = vmatprep.subr.bf16.mxu1 %v4999_v32  ;;  %v4730_v52 = vpack.c.bf16 %v3202_v31, %v3201_v19 }
 0x7db   : > { %4662 = vmatpush3.bf16.msra.mxu1 %v4661_v50  ;;  %v3204_v50 = vld [vmem:[#allocation2 + $0x28] sm:$0xff] }
 0x7dc   : > { %4663 = vmatprep.subr.bf16.mxu1 %v4999_v32  ;;  %v4733_v51 = vpack.c.bf16 %v3204_v50, %v3203_v23 }
 0x7de   : > { %4050 = vmatmul.mubr.msk.f32.vlgmr.msra.gmra.mrb[4].mxu1 %vm2499_vm2, %v2856_v57 }
 0x7df   : > { %4665 = vmatpush3.bf16.msra.mxu1 %v4664_v56  ;;  %4080 = vmatprep.mubr.msk.f32.mxu1 %vm5001_vm0, %v4997_v0  ;;  %v3206_v56 = vld [vmem:[#allocation2 + $0x38] sm:$0xff] }
 0x7e0   : > { %4666 = vmatprep.subr.bf16.mxu1 %v4999_v32  ;;  %v4736_v57 = vpack.c.bf16 %v3206_v56, %v3205_v55 }
 0x7e3   : > { %4668 = vmatpush3.bf16.msra.mxu1 %v4667_v63  ;;  %v4739_v63 = vpack.c.bf16 %v3208_v62, %v3207_v60 }
 0x7e4   : > { %4669 = vmatprep.subr.bf16.mxu1 %v4999_v32 }
 0x7e7   : > { %4671 = vmatpush3.bf16.msra.mxu1 %v4670_v47 }
 0x7e8   : > { %4672 = vmatprep.subr.bf16.mxu1 %v4999_v32 }
 0x7eb   : > { %4674 = vmatpush3.bf16.msra.mxu1 %v4673_v6 }
 0x7ec   : > { %4675 = vmatprep.subr.bf16.mxu1 %v4999_v32 }
 0x7ef   : > { %4677 = vmatpush3.bf16.msra.mxu1 %v4676_v40 }
 0x7f0   : > { %4678 = vmatprep.subr.bf16.mxu1 %v4999_v32 }
 0x7f3   : > { %4680 = vmatpush3.bf16.msra.mxu1 %v4679_v10 }
 0x7f4   : > { %4681 = vmatprep.subr.bf16.mxu1 %v4999_v32 }
 0x7f7   : > { %4683 = vmatpush3.bf16.msra.mxu1 %v4682_v16 }
 0x7f8   : > { %4684 = vmatprep.subr.bf16.mxu1 %v4999_v32 }
 0x7fa   : > { %4081 = vmatmul.mubr.msk.f32.vlgmr.msra.gmra.mrb[4].mxu1 %vm2499_vm2, %v2945_v18 }
 0x7fb   : > { %4686 = vmatpush3.bf16.msra.mxu1 %v4685_v38  ;;  %4111 = vmatprep.mubr.msk.f32.mxu1 %vm5001_vm0, %v4997_v0 }
 0x7fc   : > { %4687 = vmatprep.subr.bf16.mxu1 %v4999_v32 }
 0x7ff   : > { %4689 = vmatpush3.bf16.msra.mxu1 %v4688_v14 }
 0x800   : > { %4690 = vmatprep.subr.bf16.mxu1 %v4999_v32 }
 0x803   : > { %4692 = vmatpush3.bf16.msra.mxu1 %v4691_v22 }
 0x804   : > { %4693 = vmatprep.subr.bf16.mxu1 %v4999_v32 }
 0x807   : > { %4695 = vmatpush3.bf16.msra.mxu1 %v4694_v61 }
 0x808   : > { %4696 = vmatprep.subr.bf16.mxu1 %v4999_v32 }
 0x80b   : > { %4698 = vmatpush3.bf16.msra.mxu1 %v4697_v30 }
 0x80c   : > { %4699 = vmatprep.subr.bf16.mxu1 %v4999_v32 }
 0x80f   : > { %4701 = vmatpush3.bf16.msra.mxu1 %v4700_v33 }
 0x810   : > { %4702 = vmatprep.subr.bf16.mxu1 %v4999_v32 }
 0x813   : > { %4704 = vmatpush3.bf16.msra.mxu1 %v4703_v37 }
 0x816   : > { %4112 = vmatmul.mubr.msk.f32.vlgmr.msra.gmra.mrb[4].mxu1 %vm2499_vm2, %v3034_v41 }
 0x8e9   : > { %v3103_v49 = vpop.f32.mrb[4].mxu1 }
 0x8ea   : > { %v4741_v45 = vadd.f32 %v3103_v49, %v2484_v15  ;;  %v4113_v54 = vpop.f32.mrb[5].mxu1 }
 0x8ec   : > { %v3108_v59 = vmax.f32 %v4741_v45, 0.0 }
 0x8ee   : > { %4145 = vmatmul.mubr.msk.f32.vlgmr.msra.gmra.mrb[26].mxu0 %vm588_vm3, %v3108_v59  ;;  %vm3211_vm3 = vcmask 687104  }
 0x8ef   : > { %4728 = vmatpush3.bf16.msra.mxu0 %v4727_v46  ;;  %4169 = vmatprep.mubr.msk.f32.mxu0 %vm5001_vm0, %v4997_v0 }
 0x8f0   : > { %4729 = vmatprep.subr.bf16.mxu0 %v4999_v32 }
 0x8f3   : > { %4731 = vmatpush3.bf16.msra.mxu0 %v4730_v52 }
 0x8f4   : > { %4732 = vmatprep.subr.bf16.mxu0 %v4999_v32 }
 0x8f7   : > { %4734 = vmatpush3.bf16.msra.mxu0 %v4733_v51 }
 0x8f8   : > { %4735 = vmatprep.subr.bf16.mxu0 %v4999_v32 }
 0x8fb   : > { %4737 = vmatpush3.bf16.msra.mxu0 %v4736_v57 }
 0x8fc   : > { %4738 = vmatprep.subr.bf16.mxu0 %v4999_v32  ;;  %v3210_v32 = vld [vmem:[%s7034_s14] sm:$0x1] }
 0x8ff   : > { %4740 = vmatpush3.bf16.msra.mxu0 %v4739_v63 }
 0x900   : > { %4167 = vmatprep.subr.mxu0 %v4997_v0 }
 0x903   : > { %4168 = vmatpush3.msk.msra.mxu0 %vm1142_vm1, %v3209_v1 }
 0x9c1   : > { %v3194_v47 = vpop.f32.mrb[26].mxu0 }
 0x9c2   : > { %v3195_v4 = vadd.f32 %v3194_v47, %v3124_v2  ;;  %v4146_v5 = vpop.f32.mrb[27].mxu0 }
 0x9c4   : > { %v3198_v6 = vmax.f32 %v3195_v4, 0.0 }
 0x9c6   : > { %4170 = vmatmul.mubr.msk.f32.vlgmr.msra.gmra.mrb[28].mxu0 %vm3211_vm3, %v3198_v6 }
 0xa99   : > { %v3284_v0 = vpop.f32.mrb[28].mxu0 }
 0xa9a   : > { %v3285_v8 = vadd.f32 %v3284_v0, %v3210_v32  ;;  %v4171_v26 = vpop.f32.mrb[29].mxu0 }
 0xa9c   : > { %3288 = vst [vmem:[%s501_s23] sm:$0x1] %v3285_v8 }
 0xa9d   : > { %4939 = shalt.err (!%p4936_p7)
}
 0xa9e   : > { %s4940_s26 = scalar_lea.hbm %s6978_s20, 16  ;;  %s4944_s23 = scalar_lea.hbm %s7035_s15, 32 }
 0xa9f   : > { %p4941_p8 = scmp.ne.s32.totalorder %s6978_s20, %s4940_s26  ;;  %p4945_p1 = scmp.lt.u32.totalorder %s6978_s20, %s7035_s15 }
 0xaa0   : > { %p4946_p0 = scmp.lt.u32.totalorder %s4944_s23, %s4940_s26  ;;  %p4948_p6 = scmp.lt.u32.totalorder %s4940_s26, %s6978_s20 }
 0xaa1   : > { %p4942_p11 = pnand %p4941_p8, %p7060_p9 }
 0xaa2   : > { %p4947_p5 = por %p4946_p0, %p4945_p1 }
 0xaa3   : > { %p4943_p13 = pneg %p4942_p11 }
 0xaa4   : > { %p4949_p10 = por %p4948_p6, %p4947_p5 }
 0xaa6   : > { %p4950_p12 = pnand %p4949_p10, %p4943_p13 }
 0xaa8   : > { %4953 = shalt.err (!%p4950_p12)
}
 0xaa9   : > { %4815 = dma.vmem_to_hbm [thread:$0]  (%p7060_p9), %s6980_s25, 16, %s6978_s20, %s3290_s18  }
 0xaaa PF: > { %s7061_s24 = sld [smem:[#allocation8_spill]]  ;;  %s7062_s22 = sld [smem:[#allocation12_spill]] }
 0xaab   : > { %p4827_p2 = scmp.ge.s32.totalorder %s4992_s21, 2 }
 0xab0   : > { %s3314_s27 = sand.u32 1, %s7061_s24   ;;  %p7063_p3 = scmp.ne.s32.totalorder %s7062_s22, 0 }
 0xab1   : > { %s3315_s29 = scalar_lea.sflag [#allocation4], %s3314_s27 }
 0xab2   : > { %p4822_p4 = pnand %p4827_p2, %p7063_p3 }
 0xab4   : > { %4975 = dma.done.wait (!%p4822_p4), %s3315_s29, 16  }
 0xab5   : > { %4977 = vsyncadd (!%p4822_p4), %s3315_s29, 4294967280  ;;  %s7064_s21 = sld [smem:[#allocation10_spill]]  ;;  %s7065_s26 = sld [smem:[#allocation9_spill]] }
 0xab6   : > { %s7066_s20 = sld [smem:[#allocation11_spill]]  ;;  %s7067_s18 = smov %s4984_s19 }
 0xabb   : > { %p26_p7 = scmp.ge.s32.totalorder %s7064_s21, 4   ;;  %s7068_s19 = smov %s7065_s26 }
 0xabd   :  { %28 = sbr.rel (!%p26_p7) target bundleno = 6 (0x6), region = 134 }
 0xac4   :  { %3319 = vsyncpa [#allocation3], 1 }
 0xac5   :  { %3321 = vsyncpa [#allocation3 + $0x1], 1 }
 0xac6   :  { %3322 = vsyncpa [#allocation4], 1 }
 0xac7   :  { %3324 = vsyncpa [#allocation4 + $0x1], 1 }

</bundles_post_ra>
